<compile_context>
chip_gen: v5e
topology: v5e:2x2
jax: 0.10.0
libtpu: 0.0.40
codegen_flags: <defaults>
</compile_context>

<pallas_src>
import functools
import math

import numpy as np
import jax
import jax.numpy as jnp
from jax.experimental import pallas as pl
from jax.experimental.pallas import tpu as pltpu  # noqa: F401  (TPU backend assumed)


# ----------------------------------------------------------------------------------
# Host-side helpers copied from Pyraformer (pure index / mask construction)
# ----------------------------------------------------------------------------------
def get_mask(input_size, window_size, inner_size):
    """Attention mask of PAM-Naive. Returns (bool mask [True == blocked], all_size)."""
    all_size = [input_size]
    for w in window_size:
        all_size.append(all_size[-1] // w)
    seq_length = sum(all_size)
    mask = np.zeros((seq_length, seq_length), dtype=np.float32)

    inner_window = inner_size // 2
    for layer_idx in range(len(all_size)):
        start = sum(all_size[:layer_idx])
        for i in range(start, start + all_size[layer_idx]):
            left_side = max(i - inner_window, start)
            right_side = min(i + inner_window + 1, start + all_size[layer_idx])
            mask[i, left_side:right_side] = 1

    for layer_idx in range(1, len(all_size)):
        start = sum(all_size[:layer_idx])
        for i in range(start, start + all_size[layer_idx]):
            left_side = (start - all_size[layer_idx - 1]) + (i - start) * window_size[layer_idx - 1]
            if i == (start + all_size[layer_idx] - 1):
                right_side = start
            else:
                right_side = (start - all_size[layer_idx - 1]) + (i - start + 1) * window_size[layer_idx - 1]
            mask[i, left_side:right_side] = 1
            mask[left_side:right_side, i] = 1

    return (1 - mask).astype(bool), all_size


def refer_points(all_sizes, window_size):
    """Gather indices from PAM's pyramid sequences. Returns (input_size, n_levels) int32."""
    input_size = all_sizes[0]
    indexes = np.zeros((input_size, len(all_sizes)), dtype=np.int32)
    for i in range(input_size):
        indexes[i][0] = i
        former_index = i
        for j in range(1, len(all_sizes)):
            start = sum(all_sizes[:j])
            inner_layer_idx = former_index - (start - all_sizes[j - 1])
            former_index = start + min(inner_layer_idx // window_size[j - 1], all_sizes[j] - 1)
            indexes[i][j] = former_index
    return indexes


def positional_encoding(max_len, d_model):
    pos = np.arange(max_len, dtype=np.float32)[:, None]
    div = np.exp(np.arange(0, d_model, 2, dtype=np.float32) * -(math.log(10000.0) / d_model))
    pe = np.zeros((max_len, d_model), dtype=np.float32)
    pe[:, 0::2] = np.sin(pos * div)
    pe[:, 1::2] = np.cos(pos * div)
    return jnp.asarray(pe)


# ----------------------------------------------------------------------------------
# In-kernel math helpers (only ops with guaranteed Mosaic lowering: exp, rsqrt, ...)
# ----------------------------------------------------------------------------------
def _layernorm_f32(y, gamma, beta, eps):
    mu = jnp.mean(y, axis=-1, keepdims=True)
    var = jnp.mean(jnp.square(y - mu), axis=-1, keepdims=True)
    return (y - mu) * jax.lax.rsqrt(var + eps) * gamma + beta


def _gelu_exact_f32(x):
    # Exact (erf) GELU via Abramowitz-Stegun 7.1.26 erf approximation
    # (|abs err| < 1.5e-7 == float32-level accuracy); built only from exp/mul/add/div
    # so it lowers on every TPU generation without relying on an erf primitive.
    z = x * 0.7071067811865476
    az = jnp.abs(z)
    t = 1.0 / (1.0 + 0.3275911 * az)
    poly = t * (0.254829592 + t * (-0.284496736 + t * (1.421413741
                + t * (-1.453152027 + t * 1.061405429))))
    erf_az = 1.0 - poly * jnp.exp(-az * az)
    erf_z = jnp.where(z >= 0.0, erf_az, -erf_az)
    return 0.5 * x * (1.0 + erf_z)


def _elu_f32(y):
    # dead branch uses exp(min(y,0)) so it never produces inf for large positive y
    return jnp.where(y > 0.0, y, jnp.exp(jnp.minimum(y, 0.0)) - 1.0)


def _bf16(x):
    return x.astype(jnp.bfloat16)


# ----------------------------------------------------------------------------------
# Pallas kernels (all gridless: whole problem is a few KB and lives in VMEM)
# ----------------------------------------------------------------------------------
def _embed_kernel(xp_ref, wc_ref, bc_ref, xm_ref, wt_ref, bt_ref, pe_ref, o_ref):
    # DataEmbedding: circular-conv-as-patch-matmul + TimeFeatureEmbedding + PE
    B = xp_ref.shape[0]
    wc = wc_ref[...]          # (3C, D) bf16
    bc = bc_ref[...]          # (1, D)  f32
    wt = wt_ref[...]          # (4, D)  bf16
    bt = bt_ref[...]          # (1, D)  f32
    pe = pe_ref[...]          # (L, D)  f32  (broadcast over batch in-kernel)
    for b in range(B):
        val = jnp.dot(_bf16(xp_ref[b]), wc, preferred_element_type=jnp.float32) + bc
        tmp = jnp.dot(_bf16(xm_ref[b]), wt, preferred_element_type=jnp.float32) + bt
        o_ref[b] = val + tmp + pe   # dropout: identity (eval mode)


def _cscm_kernel(*refs, window_size, bn_scale, eps):
    # Bottleneck_Construct: down-proj -> [Conv1d(stride=w) -> BN(eval) -> ELU] pyramid
    #                       -> up-proj -> concat with input -> LayerNorm.
    # Output rows are written slab-wise (LN is row-wise, so no in-kernel concat needed).
    n_lvl = len(window_size)
    seq_ref, down_w_ref, down_b_ref = refs[0], refs[1], refs[2]
    cs_refs = refs[3:3 + 2 * n_lvl]
    up_w_ref, up_b_ref, g_ref, b_ref = refs[3 + 2 * n_lvl:7 + 2 * n_lvl]
    o_ref = refs[7 + 2 * n_lvl]

    B, L, _ = seq_ref.shape
    d_b = down_w_ref.shape[1]

    down_w = down_w_ref[...]
    down_b = down_b_ref[...]
    up_w = up_w_ref[...]
    up_b = up_b_ref[...]
    gamma = g_ref[...]
    beta = b_ref[...]

    # Static selector matrices Sel_j[t, t*w + j] = 1 (built once, hoisted out of the
    # batch loop).  y = sum_j Sel_j @ (cur @ W_j) realises the stride-w conv without
    # any in-kernel sublane<->lane reshapes.
    sels, dims = [], []
    Li = L
    for w in window_size:
        T = Li // w
        lvl = []
        for j in range(w):
            rows = jax.lax.broadcasted_iota(jnp.int32, (T, Li), 0)
            cols = jax.lax.broadcasted_iota(jnp.int32, (T, Li), 1)
            lvl.append((cols == rows * w + j).astype(jnp.float32))
        sels.append(lvl)
        dims.append((Li, T))
        Li = T

    for b in range(B):
        seq_b = seq_ref[b]                                                   # (L, D) f32
        o_ref[b, 0:L, :] = _layernorm_f32(seq_b, gamma, beta, eps)

        cur = jnp.dot(_bf16(seq_b), down_w, preferred_element_type=jnp.float32) + down_b
        offset = L
        for i, w in enumerate(window_size):
            _, T = dims[i]
            wmat = cs_refs[2 * i][...]                                       # (w*d_b, d_b) bf16
            bvec = cs_refs[2 * i + 1][...]                                   # (1, d_b)     f32
            y = bvec
            for j in range(w):
                zj = jnp.dot(_bf16(cur), wmat[j * d_b:(j + 1) * d_b, :],
                             preferred_element_type=jnp.float32)             # (Li, d_b)
                y = y + jnp.dot(sels[i][j], zj, preferred_element_type=jnp.float32)
            y = y * bn_scale                                                 # BatchNorm1d (eval, fresh stats)
            cur = _elu_f32(y)                                                # (T, d_b)
            up = jnp.dot(_bf16(cur), up_w, preferred_element_type=jnp.float32) + up_b
            o_ref[b, offset:offset + T, :] = _layernorm_f32(up, gamma, beta, eps)
            offset += T


def _attn_block_kernel(x_ref, wqkv_ref, wfc_ref, bias_ref, g_ref, b_ref, o_ref,
                       *, H, Dk, Dv, eps):
    # Fused: merged QKV proj -> per-head masked softmax attention -> output proj
    #        -> residual add -> LayerNorm (normalize_before=False).
    B, N, D = x_ref.shape
    wqkv = wqkv_ref[...]          # (D, H*(2*Dk+Dv)) bf16, Q columns pre-scaled by 1/sqrt(Dk)
    wfc = wfc_ref[...]            # (H*Dv, D)        bf16
    bias = bias_ref[...]          # (N, N) f32 additive mask bias (0 / -1e9)
    gamma = g_ref[...]
    beta = b_ref[...]

    for b in range(B):
        x_b = x_ref[b]                                                        # (N, D) f32
        qkv = jnp.dot(_bf16(x_b), wqkv, preferred_element_type=jnp.float32)   # (N, H*(2Dk+Dv))
        acc = x_b                                                             # start from residual
        for h in range(H):
            q = qkv[:, h * Dk:(h + 1) * Dk]
            k = qkv[:, H * Dk + h * Dk:H * Dk + (h + 1) * Dk]
            v = qkv[:, 2 * H * Dk + h * Dv:2 * H * Dk + (h + 1) * Dv]
            # scores = (x Wq/temp) (x Wk)^T + mask_bias
            s = jax.lax.dot_general(_bf16(q), _bf16(k),
                                    dimension_numbers=(((1,), (1,)), ((), ())),
                                    preferred_element_type=jnp.float32) + bias
            s = s - jnp.max(s, axis=-1, keepdims=True)
            e = jnp.exp(s)
            p = e * pl.reciprocal(jnp.sum(e, axis=-1, keepdims=True), approx=True)
            pv = jnp.dot(_bf16(p), _bf16(v), preferred_element_type=jnp.float32)   # (N, Dv)
            acc = acc + jnp.dot(_bf16(pv), wfc[h * Dv:(h + 1) * Dv, :],
                                preferred_element_type=jnp.float32)
        o_ref[b] = _layernorm_f32(acc, gamma, beta, eps)


def _ffn_block_kernel(x_ref, w1_ref, b1_ref, w2_ref, b2_ref, g_ref, b_ref, o_ref, *, eps):
    # Fused PositionwiseFeedForward: W1 -> exact GELU -> W2 -> residual -> LayerNorm.
    B = x_ref.shape[0]
    w1 = w1_ref[...]
    b1 = b1_ref[...]
    w2 = w2_ref[...]
    b2 = b2_ref[...]
    gamma = g_ref[...]
    beta = b_ref[...]
    for b in range(B):
        x_b = x_ref[b]                                                        # (N, D) f32
        h = jnp.dot(_bf16(x_b), w1, preferred_element_type=jnp.float32) + b1
        h = _gelu_exact_f32(h)
        y = jnp.dot(_bf16(h), w2, preferred_element_type=jnp.float32) + b2 + x_b
        o_ref[b] = _layernorm_f32(y, gamma, beta, eps)


# ----------------------------------------------------------------------------------
# Parameter initialisation (synthetic, deterministic)
# ----------------------------------------------------------------------------------
def init_encoder_params(key, cfg):
    keys = iter(jax.random.split(key, 64))

    def nrm(shape, scale=0.05):
        return (scale * jax.random.normal(next(keys), shape)).astype(jnp.float32)

    d_model, enc_in, d_b = cfg['d_model'], cfg['enc_in'], cfg['d_bottleneck']
    H, Dk, Dv, d_ff = cfg['n_head'], cfg['d_k'], cfg['d_v'], cfg['d_inner_hid']
    temp = float(Dk) ** 0.5

    p = {}
    # DataEmbedding
    p['conv_w'] = nrm((3 * enc_in, d_model)).astype(jnp.bfloat16)   # (k, c_in)-major
    p['conv_b'] = nrm((1, d_model))
    p['temp_w'] = nrm((4, d_model)).astype(jnp.bfloat16)            # TimeFeatureEmbedding, d_inp=4
    p['temp_b'] = nrm((1, d_model))
    p['pos_pe'] = positional_encoding(512, d_model)
    # Bottleneck_Construct
    p['down_w'] = nrm((d_model, d_b)).astype(jnp.bfloat16)
    p['down_b'] = nrm((1, d_b))
    p['cs'] = [{'w': nrm((w * d_b, d_b)).astype(jnp.bfloat16), 'b': nrm((1, d_b))}
               for w in cfg['window_size']]
    p['up_w'] = nrm((d_b, d_model)).astype(jnp.bfloat16)
    p['up_b'] = nrm((1, d_model))
    p['cscm_ln_g'] = jnp.ones((1, d_model), jnp.float32)
    p['cscm_ln_b'] = jnp.zeros((1, d_model), jnp.float32)
    # EncoderLayers (1/sqrt(d_k) folded into Wq; Q|K|V merged into one weight)
    p['layers'] = []
    for _ in range(cfg['n_layer']):
        wq = nrm((d_model, H * Dk)) / temp
        wk = nrm((d_model, H * Dk))
        wv = nrm((d_model, H * Dv))
        p['layers'].append({
            'wqkv': jnp.concatenate([wq, wk, wv], axis=1).astype(jnp.bfloat16),
            'wfc': nrm((H * Dv, d_model)).astype(jnp.bfloat16),
            'attn_ln_g': jnp.ones((1, d_model), jnp.float32),
            'attn_ln_b': jnp.zeros((1, d_model), jnp.float32),
            'w1': nrm((d_model, d_ff)).astype(jnp.bfloat16), 'b1': nrm((1, d_ff)),
            'w2': nrm((d_ff, d_model)).astype(jnp.bfloat16), 'b2': nrm((1, d_model)),
            'ffn_ln_g': jnp.ones((1, d_model), jnp.float32),
            'ffn_ln_b': jnp.zeros((1, d_model), jnp.float32),
        })
    return p


# ----------------------------------------------------------------------------------
# Encoder forward
# ----------------------------------------------------------------------------------
def encoder_forward(params, x_enc, x_mark, attn_bias, indexes, *, cfg, all_size):
    B, L, _ = x_enc.shape
    d_model = cfg['d_model']
    N = sum(all_size)

    # ---------------- DataEmbedding (1 kernel) ----------------
    # circular padding patches (host-side pure data movement, done once)
    xpad = jnp.concatenate([x_enc[:, -1:, :], x_enc, x_enc[:, :1, :]], axis=1)   # (B, L+2, C)
    patches = jnp.concatenate([xpad[:, k:k + L, :] for k in range(3)], axis=-1)  # (B, L, 3C)

    seq = pl.pallas_call(
        _embed_kernel,
        out_shape=jax.ShapeDtypeStruct((B, L, d_model), jnp.float32),
    )(patches, params['conv_w'], params['conv_b'],
      x_mark, params['temp_w'], params['temp_b'], params['pos_pe'][:L])

    # ---------------- Bottleneck_Construct / CSCM (1 fused kernel) ----------------
    cs_args = []
    for c in params['cs']:
        cs_args.extend([c['w'], c['b']])
    x = pl.pallas_call(
        functools.partial(_cscm_kernel,
                          window_size=tuple(cfg['window_size']),
                          bn_scale=float(1.0 / np.sqrt(1.0 + 1e-5)),
                          eps=1e-5),
        out_shape=jax.ShapeDtypeStruct((B, N, d_model), jnp.float32),
    )(seq, params['down_w'], params['down_b'], *cs_args,
      params['up_w'], params['up_b'], params['cscm_ln_g'], params['cscm_ln_b'])

    # ---------------- Encoder layers: 2 fused kernels per layer ----------------
    for lp in params['layers']:
        x = pl.pallas_call(
            functools.partial(_attn_block_kernel, H=cfg['n_head'], Dk=cfg['d_k'],
                              Dv=cfg['d_v'], eps=1e-6),
            out_shape=jax.ShapeDtypeStruct((B, N, d_model), jnp.float32),
        )(x, lp['wqkv'], lp['wfc'], attn_bias, lp['attn_ln_g'], lp['attn_ln_b'])

        x = pl.pallas_call(
            functools.partial(_ffn_block_kernel, eps=1e-6),
            out_shape=jax.ShapeDtypeStruct((B, N, d_model), jnp.float32),
        )(x, lp['w1'], lp['b1'], lp['w2'], lp['b2'], lp['ffn_ln_g'], lp['ffn_ln_b'])

    # ---------------- FC decoder gather (refer_points) ----------------
    if cfg['decoder'] == 'FC':
        idx_flat = indexes.reshape(-1)                 # (input_size * n_levels,)
        gathered = x[:, idx_flat, :]                   # (B, input_size*n_levels, d_model)
        x = gathered.reshape(B, all_size[0], -1)       # (B, input_size, n_levels*d_model)
    elif cfg['decoder'] == 'attention' and cfg['truncate']:
        x = x[:, :all_size[0]]
    return x


# ----------------------------------------------------------------------------------
if __name__ == "__main__":
    cfg = dict(
        enc_in=4, d_model=32, d_inner_hid=64, n_head=2, d_k=16, d_v=16,
        n_layer=2, window_size=[2, 2, 2], inner_size=3, input_size=15,
        d_bottleneck=16, decoder='FC', truncate=False,
    )

    key = jax.random.PRNGKey(0)
    kp, kx, km = jax.random.split(key, 3)
    params = init_encoder_params(kp, cfg)

    B = 2
    L = cfg['input_size'] + 1      # decoder=='FC': a predict token is appended upstream
    x_enc = jax.random.normal(kx, (B, L, cfg['enc_in']), jnp.float32)
    x_mark_enc = jax.random.normal(km, (B, L, 4), jnp.float32)

    mask_bool, all_size = get_mask(cfg['input_size'] + 1, cfg['window_size'], cfg['inner_size'])
    # additive attention bias: 0 where allowed, -1e9 where blocked (every row has its
    # diagonal unmasked, so softmax never sees a fully-blocked row)
    attn_bias = jnp.asarray(np.where(mask_bool, -1e9, 0.0).astype(np.float32))
    indexes = jnp.asarray(refer_points(all_size, cfg['window_size']), dtype=jnp.int32)

    fwd = jax.jit(functools.partial(encoder_forward, cfg=cfg, all_size=tuple(all_size)))
    out = jax.block_until_ready(fwd(params, x_enc, x_mark_enc, attn_bias, indexes))

    expected = (B, all_size[0], len(all_size) * cfg['d_model'])
    assert out.shape == expected, (out.shape, expected)
    assert bool(jnp.all(jnp.isfinite(out)))
    print("KERNEL_OK")
</pallas_src>

<mosaic_0001>
module attributes {stable_mosaic.version = 11 : i64} {
  func.func @_cscm_kernel(%arg0: memref<2x16x32xf32, #tpu.memory_space<vmem>>, %arg1: memref<32x16xbf16, #tpu.memory_space<vmem>>, %arg2: memref<1x16xf32, #tpu.memory_space<vmem>>, %arg3: memref<32x16xbf16, #tpu.memory_space<vmem>>, %arg4: memref<1x16xf32, #tpu.memory_space<vmem>>, %arg5: memref<32x16xbf16, #tpu.memory_space<vmem>>, %arg6: memref<1x16xf32, #tpu.memory_space<vmem>>, %arg7: memref<32x16xbf16, #tpu.memory_space<vmem>>, %arg8: memref<1x16xf32, #tpu.memory_space<vmem>>, %arg9: memref<16x32xbf16, #tpu.memory_space<vmem>>, %arg10: memref<1x32xf32, #tpu.memory_space<vmem>>, %arg11: memref<1x32xf32, #tpu.memory_space<vmem>>, %arg12: memref<1x32xf32, #tpu.memory_space<vmem>>, %arg13: memref<2x30x32xf32, #tpu.memory_space<vmem>>) attributes {dimension_semantics = [], scalar_prefetch = 0 : i64, scratch_operands = 0 : i64, tpu.core_type = #tpu.core_type<tc>} {
    %c0 = arith.constant 0 : index
    %c0_0 = arith.constant 0 : index
    %0 = vector.load %arg1[%c0, %c0_0] : memref<32x16xbf16, #tpu.memory_space<vmem>>, vector<32x16xbf16>
    %c0_1 = arith.constant 0 : index
    %c0_2 = arith.constant 0 : index
    %1 = vector.load %arg2[%c0_1, %c0_2] : memref<1x16xf32, #tpu.memory_space<vmem>>, vector<1x16xf32>
    %c0_3 = arith.constant 0 : index
    %c0_4 = arith.constant 0 : index
    %2 = vector.load %arg9[%c0_3, %c0_4] : memref<16x32xbf16, #tpu.memory_space<vmem>>, vector<16x32xbf16>
    %c0_5 = arith.constant 0 : index
    %c0_6 = arith.constant 0 : index
    %3 = vector.load %arg10[%c0_5, %c0_6] : memref<1x32xf32, #tpu.memory_space<vmem>>, vector<1x32xf32>
    %c0_7 = arith.constant 0 : index
    %c0_8 = arith.constant 0 : index
    %4 = vector.load %arg11[%c0_7, %c0_8] : memref<1x32xf32, #tpu.memory_space<vmem>>, vector<1x32xf32>
    %c0_9 = arith.constant 0 : index
    %c0_10 = arith.constant 0 : index
    %5 = vector.load %arg12[%c0_9, %c0_10] : memref<1x32xf32, #tpu.memory_space<vmem>>, vector<1x32xf32>
    %6 = tpu.iota {dimensions = array<i32: 0>} : vector<8x16xi32>
    %7 = tpu.iota {dimensions = array<i32: 1>} : vector<8x16xi32>
    %c2_i32 = arith.constant 2 : i32
    %8 = vector.broadcast %c2_i32 : i32 to vector<8x16xi32>
    %9 = arith.muli %6, %8 : vector<8x16xi32>
    %c0_i32 = arith.constant 0 : i32
    %10 = vector.broadcast %c0_i32 : i32 to vector<8x16xi32>
    %11 = arith.addi %9, %10 : vector<8x16xi32>
    %12 = arith.cmpi eq, %7, %11 : vector<8x16xi32>
    %13 = arith.extui %12 : vector<8x16xi1> to vector<8x16xi32>
    %14 = arith.sitofp %13 : vector<8x16xi32> to vector<8x16xf32>
    %15 = tpu.iota {dimensions = array<i32: 0>} : vector<8x16xi32>
    %16 = tpu.iota {dimensions = array<i32: 1>} : vector<8x16xi32>
    %c2_i32_11 = arith.constant 2 : i32
    %17 = vector.broadcast %c2_i32_11 : i32 to vector<8x16xi32>
    %18 = arith.muli %15, %17 : vector<8x16xi32>
    %c1_i32 = arith.constant 1 : i32
    %19 = vector.broadcast %c1_i32 : i32 to vector<8x16xi32>
    %20 = arith.addi %18, %19 : vector<8x16xi32>
    %21 = arith.cmpi eq, %16, %20 : vector<8x16xi32>
    %22 = arith.extui %21 : vector<8x16xi1> to vector<8x16xi32>
    %23 = arith.sitofp %22 : vector<8x16xi32> to vector<8x16xf32>
    %24 = tpu.iota {dimensions = array<i32: 0>} : vector<4x8xi32>
    %25 = tpu.iota {dimensions = array<i32: 1>} : vector<4x8xi32>
    %c2_i32_12 = arith.constant 2 : i32
    %26 = vector.broadcast %c2_i32_12 : i32 to vector<4x8xi32>
    %27 = arith.muli %24, %26 : vector<4x8xi32>
    %c0_i32_13 = arith.constant 0 : i32
    %28 = vector.broadcast %c0_i32_13 : i32 to vector<4x8xi32>
    %29 = arith.addi %27, %28 : vector<4x8xi32>
    %30 = arith.cmpi eq, %25, %29 : vector<4x8xi32>
    %31 = arith.extui %30 : vector<4x8xi1> to vector<4x8xi32>
    %32 = arith.sitofp %31 : vector<4x8xi32> to vector<4x8xf32>
    %33 = tpu.iota {dimensions = array<i32: 0>} : vector<4x8xi32>
    %34 = tpu.iota {dimensions = array<i32: 1>} : vector<4x8xi32>
    %c2_i32_14 = arith.constant 2 : i32
    %35 = vector.broadcast %c2_i32_14 : i32 to vector<4x8xi32>
    %36 = arith.muli %33, %35 : vector<4x8xi32>
    %c1_i32_15 = arith.constant 1 : i32
    %37 = vector.broadcast %c1_i32_15 : i32 to vector<4x8xi32>
    %38 = arith.addi %36, %37 : vector<4x8xi32>
    %39 = arith.cmpi eq, %34, %38 : vector<4x8xi32>
    %40 = arith.extui %39 : vector<4x8xi1> to vector<4x8xi32>
    %41 = arith.sitofp %40 : vector<4x8xi32> to vector<4x8xf32>
    %42 = tpu.iota {dimensions = array<i32: 0>} : vector<2x4xi32>
    %43 = tpu.iota {dimensions = array<i32: 1>} : vector<2x4xi32>
    %c2_i32_16 = arith.constant 2 : i32
    %44 = vector.broadcast %c2_i32_16 : i32 to vector<2x4xi32>
    %45 = arith.muli %42, %44 : vector<2x4xi32>
    %c0_i32_17 = arith.constant 0 : i32
    %46 = vector.broadcast %c0_i32_17 : i32 to vector<2x4xi32>
    %47 = arith.addi %45, %46 : vector<2x4xi32>
    %48 = arith.cmpi eq, %43, %47 : vector<2x4xi32>
    %49 = arith.extui %48 : vector<2x4xi1> to vector<2x4xi32>
    %50 = arith.sitofp %49 : vector<2x4xi32> to vector<2x4xf32>
    %51 = tpu.iota {dimensions = array<i32: 0>} : vector<2x4xi32>
    %52 = tpu.iota {dimensions = array<i32: 1>} : vector<2x4xi32>
    %c2_i32_18 = arith.constant 2 : i32
    %53 = vector.broadcast %c2_i32_18 : i32 to vector<2x4xi32>
    %54 = arith.muli %51, %53 : vector<2x4xi32>
    %c1_i32_19 = arith.constant 1 : i32
    %55 = vector.broadcast %c1_i32_19 : i32 to vector<2x4xi32>
    %56 = arith.addi %54, %55 : vector<2x4xi32>
    %57 = arith.cmpi eq, %52, %56 : vector<2x4xi32>
    %58 = arith.extui %57 : vector<2x4xi1> to vector<2x4xi32>
    %59 = arith.sitofp %58 : vector<2x4xi32> to vector<2x4xf32>
    %c0_20 = arith.constant 0 : index
    %c0_21 = arith.constant 0 : index
    %c0_22 = arith.constant 0 : index
    %60 = vector.load %arg0[%c0_20, %c0_21, %c0_22] : memref<2x16x32xf32, #tpu.memory_space<vmem>>, vector<1x16x32xf32>
    %61 = vector.shape_cast %60 : vector<1x16x32xf32> to vector<16x32xf32>
    %cst = arith.constant dense<0.000000e+00> : vector<16xf32>
    %62 = vector.multi_reduction <add>, %61, %cst [1] : vector<16x32xf32> to vector<16xf32>
    %63 = vector.shape_cast %62 : vector<16xf32> to vector<16x1xf32>
    %cst_23 = arith.constant 3.200000e+01 : f32
    %64 = vector.broadcast %cst_23 : f32 to vector<16x1xf32>
    %65 = arith.divf %63, %64 : vector<16x1xf32>
    %66 = vector.broadcast %65 : vector<16x1xf32> to vector<16x32xf32>
    %67 = arith.subf %61, %66 : vector<16x32xf32>
    %68 = arith.mulf %67, %67 : vector<16x32xf32>
    %cst_24 = arith.constant dense<0.000000e+00> : vector<16xf32>
    %69 = vector.multi_reduction <add>, %68, %cst_24 [1] : vector<16x32xf32> to vector<16xf32>
    %70 = vector.shape_cast %69 : vector<16xf32> to vector<16x1xf32>
    %cst_25 = arith.constant 3.200000e+01 : f32
    %71 = vector.broadcast %cst_25 : f32 to vector<16x1xf32>
    %72 = arith.divf %70, %71 : vector<16x1xf32>
    %73 = vector.broadcast %65 : vector<16x1xf32> to vector<16x32xf32>
    %74 = arith.subf %61, %73 : vector<16x32xf32>
    %cst_26 = arith.constant 9.99999974E-6 : f32
    %75 = vector.broadcast %cst_26 : f32 to vector<16x1xf32>
    %76 = arith.addf %72, %75 : vector<16x1xf32>
    %77 = math.rsqrt %76 : vector<16x1xf32>
    %78 = vector.broadcast %77 : vector<16x1xf32> to vector<16x32xf32>
    %79 = arith.mulf %74, %78 : vector<16x32xf32>
    %80 = vector.broadcast %4 : vector<1x32xf32> to vector<16x32xf32>
    %81 = arith.mulf %79, %80 : vector<16x32xf32>
    %82 = vector.broadcast %5 : vector<1x32xf32> to vector<16x32xf32>
    %83 = arith.addf %81, %82 : vector<16x32xf32>
    %c0_27 = arith.constant 0 : index
    %c0_28 = arith.constant 0 : index
    %c0_29 = arith.constant 0 : index
    %84 = vector.load %arg13[%c0_27, %c0_28, %c0_29] : memref<2x30x32xf32, #tpu.memory_space<vmem>>, vector<1x16x32xf32>
    %85 = vector.shape_cast %84 : vector<1x16x32xf32> to vector<16x32xf32>
    %86 = vector.shape_cast %83 : vector<16x32xf32> to vector<1x16x32xf32>
    tpu.vector_store %arg13[%c0_27, %c0_28, %c0_29], %86 {strides = array<i32>} : memref<2x30x32xf32, #tpu.memory_space<vmem>>, vector<1x16x32xf32>,
    %87 = arith.truncf %61 : vector<16x32xf32> to vector<16x32xbf16>
    %cst_30 = arith.constant dense<0.000000e+00> : vector<16x16xf32>
    %88 = tpu.matmul %87, %0, %cst_30 {dimension_numbers = #tpu.dot_dimension_numbers<[1], [0], [0], [1], [0, 0, 1, 1], [], []>} : vector<16x32xbf16>, vector<32x16xbf16>, vector<16x16xf32> -> vector<16x16xf32>
    %89 = vector.broadcast %1 : vector<1x16xf32> to vector<16x16xf32>
    %90 = arith.addf %88, %89 : vector<16x16xf32>
    %c0_31 = arith.constant 0 : index
    %c0_32 = arith.constant 0 : index
    %91 = vector.load %arg3[%c0_31, %c0_32] : memref<32x16xbf16, #tpu.memory_space<vmem>>, vector<32x16xbf16>
    %c0_33 = arith.constant 0 : index
    %c0_34 = arith.constant 0 : index
    %92 = vector.load %arg4[%c0_33, %c0_34] : memref<1x16xf32, #tpu.memory_space<vmem>>, vector<1x16xf32>
    %93 = arith.truncf %90 : vector<16x16xf32> to vector<16x16xbf16>
    %94 = vector.extract_strided_slice %91 {offsets = [0, 0], sizes = [16, 16], strides = [1, 1]} : vector<32x16xbf16> to vector<16x16xbf16>
    %cst_35 = arith.constant dense<0.000000e+00> : vector<16x16xf32>
    %95 = tpu.matmul %93, %94, %cst_35 {dimension_numbers = #tpu.dot_dimension_numbers<[1], [0], [0], [1], [0, 0, 1, 1], [], []>} : vector<16x16xbf16>, vector<16x16xbf16>, vector<16x16xf32> -> vector<16x16xf32>
    %cst_36 = arith.constant dense<0.000000e+00> : vector<8x16xf32>
    %96 = tpu.matmul %14, %95, %cst_36 {dimension_numbers = #tpu.dot_dimension_numbers<[1], [0], [0], [1], [0, 0, 1, 1], [], []>} : vector<8x16xf32>, vector<16x16xf32>, vector<8x16xf32> -> vector<8x16xf32>
    %97 = vector.broadcast %92 : vector<1x16xf32> to vector<8x16xf32>
    %98 = arith.addf %97, %96 : vector<8x16xf32>
    %99 = arith.truncf %90 : vector<16x16xf32> to vector<16x16xbf16>
    %100 = vector.extract_strided_slice %91 {offsets = [16, 0], sizes = [16, 16], strides = [1, 1]} : vector<32x16xbf16> to vector<16x16xbf16>
    %cst_37 = arith.constant dense<0.000000e+00> : vector<16x16xf32>
    %101 = tpu.matmul %99, %100, %cst_37 {dimension_numbers = #tpu.dot_dimension_numbers<[1], [0], [0], [1], [0, 0, 1, 1], [], []>} : vector<16x16xbf16>, vector<16x16xbf16>, vector<16x16xf32> -> vector<16x16xf32>
    %cst_38 = arith.constant dense<0.000000e+00> : vector<8x16xf32>
    %102 = tpu.matmul %23, %101, %cst_38 {dimension_numbers = #tpu.dot_dimension_numbers<[1], [0], [0], [1], [0, 0, 1, 1], [], []>} : vector<8x16xf32>, vector<16x16xf32>, vector<8x16xf32> -> vector<8x16xf32>
    %103 = arith.addf %98, %102 : vector<8x16xf32>
    %cst_39 = arith.constant 0.999994993 : f32
    %104 = vector.broadcast %cst_39 : f32 to vector<8x16xf32>
    %105 = arith.mulf %103, %104 : vector<8x16xf32>
    %cst_40 = arith.constant 0.000000e+00 : f32
    %106 = vector.broadcast %cst_40 : f32 to vector<8x16xf32>
    %107 = arith.cmpf ogt, %105, %106 : vector<8x16xf32>
    %cst_41 = arith.constant 0.000000e+00 : f32
    %108 = vector.broadcast %cst_41 : f32 to vector<8x16xf32>
    %109 = arith.minimumf %105, %108 : vector<8x16xf32>
    %110 = math.exp %109 : vector<8x16xf32>
    %cst_42 = arith.constant 1.000000e+00 : f32
    %111 = vector.broadcast %cst_42 : f32 to vector<8x16xf32>
    %112 = arith.subf %110, %111 : vector<8x16xf32>
    %113 = arith.select %107, %105, %112 : vector<8x16xi1>, vector<8x16xf32>
    %114 = arith.truncf %113 : vector<8x16xf32> to vector<8x16xbf16>
    %cst_43 = arith.constant dense<0.000000e+00> : vector<8x32xf32>
    %115 = tpu.matmul %114, %2, %cst_43 {dimension_numbers = #tpu.dot_dimension_numbers<[1], [0], [0], [1], [0, 0, 1, 1], [], []>} : vector<8x16xbf16>, vector<16x32xbf16>, vector<8x32xf32> -> vector<8x32xf32>
    %116 = vector.broadcast %3 : vector<1x32xf32> to vector<8x32xf32>
    %117 = arith.addf %115, %116 : vector<8x32xf32>
    %cst_44 = arith.constant dense<0.000000e+00> : vector<8xf32>
    %118 = vector.multi_reduction <add>, %117, %cst_44 [1] : vector<8x32xf32> to vector<8xf32>
    %119 = vector.shape_cast %118 : vector<8xf32> to vector<8x1xf32>
    %cst_45 = arith.constant 3.200000e+01 : f32
    %120 = vector.broadcast %cst_45 : f32 to vector<8x1xf32>
    %121 = arith.divf %119, %120 : vector<8x1xf32>
    %122 = vector.broadcast %121 : vector<8x1xf32> to vector<8x32xf32>
    %123 = arith.subf %117, %122 : vector<8x32xf32>
    %124 = arith.mulf %123, %123 : vector<8x32xf32>
    %cst_46 = arith.constant dense<0.000000e+00> : vector<8xf32>
    %125 = vector.multi_reduction <add>, %124, %cst_46 [1] : vector<8x32xf32> to vector<8xf32>
    %126 = vector.shape_cast %125 : vector<8xf32> to vector<8x1xf32>
    %cst_47 = arith.constant 3.200000e+01 : f32
    %127 = vector.broadcast %cst_47 : f32 to vector<8x1xf32>
    %128 = arith.divf %126, %127 : vector<8x1xf32>
    %129 = vector.broadcast %121 : vector<8x1xf32> to vector<8x32xf32>
    %130 = arith.subf %117, %129 : vector<8x32xf32>
    %cst_48 = arith.constant 9.99999974E-6 : f32
    %131 = vector.broadcast %cst_48 : f32 to vector<8x1xf32>
    %132 = arith.addf %128, %131 : vector<8x1xf32>
    %133 = math.rsqrt %132 : vector<8x1xf32>
    %134 = vector.broadcast %133 : vector<8x1xf32> to vector<8x32xf32>
    %135 = arith.mulf %130, %134 : vector<8x32xf32>
    %136 = vector.broadcast %4 : vector<1x32xf32> to vector<8x32xf32>
    %137 = arith.mulf %135, %136 : vector<8x32xf32>
    %138 = vector.broadcast %5 : vector<1x32xf32> to vector<8x32xf32>
    %139 = arith.addf %137, %138 : vector<8x32xf32>
    %c0_49 = arith.constant 0 : index
    %c16 = arith.constant 16 : index
    %c0_50 = arith.constant 0 : index
    %140 = vector.load %arg13[%c0_49, %c16, %c0_50] : memref<2x30x32xf32, #tpu.memory_space<vmem>>, vector<1x8x32xf32>
    %141 = vector.shape_cast %140 : vector<1x8x32xf32> to vector<8x32xf32>
    %142 = vector.shape_cast %139 : vector<8x32xf32> to vector<1x8x32xf32>
    tpu.vector_store %arg13[%c0_49, %c16, %c0_50], %142 {strides = array<i32>} : memref<2x30x32xf32, #tpu.memory_space<vmem>>, vector<1x8x32xf32>,
    %c0_51 = arith.constant 0 : index
    %c0_52 = arith.constant 0 : index
    %143 = vector.load %arg5[%c0_51, %c0_52] : memref<32x16xbf16, #tpu.memory_space<vmem>>, vector<32x16xbf16>
    %c0_53 = arith.constant 0 : index
    %c0_54 = arith.constant 0 : index
    %144 = vector.load %arg6[%c0_53, %c0_54] : memref<1x16xf32, #tpu.memory_space<vmem>>, vector<1x16xf32>
    %145 = arith.truncf %113 : vector<8x16xf32> to vector<8x16xbf16>
    %146 = vector.extract_strided_slice %143 {offsets = [0, 0], sizes = [16, 16], strides = [1, 1]} : vector<32x16xbf16> to vector<16x16xbf16>
    %cst_55 = arith.constant dense<0.000000e+00> : vector<8x16xf32>
    %147 = tpu.matmul %145, %146, %cst_55 {dimension_numbers = #tpu.dot_dimension_numbers<[1], [0], [0], [1], [0, 0, 1, 1], [], []>} : vector<8x16xbf16>, vector<16x16xbf16>, vector<8x16xf32> -> vector<8x16xf32>
    %cst_56 = arith.constant dense<0.000000e+00> : vector<4x16xf32>
    %148 = tpu.matmul %32, %147, %cst_56 {dimension_numbers = #tpu.dot_dimension_numbers<[1], [0], [0], [1], [0, 0, 1, 1], [], []>} : vector<4x8xf32>, vector<8x16xf32>, vector<4x16xf32> -> vector<4x16xf32>
    %149 = vector.broadcast %144 : vector<1x16xf32> to vector<4x16xf32>
    %150 = arith.addf %149, %148 : vector<4x16xf32>
    %151 = arith.truncf %113 : vector<8x16xf32> to vector<8x16xbf16>
    %152 = vector.extract_strided_slice %143 {offsets = [16, 0], sizes = [16, 16], strides = [1, 1]} : vector<32x16xbf16> to vector<16x16xbf16>
    %cst_57 = arith.constant dense<0.000000e+00> : vector<8x16xf32>
    %153 = tpu.matmul %151, %152, %cst_57 {dimension_numbers = #tpu.dot_dimension_numbers<[1], [0], [0], [1], [0, 0, 1, 1], [], []>} : vector<8x16xbf16>, vector<16x16xbf16>, vector<8x16xf32> -> vector<8x16xf32>
    %cst_58 = arith.constant dense<0.000000e+00> : vector<4x16xf32>
    %154 = tpu.matmul %41, %153, %cst_58 {dimension_numbers = #tpu.dot_dimension_numbers<[1], [0], [0], [1], [0, 0, 1, 1], [], []>} : vector<4x8xf32>, vector<8x16xf32>, vector<4x16xf32> -> vector<4x16xf32>
    %155 = arith.addf %150, %154 : vector<4x16xf32>
    %cst_59 = arith.constant 0.999994993 : f32
    %156 = vector.broadcast %cst_59 : f32 to vector<4x16xf32>
    %157 = arith.mulf %155, %156 : vector<4x16xf32>
    %cst_60 = arith.constant 0.000000e+00 : f32
    %158 = vector.broadcast %cst_60 : f32 to vector<4x16xf32>
    %159 = arith.cmpf ogt, %157, %158 : vector<4x16xf32>
    %cst_61 = arith.constant 0.000000e+00 : f32
    %160 = vector.broadcast %cst_61 : f32 to vector<4x16xf32>
    %161 = arith.minimumf %157, %160 : vector<4x16xf32>
    %162 = math.exp %161 : vector<4x16xf32>
    %cst_62 = arith.constant 1.000000e+00 : f32
    %163 = vector.broadcast %cst_62 : f32 to vector<4x16xf32>
    %164 = arith.subf %162, %163 : vector<4x16xf32>
    %165 = arith.select %159, %157, %164 : vector<4x16xi1>, vector<4x16xf32>
    %166 = arith.truncf %165 : vector<4x16xf32> to vector<4x16xbf16>
    %cst_63 = arith.constant dense<0.000000e+00> : vector<4x32xf32>
    %167 = tpu.matmul %166, %2, %cst_63 {dimension_numbers = #tpu.dot_dimension_numbers<[1], [0], [0], [1], [0, 0, 1, 1], [], []>} : vector<4x16xbf16>, vector<16x32xbf16>, vector<4x32xf32> -> vector<4x32xf32>
    %168 = vector.broadcast %3 : vector<1x32xf32> to vector<4x32xf32>
    %169 = arith.addf %167, %168 : vector<4x32xf32>
    %cst_64 = arith.constant dense<0.000000e+00> : vector<4xf32>
    %170 = vector.multi_reduction <add>, %169, %cst_64 [1] : vector<4x32xf32> to vector<4xf32>
    %171 = vector.shape_cast %170 : vector<4xf32> to vector<4x1xf32>
    %cst_65 = arith.constant 3.200000e+01 : f32
    %172 = vector.broadcast %cst_65 : f32 to vector<4x1xf32>
    %173 = arith.divf %171, %172 : vector<4x1xf32>
    %174 = vector.broadcast %173 : vector<4x1xf32> to vector<4x32xf32>
    %175 = arith.subf %169, %174 : vector<4x32xf32>
    %176 = arith.mulf %175, %175 : vector<4x32xf32>
    %cst_66 = arith.constant dense<0.000000e+00> : vector<4xf32>
    %177 = vector.multi_reduction <add>, %176, %cst_66 [1] : vector<4x32xf32> to vector<4xf32>
    %178 = vector.shape_cast %177 : vector<4xf32> to vector<4x1xf32>
    %cst_67 = arith.constant 3.200000e+01 : f32
    %179 = vector.broadcast %cst_67 : f32 to vector<4x1xf32>
    %180 = arith.divf %178, %179 : vector<4x1xf32>
    %181 = vector.broadcast %173 : vector<4x1xf32> to vector<4x32xf32>
    %182 = arith.subf %169, %181 : vector<4x32xf32>
    %cst_68 = arith.constant 9.99999974E-6 : f32
    %183 = vector.broadcast %cst_68 : f32 to vector<4x1xf32>
    %184 = arith.addf %180, %183 : vector<4x1xf32>
    %185 = math.rsqrt %184 : vector<4x1xf32>
    %186 = vector.broadcast %185 : vector<4x1xf32> to vector<4x32xf32>
    %187 = arith.mulf %182, %186 : vector<4x32xf32>
    %188 = vector.broadcast %4 : vector<1x32xf32> to vector<4x32xf32>
    %189 = arith.mulf %187, %188 : vector<4x32xf32>
    %190 = vector.broadcast %5 : vector<1x32xf32> to vector<4x32xf32>
    %191 = arith.addf %189, %190 : vector<4x32xf32>
    %c0_69 = arith.constant 0 : index
    %c24 = arith.constant 24 : index
    %c0_70 = arith.constant 0 : index
    %192 = vector.load %arg13[%c0_69, %c24, %c0_70] : memref<2x30x32xf32, #tpu.memory_space<vmem>>, vector<1x4x32xf32>
    %193 = vector.shape_cast %192 : vector<1x4x32xf32> to vector<4x32xf32>
    %194 = vector.shape_cast %191 : vector<4x32xf32> to vector<1x4x32xf32>
    tpu.vector_store %arg13[%c0_69, %c24, %c0_70], %194 {strides = array<i32>} : memref<2x30x32xf32, #tpu.memory_space<vmem>>, vector<1x4x32xf32>,
    %c0_71 = arith.constant 0 : index
    %c0_72 = arith.constant 0 : index
    %195 = vector.load %arg7[%c0_71, %c0_72] : memref<32x16xbf16, #tpu.memory_space<vmem>>, vector<32x16xbf16>
    %c0_73 = arith.constant 0 : index
    %c0_74 = arith.constant 0 : index
    %196 = vector.load %arg8[%c0_73, %c0_74] : memref<1x16xf32, #tpu.memory_space<vmem>>, vector<1x16xf32>
    %197 = arith.truncf %165 : vector<4x16xf32> to vector<4x16xbf16>
    %198 = vector.extract_strided_slice %195 {offsets = [0, 0], sizes = [16, 16], strides = [1, 1]} : vector<32x16xbf16> to vector<16x16xbf16>
    %cst_75 = arith.constant dense<0.000000e+00> : vector<4x16xf32>
    %199 = tpu.matmul %197, %198, %cst_75 {dimension_numbers = #tpu.dot_dimension_numbers<[1], [0], [0], [1], [0, 0, 1, 1], [], []>} : vector<4x16xbf16>, vector<16x16xbf16>, vector<4x16xf32> -> vector<4x16xf32>
    %cst_76 = arith.constant dense<0.000000e+00> : vector<2x16xf32>
    %200 = tpu.matmul %50, %199, %cst_76 {dimension_numbers = #tpu.dot_dimension_numbers<[1], [0], [0], [1], [0, 0, 1, 1], [], []>} : vector<2x4xf32>, vector<4x16xf32>, vector<2x16xf32> -> vector<2x16xf32>
    %201 = vector.broadcast %196 : vector<1x16xf32> to vector<2x16xf32>
    %202 = arith.addf %201, %200 : vector<2x16xf32>
    %203 = arith.truncf %165 : vector<4x16xf32> to vector<4x16xbf16>
    %204 = vector.extract_strided_slice %195 {offsets = [16, 0], sizes = [16, 16], strides = [1, 1]} : vector<32x16xbf16> to vector<16x16xbf16>
    %cst_77 = arith.constant dense<0.000000e+00> : vector<4x16xf32>
    %205 = tpu.matmul %203, %204, %cst_77 {dimension_numbers = #tpu.dot_dimension_numbers<[1], [0], [0], [1], [0, 0, 1, 1], [], []>} : vector<4x16xbf16>, vector<16x16xbf16>, vector<4x16xf32> -> vector<4x16xf32>
    %cst_78 = arith.constant dense<0.000000e+00> : vector<2x16xf32>
    %206 = tpu.matmul %59, %205, %cst_78 {dimension_numbers = #tpu.dot_dimension_numbers<[1], [0], [0], [1], [0, 0, 1, 1], [], []>} : vector<2x4xf32>, vector<4x16xf32>, vector<2x16xf32> -> vector<2x16xf32>
    %207 = arith.addf %202, %206 : vector<2x16xf32>
    %cst_79 = arith.constant 0.999994993 : f32
    %208 = vector.broadcast %cst_79 : f32 to vector<2x16xf32>
    %209 = arith.mulf %207, %208 : vector<2x16xf32>
    %cst_80 = arith.constant 0.000000e+00 : f32
    %210 = vector.broadcast %cst_80 : f32 to vector<2x16xf32>
    %211 = arith.cmpf ogt, %209, %210 : vector<2x16xf32>
    %cst_81 = arith.constant 0.000000e+00 : f32
    %212 = vector.broadcast %cst_81 : f32 to vector<2x16xf32>
    %213 = arith.minimumf %209, %212 : vector<2x16xf32>
    %214 = math.exp %213 : vector<2x16xf32>
    %cst_82 = arith.constant 1.000000e+00 : f32
    %215 = vector.broadcast %cst_82 : f32 to vector<2x16xf32>
    %216 = arith.subf %214, %215 : vector<2x16xf32>
    %217 = arith.select %211, %209, %216 : vector<2x16xi1>, vector<2x16xf32>
    %218 = arith.truncf %217 : vector<2x16xf32> to vector<2x16xbf16>
    %cst_83 = arith.constant dense<0.000000e+00> : vector<2x32xf32>
    %219 = tpu.matmul %218, %2, %cst_83 {dimension_numbers = #tpu.dot_dimension_numbers<[1], [0], [0], [1], [0, 0, 1, 1], [], []>} : vector<2x16xbf16>, vector<16x32xbf16>, vector<2x32xf32> -> vector<2x32xf32>
    %220 = vector.broadcast %3 : vector<1x32xf32> to vector<2x32xf32>
    %221 = arith.addf %219, %220 : vector<2x32xf32>
    %cst_84 = arith.constant dense<0.000000e+00> : vector<2xf32>
    %222 = vector.multi_reduction <add>, %221, %cst_84 [1] : vector<2x32xf32> to vector<2xf32>
    %223 = vector.shape_cast %222 : vector<2xf32> to vector<2x1xf32>
    %cst_85 = arith.constant 3.200000e+01 : f32
    %224 = vector.broadcast %cst_85 : f32 to vector<2x1xf32>
    %225 = arith.divf %223, %224 : vector<2x1xf32>
    %226 = vector.broadcast %225 : vector<2x1xf32> to vector<2x32xf32>
    %227 = arith.subf %221, %226 : vector<2x32xf32>
    %228 = arith.mulf %227, %227 : vector<2x32xf32>
    %cst_86 = arith.constant dense<0.000000e+00> : vector<2xf32>
    %229 = vector.multi_reduction <add>, %228, %cst_86 [1] : vector<2x32xf32> to vector<2xf32>
    %230 = vector.shape_cast %229 : vector<2xf32> to vector<2x1xf32>
    %cst_87 = arith.constant 3.200000e+01 : f32
    %231 = vector.broadcast %cst_87 : f32 to vector<2x1xf32>
    %232 = arith.divf %230, %231 : vector<2x1xf32>
    %233 = vector.broadcast %225 : vector<2x1xf32> to vector<2x32xf32>
    %234 = arith.subf %221, %233 : vector<2x32xf32>
    %cst_88 = arith.constant 9.99999974E-6 : f32
    %235 = vector.broadcast %cst_88 : f32 to vector<2x1xf32>
    %236 = arith.addf %232, %235 : vector<2x1xf32>
    %237 = math.rsqrt %236 : vector<2x1xf32>
    %238 = vector.broadcast %237 : vector<2x1xf32> to vector<2x32xf32>
    %239 = arith.mulf %234, %238 : vector<2x32xf32>
    %240 = vector.broadcast %4 : vector<1x32xf32> to vector<2x32xf32>
    %241 = arith.mulf %239, %240 : vector<2x32xf32>
    %242 = vector.broadcast %5 : vector<1x32xf32> to vector<2x32xf32>
    %243 = arith.addf %241, %242 : vector<2x32xf32>
    %c0_89 = arith.constant 0 : index
    %c28 = arith.constant 28 : index
    %c0_90 = arith.constant 0 : index
    %244 = vector.load %arg13[%c0_89, %c28, %c0_90] : memref<2x30x32xf32, #tpu.memory_space<vmem>>, vector<1x2x32xf32>
    %245 = vector.shape_cast %244 : vector<1x2x32xf32> to vector<2x32xf32>
    %246 = vector.shape_cast %243 : vector<2x32xf32> to vector<1x2x32xf32>
    tpu.vector_store %arg13[%c0_89, %c28, %c0_90], %246 {strides = array<i32>} : memref<2x30x32xf32, #tpu.memory_space<vmem>>, vector<1x2x32xf32>,
    %c1 = arith.constant 1 : index
    %c0_91 = arith.constant 0 : index
    %c0_92 = arith.constant 0 : index
    %247 = vector.load %arg0[%c1, %c0_91, %c0_92] : memref<2x16x32xf32, #tpu.memory_space<vmem>>, vector<1x16x32xf32>
    %248 = vector.shape_cast %247 : vector<1x16x32xf32> to vector<16x32xf32>
    %cst_93 = arith.constant dense<0.000000e+00> : vector<16xf32>
    %249 = vector.multi_reduction <add>, %248, %cst_93 [1] : vector<16x32xf32> to vector<16xf32>
    %250 = vector.shape_cast %249 : vector<16xf32> to vector<16x1xf32>
    %cst_94 = arith.constant 3.200000e+01 : f32
    %251 = vector.broadcast %cst_94 : f32 to vector<16x1xf32>
    %252 = arith.divf %250, %251 : vector<16x1xf32>
    %253 = vector.broadcast %252 : vector<16x1xf32> to vector<16x32xf32>
    %254 = arith.subf %248, %253 : vector<16x32xf32>
    %255 = arith.mulf %254, %254 : vector<16x32xf32>
    %cst_95 = arith.constant dense<0.000000e+00> : vector<16xf32>
    %256 = vector.multi_reduction <add>, %255, %cst_95 [1] : vector<16x32xf32> to vector<16xf32>
    %257 = vector.shape_cast %256 : vector<16xf32> to vector<16x1xf32>
    %cst_96 = arith.constant 3.200000e+01 : f32
    %258 = vector.broadcast %cst_96 : f32 to vector<16x1xf32>
    %259 = arith.divf %257, %258 : vector<16x1xf32>
    %260 = vector.broadcast %252 : vector<16x1xf32> to vector<16x32xf32>
    %261 = arith.subf %248, %260 : vector<16x32xf32>
    %cst_97 = arith.constant 9.99999974E-6 : f32
    %262 = vector.broadcast %cst_97 : f32 to vector<16x1xf32>
    %263 = arith.addf %259, %262 : vector<16x1xf32>
    %264 = math.rsqrt %263 : vector<16x1xf32>
    %265 = vector.broadcast %264 : vector<16x1xf32> to vector<16x32xf32>
    %266 = arith.mulf %261, %265 : vector<16x32xf32>
    %267 = vector.broadcast %4 : vector<1x32xf32> to vector<16x32xf32>
    %268 = arith.mulf %266, %267 : vector<16x32xf32>
    %269 = vector.broadcast %5 : vector<1x32xf32> to vector<16x32xf32>
    %270 = arith.addf %268, %269 : vector<16x32xf32>
    %c1_98 = arith.constant 1 : index
    %c0_99 = arith.constant 0 : index
    %c0_100 = arith.constant 0 : index
    %271 = vector.load %arg13[%c1_98, %c0_99, %c0_100] : memref<2x30x32xf32, #tpu.memory_space<vmem>>, vector<1x16x32xf32>
    %272 = vector.shape_cast %271 : vector<1x16x32xf32> to vector<16x32xf32>
    %273 = vector.shape_cast %270 : vector<16x32xf32> to vector<1x16x32xf32>
    tpu.vector_store %arg13[%c1_98, %c0_99, %c0_100], %273 {strides = array<i32>} : memref<2x30x32xf32, #tpu.memory_space<vmem>>, vector<1x16x32xf32>,
    %274 = arith.truncf %248 : vector<16x32xf32> to vector<16x32xbf16>
    %cst_101 = arith.constant dense<0.000000e+00> : vector<16x16xf32>
    %275 = tpu.matmul %274, %0, %cst_101 {dimension_numbers = #tpu.dot_dimension_numbers<[1], [0], [0], [1], [0, 0, 1, 1], [], []>} : vector<16x32xbf16>, vector<32x16xbf16>, vector<16x16xf32> -> vector<16x16xf32>
    %276 = vector.broadcast %1 : vector<1x16xf32> to vector<16x16xf32>
    %277 = arith.addf %275, %276 : vector<16x16xf32>
    %c0_102 = arith.constant 0 : index
    %c0_103 = arith.constant 0 : index
    %278 = vector.load %arg3[%c0_102, %c0_103] : memref<32x16xbf16, #tpu.memory_space<vmem>>, vector<32x16xbf16>
    %c0_104 = arith.constant 0 : index
    %c0_105 = arith.constant 0 : index
    %279 = vector.load %arg4[%c0_104, %c0_105] : memref<1x16xf32, #tpu.memory_space<vmem>>, vector<1x16xf32>
    %280 = arith.truncf %277 : vector<16x16xf32> to vector<16x16xbf16>
    %281 = vector.extract_strided_slice %278 {offsets = [0, 0], sizes = [16, 16], strides = [1, 1]} : vector<32x16xbf16> to vector<16x16xbf16>
    %cst_106 = arith.constant dense<0.000000e+00> : vector<16x16xf32>
    %282 = tpu.matmul %280, %281, %cst_106 {dimension_numbers = #tpu.dot_dimension_numbers<[1], [0], [0], [1], [0, 0, 1, 1], [], []>} : vector<16x16xbf16>, vector<16x16xbf16>, vector<16x16xf32> -> vector<16x16xf32>
    %cst_107 = arith.constant dense<0.000000e+00> : vector<8x16xf32>
    %283 = tpu.matmul %14, %282, %cst_107 {dimension_numbers = #tpu.dot_dimension_numbers<[1], [0], [0], [1], [0, 0, 1, 1], [], []>} : vector<8x16xf32>, vector<16x16xf32>, vector<8x16xf32> -> vector<8x16xf32>
    %284 = vector.broadcast %279 : vector<1x16xf32> to vector<8x16xf32>
    %285 = arith.addf %284, %283 : vector<8x16xf32>
    %286 = arith.truncf %277 : vector<16x16xf32> to vector<16x16xbf16>
    %287 = vector.extract_strided_slice %278 {offsets = [16, 0], sizes = [16, 16], strides = [1, 1]} : vector<32x16xbf16> to vector<16x16xbf16>
    %cst_108 = arith.constant dense<0.000000e+00> : vector<16x16xf32>
    %288 = tpu.matmul %286, %287, %cst_108 {dimension_numbers = #tpu.dot_dimension_numbers<[1], [0], [0], [1], [0, 0, 1, 1], [], []>} : vector<16x16xbf16>, vector<16x16xbf16>, vector<16x16xf32> -> vector<16x16xf32>
    %cst_109 = arith.constant dense<0.000000e+00> : vector<8x16xf32>
    %289 = tpu.matmul %23, %288, %cst_109 {dimension_numbers = #tpu.dot_dimension_numbers<[1], [0], [0], [1], [0, 0, 1, 1], [], []>} : vector<8x16xf32>, vector<16x16xf32>, vector<8x16xf32> -> vector<8x16xf32>
    %290 = arith.addf %285, %289 : vector<8x16xf32>
    %cst_110 = arith.constant 0.999994993 : f32
    %291 = vector.broadcast %cst_110 : f32 to vector<8x16xf32>
    %292 = arith.mulf %290, %291 : vector<8x16xf32>
    %cst_111 = arith.constant 0.000000e+00 : f32
    %293 = vector.broadcast %cst_111 : f32 to vector<8x16xf32>
    %294 = arith.cmpf ogt, %292, %293 : vector<8x16xf32>
    %cst_112 = arith.constant 0.000000e+00 : f32
    %295 = vector.broadcast %cst_112 : f32 to vector<8x16xf32>
    %296 = arith.minimumf %292, %295 : vector<8x16xf32>
    %297 = math.exp %296 : vector<8x16xf32>
    %cst_113 = arith.constant 1.000000e+00 : f32
    %298 = vector.broadcast %cst_113 : f32 to vector<8x16xf32>
    %299 = arith.subf %297, %298 : vector<8x16xf32>
    %300 = arith.select %294, %292, %299 : vector<8x16xi1>, vector<8x16xf32>
    %301 = arith.truncf %300 : vector<8x16xf32> to vector<8x16xbf16>
    %cst_114 = arith.constant dense<0.000000e+00> : vector<8x32xf32>
    %302 = tpu.matmul %301, %2, %cst_114 {dimension_numbers = #tpu.dot_dimension_numbers<[1], [0], [0], [1], [0, 0, 1, 1], [], []>} : vector<8x16xbf16>, vector<16x32xbf16>, vector<8x32xf32> -> vector<8x32xf32>
    %303 = vector.broadcast %3 : vector<1x32xf32> to vector<8x32xf32>
    %304 = arith.addf %302, %303 : vector<8x32xf32>
    %cst_115 = arith.constant dense<0.000000e+00> : vector<8xf32>
    %305 = vector.multi_reduction <add>, %304, %cst_115 [1] : vector<8x32xf32> to vector<8xf32>
    %306 = vector.shape_cast %305 : vector<8xf32> to vector<8x1xf32>
    %cst_116 = arith.constant 3.200000e+01 : f32
    %307 = vector.broadcast %cst_116 : f32 to vector<8x1xf32>
    %308 = arith.divf %306, %307 : vector<8x1xf32>
    %309 = vector.broadcast %308 : vector<8x1xf32> to vector<8x32xf32>
    %310 = arith.subf %304, %309 : vector<8x32xf32>
    %311 = arith.mulf %310, %310 : vector<8x32xf32>
    %cst_117 = arith.constant dense<0.000000e+00> : vector<8xf32>
    %312 = vector.multi_reduction <add>, %311, %cst_117 [1] : vector<8x32xf32> to vector<8xf32>
    %313 = vector.shape_cast %312 : vector<8xf32> to vector<8x1xf32>
    %cst_118 = arith.constant 3.200000e+01 : f32
    %314 = vector.broadcast %cst_118 : f32 to vector<8x1xf32>
    %315 = arith.divf %313, %314 : vector<8x1xf32>
    %316 = vector.broadcast %308 : vector<8x1xf32> to vector<8x32xf32>
    %317 = arith.subf %304, %316 : vector<8x32xf32>
    %cst_119 = arith.constant 9.99999974E-6 : f32
    %318 = vector.broadcast %cst_119 : f32 to vector<8x1xf32>
    %319 = arith.addf %315, %318 : vector<8x1xf32>
    %320 = math.rsqrt %319 : vector<8x1xf32>
    %321 = vector.broadcast %320 : vector<8x1xf32> to vector<8x32xf32>
    %322 = arith.mulf %317, %321 : vector<8x32xf32>
    %323 = vector.broadcast %4 : vector<1x32xf32> to vector<8x32xf32>
    %324 = arith.mulf %322, %323 : vector<8x32xf32>
    %325 = vector.broadcast %5 : vector<1x32xf32> to vector<8x32xf32>
    %326 = arith.addf %324, %325 : vector<8x32xf32>
    %c1_120 = arith.constant 1 : index
    %c16_121 = arith.constant 16 : index
    %c0_122 = arith.constant 0 : index
    %327 = vector.load %arg13[%c1_120, %c16_121, %c0_122] : memref<2x30x32xf32, #tpu.memory_space<vmem>>, vector<1x8x32xf32>
    %328 = vector.shape_cast %327 : vector<1x8x32xf32> to vector<8x32xf32>
    %329 = vector.shape_cast %326 : vector<8x32xf32> to vector<1x8x32xf32>
    tpu.vector_store %arg13[%c1_120, %c16_121, %c0_122], %329 {strides = array<i32>} : memref<2x30x32xf32, #tpu.memory_space<vmem>>, vector<1x8x32xf32>,
    %c0_123 = arith.constant 0 : index
    %c0_124 = arith.constant 0 : index
    %330 = vector.load %arg5[%c0_123, %c0_124] : memref<32x16xbf16, #tpu.memory_space<vmem>>, vector<32x16xbf16>
    %c0_125 = arith.constant 0 : index
    %c0_126 = arith.constant 0 : index
    %331 = vector.load %arg6[%c0_125, %c0_126] : memref<1x16xf32, #tpu.memory_space<vmem>>, vector<1x16xf32>
    %332 = arith.truncf %300 : vector<8x16xf32> to vector<8x16xbf16>
    %333 = vector.extract_strided_slice %330 {offsets = [0, 0], sizes = [16, 16], strides = [1, 1]} : vector<32x16xbf16> to vector<16x16xbf16>
    %cst_127 = arith.constant dense<0.000000e+00> : vector<8x16xf32>
    %334 = tpu.matmul %332, %333, %cst_127 {dimension_numbers = #tpu.dot_dimension_numbers<[1], [0], [0], [1], [0, 0, 1, 1], [], []>} : vector<8x16xbf16>, vector<16x16xbf16>, vector<8x16xf32> -> vector<8x16xf32>
    %cst_128 = arith.constant dense<0.000000e+00> : vector<4x16xf32>
    %335 = tpu.matmul %32, %334, %cst_128 {dimension_numbers = #tpu.dot_dimension_numbers<[1], [0], [0], [1], [0, 0, 1, 1], [], []>} : vector<4x8xf32>, vector<8x16xf32>, vector<4x16xf32> -> vector<4x16xf32>
    %336 = vector.broadcast %331 : vector<1x16xf32> to vector<4x16xf32>
    %337 = arith.addf %336, %335 : vector<4x16xf32>
    %338 = arith.truncf %300 : vector<8x16xf32> to vector<8x16xbf16>
    %339 = vector.extract_strided_slice %330 {offsets = [16, 0], sizes = [16, 16], strides = [1, 1]} : vector<32x16xbf16> to vector<16x16xbf16>
    %cst_129 = arith.constant dense<0.000000e+00> : vector<8x16xf32>
    %340 = tpu.matmul %338, %339, %cst_129 {dimension_numbers = #tpu.dot_dimension_numbers<[1], [0], [0], [1], [0, 0, 1, 1], [], []>} : vector<8x16xbf16>, vector<16x16xbf16>, vector<8x16xf32> -> vector<8x16xf32>
    %cst_130 = arith.constant dense<0.000000e+00> : vector<4x16xf32>
    %341 = tpu.matmul %41, %340, %cst_130 {dimension_numbers = #tpu.dot_dimension_numbers<[1], [0], [0], [1], [0, 0, 1, 1], [], []>} : vector<4x8xf32>, vector<8x16xf32>, vector<4x16xf32> -> vector<4x16xf32>
    %342 = arith.addf %337, %341 : vector<4x16xf32>
    %cst_131 = arith.constant 0.999994993 : f32
    %343 = vector.broadcast %cst_131 : f32 to vector<4x16xf32>
    %344 = arith.mulf %342, %343 : vector<4x16xf32>
    %cst_132 = arith.constant 0.000000e+00 : f32
    %345 = vector.broadcast %cst_132 : f32 to vector<4x16xf32>
    %346 = arith.cmpf ogt, %344, %345 : vector<4x16xf32>
    %cst_133 = arith.constant 0.000000e+00 : f32
    %347 = vector.broadcast %cst_133 : f32 to vector<4x16xf32>
    %348 = arith.minimumf %344, %347 : vector<4x16xf32>
    %349 = math.exp %348 : vector<4x16xf32>
    %cst_134 = arith.constant 1.000000e+00 : f32
    %350 = vector.broadcast %cst_134 : f32 to vector<4x16xf32>
    %351 = arith.subf %349, %350 : vector<4x16xf32>
    %352 = arith.select %346, %344, %351 : vector<4x16xi1>, vector<4x16xf32>
    %353 = arith.truncf %352 : vector<4x16xf32> to vector<4x16xbf16>
    %cst_135 = arith.constant dense<0.000000e+00> : vector<4x32xf32>
    %354 = tpu.matmul %353, %2, %cst_135 {dimension_numbers = #tpu.dot_dimension_numbers<[1], [0], [0], [1], [0, 0, 1, 1], [], []>} : vector<4x16xbf16>, vector<16x32xbf16>, vector<4x32xf32> -> vector<4x32xf32>
    %355 = vector.broadcast %3 : vector<1x32xf32> to vector<4x32xf32>
    %356 = arith.addf %354, %355 : vector<4x32xf32>
    %cst_136 = arith.constant dense<0.000000e+00> : vector<4xf32>
    %357 = vector.multi_reduction <add>, %356, %cst_136 [1] : vector<4x32xf32> to vector<4xf32>
    %358 = vector.shape_cast %357 : vector<4xf32> to vector<4x1xf32>
    %cst_137 = arith.constant 3.200000e+01 : f32
    %359 = vector.broadcast %cst_137 : f32 to vector<4x1xf32>
    %360 = arith.divf %358, %359 : vector<4x1xf32>
    %361 = vector.broadcast %360 : vector<4x1xf32> to vector<4x32xf32>
    %362 = arith.subf %356, %361 : vector<4x32xf32>
    %363 = arith.mulf %362, %362 : vector<4x32xf32>
    %cst_138 = arith.constant dense<0.000000e+00> : vector<4xf32>
    %364 = vector.multi_reduction <add>, %363, %cst_138 [1] : vector<4x32xf32> to vector<4xf32>
    %365 = vector.shape_cast %364 : vector<4xf32> to vector<4x1xf32>
    %cst_139 = arith.constant 3.200000e+01 : f32
    %366 = vector.broadcast %cst_139 : f32 to vector<4x1xf32>
    %367 = arith.divf %365, %366 : vector<4x1xf32>
    %368 = vector.broadcast %360 : vector<4x1xf32> to vector<4x32xf32>
    %369 = arith.subf %356, %368 : vector<4x32xf32>
    %cst_140 = arith.constant 9.99999974E-6 : f32
    %370 = vector.broadcast %cst_140 : f32 to vector<4x1xf32>
    %371 = arith.addf %367, %370 : vector<4x1xf32>
    %372 = math.rsqrt %371 : vector<4x1xf32>
    %373 = vector.broadcast %372 : vector<4x1xf32> to vector<4x32xf32>
    %374 = arith.mulf %369, %373 : vector<4x32xf32>
    %375 = vector.broadcast %4 : vector<1x32xf32> to vector<4x32xf32>
    %376 = arith.mulf %374, %375 : vector<4x32xf32>
    %377 = vector.broadcast %5 : vector<1x32xf32> to vector<4x32xf32>
    %378 = arith.addf %376, %377 : vector<4x32xf32>
    %c1_141 = arith.constant 1 : index
    %c24_142 = arith.constant 24 : index
    %c0_143 = arith.constant 0 : index
    %379 = vector.load %arg13[%c1_141, %c24_142, %c0_143] : memref<2x30x32xf32, #tpu.memory_space<vmem>>, vector<1x4x32xf32>
    %380 = vector.shape_cast %379 : vector<1x4x32xf32> to vector<4x32xf32>
    %381 = vector.shape_cast %378 : vector<4x32xf32> to vector<1x4x32xf32>
    tpu.vector_store %arg13[%c1_141, %c24_142, %c0_143], %381 {strides = array<i32>} : memref<2x30x32xf32, #tpu.memory_space<vmem>>, vector<1x4x32xf32>,
    %c0_144 = arith.constant 0 : index
    %c0_145 = arith.constant 0 : index
    %382 = vector.load %arg7[%c0_144, %c0_145] : memref<32x16xbf16, #tpu.memory_space<vmem>>, vector<32x16xbf16>
    %c0_146 = arith.constant 0 : index
    %c0_147 = arith.constant 0 : index
    %383 = vector.load %arg8[%c0_146, %c0_147] : memref<1x16xf32, #tpu.memory_space<vmem>>, vector<1x16xf32>
    %384 = arith.truncf %352 : vector<4x16xf32> to vector<4x16xbf16>
    %385 = vector.extract_strided_slice %382 {offsets = [0, 0], sizes = [16, 16], strides = [1, 1]} : vector<32x16xbf16> to vector<16x16xbf16>
    %cst_148 = arith.constant dense<0.000000e+00> : vector<4x16xf32>
    %386 = tpu.matmul %384, %385, %cst_148 {dimension_numbers = #tpu.dot_dimension_numbers<[1], [0], [0], [1], [0, 0, 1, 1], [], []>} : vector<4x16xbf16>, vector<16x16xbf16>, vector<4x16xf32> -> vector<4x16xf32>
    %cst_149 = arith.constant dense<0.000000e+00> : vector<2x16xf32>
    %387 = tpu.matmul %50, %386, %cst_149 {dimension_numbers = #tpu.dot_dimension_numbers<[1], [0], [0], [1], [0, 0, 1, 1], [], []>} : vector<2x4xf32>, vector<4x16xf32>, vector<2x16xf32> -> vector<2x16xf32>
    %388 = vector.broadcast %383 : vector<1x16xf32> to vector<2x16xf32>
    %389 = arith.addf %388, %387 : vector<2x16xf32>
    %390 = arith.truncf %352 : vector<4x16xf32> to vector<4x16xbf16>
    %391 = vector.extract_strided_slice %382 {offsets = [16, 0], sizes = [16, 16], strides = [1, 1]} : vector<32x16xbf16> to vector<16x16xbf16>
    %cst_150 = arith.constant dense<0.000000e+00> : vector<4x16xf32>
    %392 = tpu.matmul %390, %391, %cst_150 {dimension_numbers = #tpu.dot_dimension_numbers<[1], [0], [0], [1], [0, 0, 1, 1], [], []>} : vector<4x16xbf16>, vector<16x16xbf16>, vector<4x16xf32> -> vector<4x16xf32>
    %cst_151 = arith.constant dense<0.000000e+00> : vector<2x16xf32>
    %393 = tpu.matmul %59, %392, %cst_151 {dimension_numbers = #tpu.dot_dimension_numbers<[1], [0], [0], [1], [0, 0, 1, 1], [], []>} : vector<2x4xf32>, vector<4x16xf32>, vector<2x16xf32> -> vector<2x16xf32>
    %394 = arith.addf %389, %393 : vector<2x16xf32>
    %cst_152 = arith.constant 0.999994993 : f32
    %395 = vector.broadcast %cst_152 : f32 to vector<2x16xf32>
    %396 = arith.mulf %394, %395 : vector<2x16xf32>
    %cst_153 = arith.constant 0.000000e+00 : f32
    %397 = vector.broadcast %cst_153 : f32 to vector<2x16xf32>
    %398 = arith.cmpf ogt, %396, %397 : vector<2x16xf32>
    %cst_154 = arith.constant 0.000000e+00 : f32
    %399 = vector.broadcast %cst_154 : f32 to vector<2x16xf32>
    %400 = arith.minimumf %396, %399 : vector<2x16xf32>
    %401 = math.exp %400 : vector<2x16xf32>
    %cst_155 = arith.constant 1.000000e+00 : f32
    %402 = vector.broadcast %cst_155 : f32 to vector<2x16xf32>
    %403 = arith.subf %401, %402 : vector<2x16xf32>
    %404 = arith.select %398, %396, %403 : vector<2x16xi1>, vector<2x16xf32>
    %405 = arith.truncf %404 : vector<2x16xf32> to vector<2x16xbf16>
    %cst_156 = arith.constant dense<0.000000e+00> : vector<2x32xf32>
    %406 = tpu.matmul %405, %2, %cst_156 {dimension_numbers = #tpu.dot_dimension_numbers<[1], [0], [0], [1], [0, 0, 1, 1], [], []>} : vector<2x16xbf16>, vector<16x32xbf16>, vector<2x32xf32> -> vector<2x32xf32>
    %407 = vector.broadcast %3 : vector<1x32xf32> to vector<2x32xf32>
    %408 = arith.addf %406, %407 : vector<2x32xf32>
    %cst_157 = arith.constant dense<0.000000e+00> : vector<2xf32>
    %409 = vector.multi_reduction <add>, %408, %cst_157 [1] : vector<2x32xf32> to vector<2xf32>
    %410 = vector.shape_cast %409 : vector<2xf32> to vector<2x1xf32>
    %cst_158 = arith.constant 3.200000e+01 : f32
    %411 = vector.broadcast %cst_158 : f32 to vector<2x1xf32>
    %412 = arith.divf %410, %411 : vector<2x1xf32>
    %413 = vector.broadcast %412 : vector<2x1xf32> to vector<2x32xf32>
    %414 = arith.subf %408, %413 : vector<2x32xf32>
    %415 = arith.mulf %414, %414 : vector<2x32xf32>
    %cst_159 = arith.constant dense<0.000000e+00> : vector<2xf32>
    %416 = vector.multi_reduction <add>, %415, %cst_159 [1] : vector<2x32xf32> to vector<2xf32>
    %417 = vector.shape_cast %416 : vector<2xf32> to vector<2x1xf32>
    %cst_160 = arith.constant 3.200000e+01 : f32
    %418 = vector.broadcast %cst_160 : f32 to vector<2x1xf32>
    %419 = arith.divf %417, %418 : vector<2x1xf32>
    %420 = vector.broadcast %412 : vector<2x1xf32> to vector<2x32xf32>
    %421 = arith.subf %408, %420 : vector<2x32xf32>
    %cst_161 = arith.constant 9.99999974E-6 : f32
    %422 = vector.broadcast %cst_161 : f32 to vector<2x1xf32>
    %423 = arith.addf %419, %422 : vector<2x1xf32>
    %424 = math.rsqrt %423 : vector<2x1xf32>
    %425 = vector.broadcast %424 : vector<2x1xf32> to vector<2x32xf32>
    %426 = arith.mulf %421, %425 : vector<2x32xf32>
    %427 = vector.broadcast %4 : vector<1x32xf32> to vector<2x32xf32>
    %428 = arith.mulf %426, %427 : vector<2x32xf32>
    %429 = vector.broadcast %5 : vector<1x32xf32> to vector<2x32xf32>
    %430 = arith.addf %428, %429 : vector<2x32xf32>
    %c1_162 = arith.constant 1 : index
    %c28_163 = arith.constant 28 : index
    %c0_164 = arith.constant 0 : index
    %431 = vector.load %arg13[%c1_162, %c28_163, %c0_164] : memref<2x30x32xf32, #tpu.memory_space<vmem>>, vector<1x2x32xf32>
    %432 = vector.shape_cast %431 : vector<1x2x32xf32> to vector<2x32xf32>
    %433 = vector.shape_cast %430 : vector<2x32xf32> to vector<1x2x32xf32>
    tpu.vector_store %arg13[%c1_162, %c28_163, %c0_164], %433 {strides = array<i32>} : memref<2x30x32xf32, #tpu.memory_space<vmem>>, vector<1x2x32xf32>,
    return
  }
}

module attributes {stable_mosaic.version = 11 : i64} {
  func.func @_embed_kernel(%arg0: memref<2x16x12xf32, #tpu.memory_space<vmem>>, %arg1: memref<12x32xbf16, #tpu.memory_space<vmem>>, %arg2: memref<1x32xf32, #tpu.memory_space<vmem>>, %arg3: memref<2x16x4xf32, #tpu.memory_space<vmem>>, %arg4: memref<4x32xbf16, #tpu.memory_space<vmem>>, %arg5: memref<1x32xf32, #tpu.memory_space<vmem>>, %arg6: memref<16x32xf32, #tpu.memory_space<vmem>>, %arg7: memref<2x16x32xf32, #tpu.memory_space<vmem>>) attributes {dimension_semantics = [], scalar_prefetch = 0 : i64, scratch_operands = 0 : i64, tpu.core_type = #tpu.core_type<tc>} {
    %c0 = arith.constant 0 : index
    %c0_0 = arith.constant 0 : index
    %0 = vector.load %arg1[%c0, %c0_0] : memref<12x32xbf16, #tpu.memory_space<vmem>>, vector<12x32xbf16>
    %c0_1 = arith.constant 0 : index
    %c0_2 = arith.constant 0 : index
    %1 = vector.load %arg2[%c0_1, %c0_2] : memref<1x32xf32, #tpu.memory_space<vmem>>, vector<1x32xf32>
    %c0_3 = arith.constant 0 : index
    %c0_4 = arith.constant 0 : index
    %2 = vector.load %arg4[%c0_3, %c0_4] : memref<4x32xbf16, #tpu.memory_space<vmem>>, vector<4x32xbf16>
    %c0_5 = arith.constant 0 : index
    %c0_6 = arith.constant 0 : index
    %3 = vector.load %arg5[%c0_5, %c0_6] : memref<1x32xf32, #tpu.memory_space<vmem>>, vector<1x32xf32>
    %c0_7 = arith.constant 0 : index
    %c0_8 = arith.constant 0 : index
    %4 = vector.load %arg6[%c0_7, %c0_8] : memref<16x32xf32, #tpu.memory_space<vmem>>, vector<16x32xf32>
    %c0_9 = arith.constant 0 : index
    %c0_10 = arith.constant 0 : index
    %c0_11 = arith.constant 0 : index
    %5 = vector.load %arg0[%c0_9, %c0_10, %c0_11] : memref<2x16x12xf32, #tpu.memory_space<vmem>>, vector<1x16x12xf32>
    %6 = vector.shape_cast %5 : vector<1x16x12xf32> to vector<16x12xf32>
    %7 = arith.truncf %6 : vector<16x12xf32> to vector<16x12xbf16>
    %cst = arith.constant dense<0.000000e+00> : vector<16x32xf32>
    %8 = tpu.matmul %7, %0, %cst {dimension_numbers = #tpu.dot_dimension_numbers<[1], [0], [0], [1], [0, 0, 1, 1], [], []>} : vector<16x12xbf16>, vector<12x32xbf16>, vector<16x32xf32> -> vector<16x32xf32>
    %9 = vector.broadcast %1 : vector<1x32xf32> to vector<16x32xf32>
    %10 = arith.addf %8, %9 : vector<16x32xf32>
    %c0_12 = arith.constant 0 : index
    %c0_13 = arith.constant 0 : index
    %c0_14 = arith.constant 0 : index
    %11 = vector.load %arg3[%c0_12, %c0_13, %c0_14] : memref<2x16x4xf32, #tpu.memory_space<vmem>>, vector<1x16x4xf32>
    %12 = vector.shape_cast %11 : vector<1x16x4xf32> to vector<16x4xf32>
    %13 = arith.truncf %12 : vector<16x4xf32> to vector<16x4xbf16>
    %cst_15 = arith.constant dense<0.000000e+00> : vector<16x32xf32>
    %14 = tpu.matmul %13, %2, %cst_15 {dimension_numbers = #tpu.dot_dimension_numbers<[1], [0], [0], [1], [0, 0, 1, 1], [], []>} : vector<16x4xbf16>, vector<4x32xbf16>, vector<16x32xf32> -> vector<16x32xf32>
    %15 = vector.broadcast %3 : vector<1x32xf32> to vector<16x32xf32>
    %16 = arith.addf %14, %15 : vector<16x32xf32>
    %17 = arith.addf %10, %16 : vector<16x32xf32>
    %18 = arith.addf %17, %4 : vector<16x32xf32>
    %c0_16 = arith.constant 0 : index
    %c0_17 = arith.constant 0 : index
    %c0_18 = arith.constant 0 : index
    %19 = vector.load %arg7[%c0_16, %c0_17, %c0_18] : memref<2x16x32xf32, #tpu.memory_space<vmem>>, vector<1x16x32xf32>
    %20 = vector.shape_cast %19 : vector<1x16x32xf32> to vector<16x32xf32>
    %21 = vector.shape_cast %18 : vector<16x32xf32> to vector<1x16x32xf32>
    tpu.vector_store %arg7[%c0_16, %c0_17, %c0_18], %21 {strides = array<i32>} : memref<2x16x32xf32, #tpu.memory_space<vmem>>, vector<1x16x32xf32>,
    %c1 = arith.constant 1 : index
    %c0_19 = arith.constant 0 : index
    %c0_20 = arith.constant 0 : index
    %22 = vector.load %arg0[%c1, %c0_19, %c0_20] : memref<2x16x12xf32, #tpu.memory_space<vmem>>, vector<1x16x12xf32>
    %23 = vector.shape_cast %22 : vector<1x16x12xf32> to vector<16x12xf32>
    %24 = arith.truncf %23 : vector<16x12xf32> to vector<16x12xbf16>
    %cst_21 = arith.constant dense<0.000000e+00> : vector<16x32xf32>
    %25 = tpu.matmul %24, %0, %cst_21 {dimension_numbers = #tpu.dot_dimension_numbers<[1], [0], [0], [1], [0, 0, 1, 1], [], []>} : vector<16x12xbf16>, vector<12x32xbf16>, vector<16x32xf32> -> vector<16x32xf32>
    %26 = vector.broadcast %1 : vector<1x32xf32> to vector<16x32xf32>
    %27 = arith.addf %25, %26 : vector<16x32xf32>
    %c1_22 = arith.constant 1 : index
    %c0_23 = arith.constant 0 : index
    %c0_24 = arith.constant 0 : index
    %28 = vector.load %arg3[%c1_22, %c0_23, %c0_24] : memref<2x16x4xf32, #tpu.memory_space<vmem>>, vector<1x16x4xf32>
    %29 = vector.shape_cast %28 : vector<1x16x4xf32> to vector<16x4xf32>
    %30 = arith.truncf %29 : vector<16x4xf32> to vector<16x4xbf16>
    %cst_25 = arith.constant dense<0.000000e+00> : vector<16x32xf32>
    %31 = tpu.matmul %30, %2, %cst_25 {dimension_numbers = #tpu.dot_dimension_numbers<[1], [0], [0], [1], [0, 0, 1, 1], [], []>} : vector<16x4xbf16>, vector<4x32xbf16>, vector<16x32xf32> -> vector<16x32xf32>
    %32 = vector.broadcast %3 : vector<1x32xf32> to vector<16x32xf32>
    %33 = arith.addf %31, %32 : vector<16x32xf32>
    %34 = arith.addf %27, %33 : vector<16x32xf32>
    %35 = arith.addf %34, %4 : vector<16x32xf32>
    %c1_26 = arith.constant 1 : index
    %c0_27 = arith.constant 0 : index
    %c0_28 = arith.constant 0 : index
    %36 = vector.load %arg7[%c1_26, %c0_27, %c0_28] : memref<2x16x32xf32, #tpu.memory_space<vmem>>, vector<1x16x32xf32>
    %37 = vector.shape_cast %36 : vector<1x16x32xf32> to vector<16x32xf32>
    %38 = vector.shape_cast %35 : vector<16x32xf32> to vector<1x16x32xf32>
    tpu.vector_store %arg7[%c1_26, %c0_27, %c0_28], %38 {strides = array<i32>} : memref<2x16x32xf32, #tpu.memory_space<vmem>>, vector<1x16x32xf32>,
    return
  }
}

module attributes {stable_mosaic.version = 11 : i64} {
  func.func @_attn_block_kernel(%arg0: memref<2x30x32xf32, #tpu.memory_space<vmem>>, %arg1: memref<32x96xbf16, #tpu.memory_space<vmem>>, %arg2: memref<32x32xbf16, #tpu.memory_space<vmem>>, %arg3: memref<30x30xf32, #tpu.memory_space<vmem>>, %arg4: memref<1x32xf32, #tpu.memory_space<vmem>>, %arg5: memref<1x32xf32, #tpu.memory_space<vmem>>, %arg6: memref<2x30x32xf32, #tpu.memory_space<vmem>>) attributes {dimension_semantics = [], scalar_prefetch = 0 : i64, scratch_operands = 0 : i64, tpu.core_type = #tpu.core_type<tc>} {
    %c0 = arith.constant 0 : index
    %c0_0 = arith.constant 0 : index
    %0 = vector.load %arg1[%c0, %c0_0] : memref<32x96xbf16, #tpu.memory_space<vmem>>, vector<32x96xbf16>
    %c0_1 = arith.constant 0 : index
    %c0_2 = arith.constant 0 : index
    %1 = vector.load %arg2[%c0_1, %c0_2] : memref<32x32xbf16, #tpu.memory_space<vmem>>, vector<32x32xbf16>
    %c0_3 = arith.constant 0 : index
    %c0_4 = arith.constant 0 : index
    %2 = vector.load %arg3[%c0_3, %c0_4] : memref<30x30xf32, #tpu.memory_space<vmem>>, vector<30x30xf32>
    %c0_5 = arith.constant 0 : index
    %c0_6 = arith.constant 0 : index
    %3 = vector.load %arg4[%c0_5, %c0_6] : memref<1x32xf32, #tpu.memory_space<vmem>>, vector<1x32xf32>
    %c0_7 = arith.constant 0 : index
    %c0_8 = arith.constant 0 : index
    %4 = vector.load %arg5[%c0_7, %c0_8] : memref<1x32xf32, #tpu.memory_space<vmem>>, vector<1x32xf32>
    %c0_9 = arith.constant 0 : index
    %c0_10 = arith.constant 0 : index
    %c0_11 = arith.constant 0 : index
    %5 = vector.load %arg0[%c0_9, %c0_10, %c0_11] : memref<2x30x32xf32, #tpu.memory_space<vmem>>, vector<1x30x32xf32>
    %6 = vector.shape_cast %5 : vector<1x30x32xf32> to vector<30x32xf32>
    %7 = arith.truncf %6 : vector<30x32xf32> to vector<30x32xbf16>
    %cst = arith.constant dense<0.000000e+00> : vector<30x96xf32>
    %8 = tpu.matmul %7, %0, %cst {dimension_numbers = #tpu.dot_dimension_numbers<[1], [0], [0], [1], [0, 0, 1, 1], [], []>} : vector<30x32xbf16>, vector<32x96xbf16>, vector<30x96xf32> -> vector<30x96xf32>
    %9 = vector.extract_strided_slice %8 {offsets = [0, 0], sizes = [30, 16], strides = [1, 1]} : vector<30x96xf32> to vector<30x16xf32>
    %10 = vector.extract_strided_slice %8 {offsets = [0, 32], sizes = [30, 16], strides = [1, 1]} : vector<30x96xf32> to vector<30x16xf32>
    %11 = vector.extract_strided_slice %8 {offsets = [0, 64], sizes = [30, 16], strides = [1, 1]} : vector<30x96xf32> to vector<30x16xf32>
    %12 = arith.truncf %9 : vector<30x16xf32> to vector<30x16xbf16>
    %13 = arith.truncf %10 : vector<30x16xf32> to vector<30x16xbf16>
    %cst_12 = arith.constant dense<0.000000e+00> : vector<30x30xf32>
    %14 = tpu.matmul %12, %13, %cst_12 {dimension_numbers = #tpu.dot_dimension_numbers<[1], [1], [0], [0], [0, 0, 1, 0], [], []>} : vector<30x16xbf16>, vector<30x16xbf16>, vector<30x30xf32> -> vector<30x30xf32>
    %15 = arith.addf %14, %2 : vector<30x30xf32>
    %cst_13 = arith.constant dense<0xFF800000> : vector<30xf32>
    %16 = vector.multi_reduction <maximumf>, %15, %cst_13 [1] : vector<30x30xf32> to vector<30xf32>
    %17 = vector.shape_cast %16 : vector<30xf32> to vector<30x1xf32>
    %18 = vector.broadcast %17 : vector<30x1xf32> to vector<30x30xf32>
    %19 = arith.subf %15, %18 : vector<30x30xf32>
    %20 = math.exp %19 : vector<30x30xf32>
    %cst_14 = arith.constant dense<0.000000e+00> : vector<30xf32>
    %21 = vector.multi_reduction <add>, %20, %cst_14 [1] : vector<30x30xf32> to vector<30xf32>
    %22 = vector.shape_cast %21 : vector<30xf32> to vector<30x1xf32>
    %23 = tpu.reciprocal %22 {approx = true} : vector<30x1xf32> -> vector<30x1xf32>
    %24 = vector.broadcast %23 : vector<30x1xf32> to vector<30x30xf32>
    %25 = arith.mulf %20, %24 : vector<30x30xf32>
    %26 = arith.truncf %25 : vector<30x30xf32> to vector<30x30xbf16>
    %27 = arith.truncf %11 : vector<30x16xf32> to vector<30x16xbf16>
    %cst_15 = arith.constant dense<0.000000e+00> : vector<30x16xf32>
    %28 = tpu.matmul %26, %27, %cst_15 {dimension_numbers = #tpu.dot_dimension_numbers<[1], [0], [0], [1], [0, 0, 1, 1], [], []>} : vector<30x30xbf16>, vector<30x16xbf16>, vector<30x16xf32> -> vector<30x16xf32>
    %29 = arith.truncf %28 : vector<30x16xf32> to vector<30x16xbf16>
    %30 = vector.extract_strided_slice %1 {offsets = [0, 0], sizes = [16, 32], strides = [1, 1]} : vector<32x32xbf16> to vector<16x32xbf16>
    %cst_16 = arith.constant dense<0.000000e+00> : vector<30x32xf32>
    %31 = tpu.matmul %29, %30, %cst_16 {dimension_numbers = #tpu.dot_dimension_numbers<[1], [0], [0], [1], [0, 0, 1, 1], [], []>} : vector<30x16xbf16>, vector<16x32xbf16>, vector<30x32xf32> -> vector<30x32xf32>
    %32 = arith.addf %6, %31 : vector<30x32xf32>
    %33 = vector.extract_strided_slice %8 {offsets = [0, 16], sizes = [30, 16], strides = [1, 1]} : vector<30x96xf32> to vector<30x16xf32>
    %34 = vector.extract_strided_slice %8 {offsets = [0, 48], sizes = [30, 16], strides = [1, 1]} : vector<30x96xf32> to vector<30x16xf32>
    %35 = vector.extract_strided_slice %8 {offsets = [0, 80], sizes = [30, 16], strides = [1, 1]} : vector<30x96xf32> to vector<30x16xf32>
    %36 = arith.truncf %33 : vector<30x16xf32> to vector<30x16xbf16>
    %37 = arith.truncf %34 : vector<30x16xf32> to vector<30x16xbf16>
    %cst_17 = arith.constant dense<0.000000e+00> : vector<30x30xf32>
    %38 = tpu.matmul %36, %37, %cst_17 {dimension_numbers = #tpu.dot_dimension_numbers<[1], [1], [0], [0], [0, 0, 1, 0], [], []>} : vector<30x16xbf16>, vector<30x16xbf16>, vector<30x30xf32> -> vector<30x30xf32>
    %39 = arith.addf %38, %2 : vector<30x30xf32>
    %cst_18 = arith.constant dense<0xFF800000> : vector<30xf32>
    %40 = vector.multi_reduction <maximumf>, %39, %cst_18 [1] : vector<30x30xf32> to vector<30xf32>
    %41 = vector.shape_cast %40 : vector<30xf32> to vector<30x1xf32>
    %42 = vector.broadcast %41 : vector<30x1xf32> to vector<30x30xf32>
    %43 = arith.subf %39, %42 : vector<30x30xf32>
    %44 = math.exp %43 : vector<30x30xf32>
    %cst_19 = arith.constant dense<0.000000e+00> : vector<30xf32>
    %45 = vector.multi_reduction <add>, %44, %cst_19 [1] : vector<30x30xf32> to vector<30xf32>
    %46 = vector.shape_cast %45 : vector<30xf32> to vector<30x1xf32>
    %47 = tpu.reciprocal %46 {approx = true} : vector<30x1xf32> -> vector<30x1xf32>
    %48 = vector.broadcast %47 : vector<30x1xf32> to vector<30x30xf32>
    %49 = arith.mulf %44, %48 : vector<30x30xf32>
    %50 = arith.truncf %49 : vector<30x30xf32> to vector<30x30xbf16>
    %51 = arith.truncf %35 : vector<30x16xf32> to vector<30x16xbf16>
    %cst_20 = arith.constant dense<0.000000e+00> : vector<30x16xf32>
    %52 = tpu.matmul %50, %51, %cst_20 {dimension_numbers = #tpu.dot_dimension_numbers<[1], [0], [0], [1], [0, 0, 1, 1], [], []>} : vector<30x30xbf16>, vector<30x16xbf16>, vector<30x16xf32> -> vector<30x16xf32>
    %53 = arith.truncf %52 : vector<30x16xf32> to vector<30x16xbf16>
    %54 = vector.extract_strided_slice %1 {offsets = [16, 0], sizes = [16, 32], strides = [1, 1]} : vector<32x32xbf16> to vector<16x32xbf16>
    %cst_21 = arith.constant dense<0.000000e+00> : vector<30x32xf32>
    %55 = tpu.matmul %53, %54, %cst_21 {dimension_numbers = #tpu.dot_dimension_numbers<[1], [0], [0], [1], [0, 0, 1, 1], [], []>} : vector<30x16xbf16>, vector<16x32xbf16>, vector<30x32xf32> -> vector<30x32xf32>
    %56 = arith.addf %32, %55 : vector<30x32xf32>
    %cst_22 = arith.constant dense<0.000000e+00> : vector<30xf32>
    %57 = vector.multi_reduction <add>, %56, %cst_22 [1] : vector<30x32xf32> to vector<30xf32>
    %58 = vector.shape_cast %57 : vector<30xf32> to vector<30x1xf32>
    %cst_23 = arith.constant 3.200000e+01 : f32
    %59 = vector.broadcast %cst_23 : f32 to vector<30x1xf32>
    %60 = arith.divf %58, %59 : vector<30x1xf32>
    %61 = vector.broadcast %60 : vector<30x1xf32> to vector<30x32xf32>
    %62 = arith.subf %56, %61 : vector<30x32xf32>
    %63 = arith.mulf %62, %62 : vector<30x32xf32>
    %cst_24 = arith.constant dense<0.000000e+00> : vector<30xf32>
    %64 = vector.multi_reduction <add>, %63, %cst_24 [1] : vector<30x32xf32> to vector<30xf32>
    %65 = vector.shape_cast %64 : vector<30xf32> to vector<30x1xf32>
    %cst_25 = arith.constant 3.200000e+01 : f32
    %66 = vector.broadcast %cst_25 : f32 to vector<30x1xf32>
    %67 = arith.divf %65, %66 : vector<30x1xf32>
    %68 = vector.broadcast %60 : vector<30x1xf32> to vector<30x32xf32>
    %69 = arith.subf %56, %68 : vector<30x32xf32>
    %cst_26 = arith.constant 9.99999997E-7 : f32
    %70 = vector.broadcast %cst_26 : f32 to vector<30x1xf32>
    %71 = arith.addf %67, %70 : vector<30x1xf32>
    %72 = math.rsqrt %71 : vector<30x1xf32>
    %73 = vector.broadcast %72 : vector<30x1xf32> to vector<30x32xf32>
    %74 = arith.mulf %69, %73 : vector<30x32xf32>
    %75 = vector.broadcast %3 : vector<1x32xf32> to vector<30x32xf32>
    %76 = arith.mulf %74, %75 : vector<30x32xf32>
    %77 = vector.broadcast %4 : vector<1x32xf32> to vector<30x32xf32>
    %78 = arith.addf %76, %77 : vector<30x32xf32>
    %c0_27 = arith.constant 0 : index
    %c0_28 = arith.constant 0 : index
    %c0_29 = arith.constant 0 : index
    %79 = vector.load %arg6[%c0_27, %c0_28, %c0_29] : memref<2x30x32xf32, #tpu.memory_space<vmem>>, vector<1x30x32xf32>
    %80 = vector.shape_cast %79 : vector<1x30x32xf32> to vector<30x32xf32>
    %81 = vector.shape_cast %78 : vector<30x32xf32> to vector<1x30x32xf32>
    tpu.vector_store %arg6[%c0_27, %c0_28, %c0_29], %81 {strides = array<i32>} : memref<2x30x32xf32, #tpu.memory_space<vmem>>, vector<1x30x32xf32>,
    %c1 = arith.constant 1 : index
    %c0_30 = arith.constant 0 : index
    %c0_31 = arith.constant 0 : index
    %82 = vector.load %arg0[%c1, %c0_30, %c0_31] : memref<2x30x32xf32, #tpu.memory_space<vmem>>, vector<1x30x32xf32>
    %83 = vector.shape_cast %82 : vector<1x30x32xf32> to vector<30x32xf32>
    %84 = arith.truncf %83 : vector<30x32xf32> to vector<30x32xbf16>
    %cst_32 = arith.constant dense<0.000000e+00> : vector<30x96xf32>
    %85 = tpu.matmul %84, %0, %cst_32 {dimension_numbers = #tpu.dot_dimension_numbers<[1], [0], [0], [1], [0, 0, 1, 1], [], []>} : vector<30x32xbf16>, vector<32x96xbf16>, vector<30x96xf32> -> vector<30x96xf32>
    %86 = vector.extract_strided_slice %85 {offsets = [0, 0], sizes = [30, 16], strides = [1, 1]} : vector<30x96xf32> to vector<30x16xf32>
    %87 = vector.extract_strided_slice %85 {offsets = [0, 32], sizes = [30, 16], strides = [1, 1]} : vector<30x96xf32> to vector<30x16xf32>
    %88 = vector.extract_strided_slice %85 {offsets = [0, 64], sizes = [30, 16], strides = [1, 1]} : vector<30x96xf32> to vector<30x16xf32>
    %89 = arith.truncf %86 : vector<30x16xf32> to vector<30x16xbf16>
    %90 = arith.truncf %87 : vector<30x16xf32> to vector<30x16xbf16>
    %cst_33 = arith.constant dense<0.000000e+00> : vector<30x30xf32>
    %91 = tpu.matmul %89, %90, %cst_33 {dimension_numbers = #tpu.dot_dimension_numbers<[1], [1], [0], [0], [0, 0, 1, 0], [], []>} : vector<30x16xbf16>, vector<30x16xbf16>, vector<30x30xf32> -> vector<30x30xf32>
    %92 = arith.addf %91, %2 : vector<30x30xf32>
    %cst_34 = arith.constant dense<0xFF800000> : vector<30xf32>
    %93 = vector.multi_reduction <maximumf>, %92, %cst_34 [1] : vector<30x30xf32> to vector<30xf32>
    %94 = vector.shape_cast %93 : vector<30xf32> to vector<30x1xf32>
    %95 = vector.broadcast %94 : vector<30x1xf32> to vector<30x30xf32>
    %96 = arith.subf %92, %95 : vector<30x30xf32>
    %97 = math.exp %96 : vector<30x30xf32>
    %cst_35 = arith.constant dense<0.000000e+00> : vector<30xf32>
    %98 = vector.multi_reduction <add>, %97, %cst_35 [1] : vector<30x30xf32> to vector<30xf32>
    %99 = vector.shape_cast %98 : vector<30xf32> to vector<30x1xf32>
    %100 = tpu.reciprocal %99 {approx = true} : vector<30x1xf32> -> vector<30x1xf32>
    %101 = vector.broadcast %100 : vector<30x1xf32> to vector<30x30xf32>
    %102 = arith.mulf %97, %101 : vector<30x30xf32>
    %103 = arith.truncf %102 : vector<30x30xf32> to vector<30x30xbf16>
    %104 = arith.truncf %88 : vector<30x16xf32> to vector<30x16xbf16>
    %cst_36 = arith.constant dense<0.000000e+00> : vector<30x16xf32>
    %105 = tpu.matmul %103, %104, %cst_36 {dimension_numbers = #tpu.dot_dimension_numbers<[1], [0], [0], [1], [0, 0, 1, 1], [], []>} : vector<30x30xbf16>, vector<30x16xbf16>, vector<30x16xf32> -> vector<30x16xf32>
    %106 = arith.truncf %105 : vector<30x16xf32> to vector<30x16xbf16>
    %107 = vector.extract_strided_slice %1 {offsets = [0, 0], sizes = [16, 32], strides = [1, 1]} : vector<32x32xbf16> to vector<16x32xbf16>
    %cst_37 = arith.constant dense<0.000000e+00> : vector<30x32xf32>
    %108 = tpu.matmul %106, %107, %cst_37 {dimension_numbers = #tpu.dot_dimension_numbers<[1], [0], [0], [1], [0, 0, 1, 1], [], []>} : vector<30x16xbf16>, vector<16x32xbf16>, vector<30x32xf32> -> vector<30x32xf32>
    %109 = arith.addf %83, %108 : vector<30x32xf32>
    %110 = vector.extract_strided_slice %85 {offsets = [0, 16], sizes = [30, 16], strides = [1, 1]} : vector<30x96xf32> to vector<30x16xf32>
    %111 = vector.extract_strided_slice %85 {offsets = [0, 48], sizes = [30, 16], strides = [1, 1]} : vector<30x96xf32> to vector<30x16xf32>
    %112 = vector.extract_strided_slice %85 {offsets = [0, 80], sizes = [30, 16], strides = [1, 1]} : vector<30x96xf32> to vector<30x16xf32>
    %113 = arith.truncf %110 : vector<30x16xf32> to vector<30x16xbf16>
    %114 = arith.truncf %111 : vector<30x16xf32> to vector<30x16xbf16>
    %cst_38 = arith.constant dense<0.000000e+00> : vector<30x30xf32>
    %115 = tpu.matmul %113, %114, %cst_38 {dimension_numbers = #tpu.dot_dimension_numbers<[1], [1], [0], [0], [0, 0, 1, 0], [], []>} : vector<30x16xbf16>, vector<30x16xbf16>, vector<30x30xf32> -> vector<30x30xf32>
    %116 = arith.addf %115, %2 : vector<30x30xf32>
    %cst_39 = arith.constant dense<0xFF800000> : vector<30xf32>
    %117 = vector.multi_reduction <maximumf>, %116, %cst_39 [1] : vector<30x30xf32> to vector<30xf32>
    %118 = vector.shape_cast %117 : vector<30xf32> to vector<30x1xf32>
    %119 = vector.broadcast %118 : vector<30x1xf32> to vector<30x30xf32>
    %120 = arith.subf %116, %119 : vector<30x30xf32>
    %121 = math.exp %120 : vector<30x30xf32>
    %cst_40 = arith.constant dense<0.000000e+00> : vector<30xf32>
    %122 = vector.multi_reduction <add>, %121, %cst_40 [1] : vector<30x30xf32> to vector<30xf32>
    %123 = vector.shape_cast %122 : vector<30xf32> to vector<30x1xf32>
    %124 = tpu.reciprocal %123 {approx = true} : vector<30x1xf32> -> vector<30x1xf32>
    %125 = vector.broadcast %124 : vector<30x1xf32> to vector<30x30xf32>
    %126 = arith.mulf %121, %125 : vector<30x30xf32>
    %127 = arith.truncf %126 : vector<30x30xf32> to vector<30x30xbf16>
    %128 = arith.truncf %112 : vector<30x16xf32> to vector<30x16xbf16>
    %cst_41 = arith.constant dense<0.000000e+00> : vector<30x16xf32>
    %129 = tpu.matmul %127, %128, %cst_41 {dimension_numbers = #tpu.dot_dimension_numbers<[1], [0], [0], [1], [0, 0, 1, 1], [], []>} : vector<30x30xbf16>, vector<30x16xbf16>, vector<30x16xf32> -> vector<30x16xf32>
    %130 = arith.truncf %129 : vector<30x16xf32> to vector<30x16xbf16>
    %131 = vector.extract_strided_slice %1 {offsets = [16, 0], sizes = [16, 32], strides = [1, 1]} : vector<32x32xbf16> to vector<16x32xbf16>
    %cst_42 = arith.constant dense<0.000000e+00> : vector<30x32xf32>
    %132 = tpu.matmul %130, %131, %cst_42 {dimension_numbers = #tpu.dot_dimension_numbers<[1], [0], [0], [1], [0, 0, 1, 1], [], []>} : vector<30x16xbf16>, vector<16x32xbf16>, vector<30x32xf32> -> vector<30x32xf32>
    %133 = arith.addf %109, %132 : vector<30x32xf32>
    %cst_43 = arith.constant dense<0.000000e+00> : vector<30xf32>
    %134 = vector.multi_reduction <add>, %133, %cst_43 [1] : vector<30x32xf32> to vector<30xf32>
    %135 = vector.shape_cast %134 : vector<30xf32> to vector<30x1xf32>
    %cst_44 = arith.constant 3.200000e+01 : f32
    %136 = vector.broadcast %cst_44 : f32 to vector<30x1xf32>
    %137 = arith.divf %135, %136 : vector<30x1xf32>
    %138 = vector.broadcast %137 : vector<30x1xf32> to vector<30x32xf32>
    %139 = arith.subf %133, %138 : vector<30x32xf32>
    %140 = arith.mulf %139, %139 : vector<30x32xf32>
    %cst_45 = arith.constant dense<0.000000e+00> : vector<30xf32>
    %141 = vector.multi_reduction <add>, %140, %cst_45 [1] : vector<30x32xf32> to vector<30xf32>
    %142 = vector.shape_cast %141 : vector<30xf32> to vector<30x1xf32>
    %cst_46 = arith.constant 3.200000e+01 : f32
    %143 = vector.broadcast %cst_46 : f32 to vector<30x1xf32>
    %144 = arith.divf %142, %143 : vector<30x1xf32>
    %145 = vector.broadcast %137 : vector<30x1xf32> to vector<30x32xf32>
    %146 = arith.subf %133, %145 : vector<30x32xf32>
    %cst_47 = arith.constant 9.99999997E-7 : f32
    %147 = vector.broadcast %cst_47 : f32 to vector<30x1xf32>
    %148 = arith.addf %144, %147 : vector<30x1xf32>
    %149 = math.rsqrt %148 : vector<30x1xf32>
    %150 = vector.broadcast %149 : vector<30x1xf32> to vector<30x32xf32>
    %151 = arith.mulf %146, %150 : vector<30x32xf32>
    %152 = vector.broadcast %3 : vector<1x32xf32> to vector<30x32xf32>
    %153 = arith.mulf %151, %152 : vector<30x32xf32>
    %154 = vector.broadcast %4 : vector<1x32xf32> to vector<30x32xf32>
    %155 = arith.addf %153, %154 : vector<30x32xf32>
    %c1_48 = arith.constant 1 : index
    %c0_49 = arith.constant 0 : index
    %c0_50 = arith.constant 0 : index
    %156 = vector.load %arg6[%c1_48, %c0_49, %c0_50] : memref<2x30x32xf32, #tpu.memory_space<vmem>>, vector<1x30x32xf32>
    %157 = vector.shape_cast %156 : vector<1x30x32xf32> to vector<30x32xf32>
    %158 = vector.shape_cast %155 : vector<30x32xf32> to vector<1x30x32xf32>
    tpu.vector_store %arg6[%c1_48, %c0_49, %c0_50], %158 {strides = array<i32>} : memref<2x30x32xf32, #tpu.memory_space<vmem>>, vector<1x30x32xf32>,
    return
  }
}

module attributes {stable_mosaic.version = 11 : i64} {
  func.func @_ffn_block_kernel(%arg0: memref<2x30x32xf32, #tpu.memory_space<vmem>>, %arg1: memref<32x64xbf16, #tpu.memory_space<vmem>>, %arg2: memref<1x64xf32, #tpu.memory_space<vmem>>, %arg3: memref<64x32xbf16, #tpu.memory_space<vmem>>, %arg4: memref<1x32xf32, #tpu.memory_space<vmem>>, %arg5: memref<1x32xf32, #tpu.memory_space<vmem>>, %arg6: memref<1x32xf32, #tpu.memory_space<vmem>>, %arg7: memref<2x30x32xf32, #tpu.memory_space<vmem>>) attributes {dimension_semantics = [], scalar_prefetch = 0 : i64, scratch_operands = 0 : i64, tpu.core_type = #tpu.core_type<tc>} {
    %c0 = arith.constant 0 : index
    %c0_0 = arith.constant 0 : index
    %0 = vector.load %arg1[%c0, %c0_0] : memref<32x64xbf16, #tpu.memory_space<vmem>>, vector<32x64xbf16>
    %c0_1 = arith.constant 0 : index
    %c0_2 = arith.constant 0 : index
    %1 = vector.load %arg2[%c0_1, %c0_2] : memref<1x64xf32, #tpu.memory_space<vmem>>, vector<1x64xf32>
    %c0_3 = arith.constant 0 : index
    %c0_4 = arith.constant 0 : index
    %2 = vector.load %arg3[%c0_3, %c0_4] : memref<64x32xbf16, #tpu.memory_space<vmem>>, vector<64x32xbf16>
    %c0_5 = arith.constant 0 : index
    %c0_6 = arith.constant 0 : index
    %3 = vector.load %arg4[%c0_5, %c0_6] : memref<1x32xf32, #tpu.memory_space<vmem>>, vector<1x32xf32>
    %c0_7 = arith.constant 0 : index
    %c0_8 = arith.constant 0 : index
    %4 = vector.load %arg5[%c0_7, %c0_8] : memref<1x32xf32, #tpu.memory_space<vmem>>, vector<1x32xf32>
    %c0_9 = arith.constant 0 : index
    %c0_10 = arith.constant 0 : index
    %5 = vector.load %arg6[%c0_9, %c0_10] : memref<1x32xf32, #tpu.memory_space<vmem>>, vector<1x32xf32>
    %c0_11 = arith.constant 0 : index
    %c0_12 = arith.constant 0 : index
    %c0_13 = arith.constant 0 : index
    %6 = vector.load %arg0[%c0_11, %c0_12, %c0_13] : memref<2x30x32xf32, #tpu.memory_space<vmem>>, vector<1x30x32xf32>
    %7 = vector.shape_cast %6 : vector<1x30x32xf32> to vector<30x32xf32>
    %8 = arith.truncf %7 : vector<30x32xf32> to vector<30x32xbf16>
    %cst = arith.constant dense<0.000000e+00> : vector<30x64xf32>
    %9 = tpu.matmul %8, %0, %cst {dimension_numbers = #tpu.dot_dimension_numbers<[1], [0], [0], [1], [0, 0, 1, 1], [], []>} : vector<30x32xbf16>, vector<32x64xbf16>, vector<30x64xf32> -> vector<30x64xf32>
    %10 = vector.broadcast %1 : vector<1x64xf32> to vector<30x64xf32>
    %11 = arith.addf %9, %10 : vector<30x64xf32>
    %cst_14 = arith.constant 0.707106769 : f32
    %12 = vector.broadcast %cst_14 : f32 to vector<30x64xf32>
    %13 = arith.mulf %11, %12 : vector<30x64xf32>
    %14 = math.absf %13 : vector<30x64xf32>
    %cst_15 = arith.constant 0.327591091 : f32
    %15 = vector.broadcast %cst_15 : f32 to vector<30x64xf32>
    %16 = arith.mulf %15, %14 : vector<30x64xf32>
    %cst_16 = arith.constant 1.000000e+00 : f32
    %17 = vector.broadcast %cst_16 : f32 to vector<30x64xf32>
    %18 = arith.addf %17, %16 : vector<30x64xf32>
    %cst_17 = arith.constant 1.000000e+00 : f32
    %19 = vector.broadcast %cst_17 : f32 to vector<30x64xf32>
    %20 = arith.divf %19, %18 : vector<30x64xf32>
    %cst_18 = arith.constant 1.06140542 : f32
    %21 = vector.broadcast %cst_18 : f32 to vector<30x64xf32>
    %22 = arith.mulf %20, %21 : vector<30x64xf32>
    %cst_19 = arith.constant -1.45315206 : f32
    %23 = vector.broadcast %cst_19 : f32 to vector<30x64xf32>
    %24 = arith.addf %23, %22 : vector<30x64xf32>
    %25 = arith.mulf %20, %24 : vector<30x64xf32>
    %cst_20 = arith.constant 1.42141378 : f32
    %26 = vector.broadcast %cst_20 : f32 to vector<30x64xf32>
    %27 = arith.addf %26, %25 : vector<30x64xf32>
    %28 = arith.mulf %20, %27 : vector<30x64xf32>
    %cst_21 = arith.constant -0.284496725 : f32
    %29 = vector.broadcast %cst_21 : f32 to vector<30x64xf32>
    %30 = arith.addf %29, %28 : vector<30x64xf32>
    %31 = arith.mulf %20, %30 : vector<30x64xf32>
    %cst_22 = arith.constant 0.254829586 : f32
    %32 = vector.broadcast %cst_22 : f32 to vector<30x64xf32>
    %33 = arith.addf %32, %31 : vector<30x64xf32>
    %34 = arith.mulf %20, %33 : vector<30x64xf32>
    %cst_23 = arith.constant 0.000000e+00 : f32
    %35 = vector.broadcast %cst_23 : f32 to vector<30x64xf32>
    %36 = arith.subf %35, %14 : vector<30x64xf32>
    %37 = arith.mulf %36, %14 : vector<30x64xf32>
    %38 = math.exp %37 : vector<30x64xf32>
    %39 = arith.mulf %34, %38 : vector<30x64xf32>
    %cst_24 = arith.constant 1.000000e+00 : f32
    %40 = vector.broadcast %cst_24 : f32 to vector<30x64xf32>
    %41 = arith.subf %40, %39 : vector<30x64xf32>
    %cst_25 = arith.constant 0.000000e+00 : f32
    %42 = vector.broadcast %cst_25 : f32 to vector<30x64xf32>
    %43 = arith.cmpf oge, %13, %42 : vector<30x64xf32>
    %cst_26 = arith.constant 0.000000e+00 : f32
    %44 = vector.broadcast %cst_26 : f32 to vector<30x64xf32>
    %45 = arith.subf %44, %41 : vector<30x64xf32>
    %46 = arith.select %43, %41, %45 : vector<30x64xi1>, vector<30x64xf32>
    %cst_27 = arith.constant 5.000000e-01 : f32
    %47 = vector.broadcast %cst_27 : f32 to vector<30x64xf32>
    %48 = arith.mulf %47, %11 : vector<30x64xf32>
    %cst_28 = arith.constant 1.000000e+00 : f32
    %49 = vector.broadcast %cst_28 : f32 to vector<30x64xf32>
    %50 = arith.addf %49, %46 : vector<30x64xf32>
    %51 = arith.mulf %48, %50 : vector<30x64xf32>
    %52 = arith.truncf %51 : vector<30x64xf32> to vector<30x64xbf16>
    %cst_29 = arith.constant dense<0.000000e+00> : vector<30x32xf32>
    %53 = tpu.matmul %52, %2, %cst_29 {dimension_numbers = #tpu.dot_dimension_numbers<[1], [0], [0], [1], [0, 0, 1, 1], [], []>} : vector<30x64xbf16>, vector<64x32xbf16>, vector<30x32xf32> -> vector<30x32xf32>
    %54 = vector.broadcast %3 : vector<1x32xf32> to vector<30x32xf32>
    %55 = arith.addf %53, %54 : vector<30x32xf32>
    %56 = arith.addf %55, %7 : vector<30x32xf32>
    %cst_30 = arith.constant dense<0.000000e+00> : vector<30xf32>
    %57 = vector.multi_reduction <add>, %56, %cst_30 [1] : vector<30x32xf32> to vector<30xf32>
    %58 = vector.shape_cast %57 : vector<30xf32> to vector<30x1xf32>
    %cst_31 = arith.constant 3.200000e+01 : f32
    %59 = vector.broadcast %cst_31 : f32 to vector<30x1xf32>
    %60 = arith.divf %58, %59 : vector<30x1xf32>
    %61 = vector.broadcast %60 : vector<30x1xf32> to vector<30x32xf32>
    %62 = arith.subf %56, %61 : vector<30x32xf32>
    %63 = arith.mulf %62, %62 : vector<30x32xf32>
    %cst_32 = arith.constant dense<0.000000e+00> : vector<30xf32>
    %64 = vector.multi_reduction <add>, %63, %cst_32 [1] : vector<30x32xf32> to vector<30xf32>
    %65 = vector.shape_cast %64 : vector<30xf32> to vector<30x1xf32>
    %cst_33 = arith.constant 3.200000e+01 : f32
    %66 = vector.broadcast %cst_33 : f32 to vector<30x1xf32>
    %67 = arith.divf %65, %66 : vector<30x1xf32>
    %68 = vector.broadcast %60 : vector<30x1xf32> to vector<30x32xf32>
    %69 = arith.subf %56, %68 : vector<30x32xf32>
    %cst_34 = arith.constant 9.99999997E-7 : f32
    %70 = vector.broadcast %cst_34 : f32 to vector<30x1xf32>
    %71 = arith.addf %67, %70 : vector<30x1xf32>
    %72 = math.rsqrt %71 : vector<30x1xf32>
    %73 = vector.broadcast %72 : vector<30x1xf32> to vector<30x32xf32>
    %74 = arith.mulf %69, %73 : vector<30x32xf32>
    %75 = vector.broadcast %4 : vector<1x32xf32> to vector<30x32xf32>
    %76 = arith.mulf %74, %75 : vector<30x32xf32>
    %77 = vector.broadcast %5 : vector<1x32xf32> to vector<30x32xf32>
    %78 = arith.addf %76, %77 : vector<30x32xf32>
    %c0_35 = arith.constant 0 : index
    %c0_36 = arith.constant 0 : index
    %c0_37 = arith.constant 0 : index
    %79 = vector.load %arg7[%c0_35, %c0_36, %c0_37] : memref<2x30x32xf32, #tpu.memory_space<vmem>>, vector<1x30x32xf32>
    %80 = vector.shape_cast %79 : vector<1x30x32xf32> to vector<30x32xf32>
    %81 = vector.shape_cast %78 : vector<30x32xf32> to vector<1x30x32xf32>
    tpu.vector_store %arg7[%c0_35, %c0_36, %c0_37], %81 {strides = array<i32>} : memref<2x30x32xf32, #tpu.memory_space<vmem>>, vector<1x30x32xf32>,
    %c1 = arith.constant 1 : index
    %c0_38 = arith.constant 0 : index
    %c0_39 = arith.constant 0 : index
    %82 = vector.load %arg0[%c1, %c0_38, %c0_39] : memref<2x30x32xf32, #tpu.memory_space<vmem>>, vector<1x30x32xf32>
    %83 = vector.shape_cast %82 : vector<1x30x32xf32> to vector<30x32xf32>
    %84 = arith.truncf %83 : vector<30x32xf32> to vector<30x32xbf16>
    %cst_40 = arith.constant dense<0.000000e+00> : vector<30x64xf32>
    %85 = tpu.matmul %84, %0, %cst_40 {dimension_numbers = #tpu.dot_dimension_numbers<[1], [0], [0], [1], [0, 0, 1, 1], [], []>} : vector<30x32xbf16>, vector<32x64xbf16>, vector<30x64xf32> -> vector<30x64xf32>
    %86 = vector.broadcast %1 : vector<1x64xf32> to vector<30x64xf32>
    %87 = arith.addf %85, %86 : vector<30x64xf32>
    %cst_41 = arith.constant 0.707106769 : f32
    %88 = vector.broadcast %cst_41 : f32 to vector<30x64xf32>
    %89 = arith.mulf %87, %88 : vector<30x64xf32>
    %90 = math.absf %89 : vector<30x64xf32>
    %cst_42 = arith.constant 0.327591091 : f32
    %91 = vector.broadcast %cst_42 : f32 to vector<30x64xf32>
    %92 = arith.mulf %91, %90 : vector<30x64xf32>
    %cst_43 = arith.constant 1.000000e+00 : f32
    %93 = vector.broadcast %cst_43 : f32 to vector<30x64xf32>
    %94 = arith.addf %93, %92 : vector<30x64xf32>
    %cst_44 = arith.constant 1.000000e+00 : f32
    %95 = vector.broadcast %cst_44 : f32 to vector<30x64xf32>
    %96 = arith.divf %95, %94 : vector<30x64xf32>
    %cst_45 = arith.constant 1.06140542 : f32
    %97 = vector.broadcast %cst_45 : f32 to vector<30x64xf32>
    %98 = arith.mulf %96, %97 : vector<30x64xf32>
    %cst_46 = arith.constant -1.45315206 : f32
    %99 = vector.broadcast %cst_46 : f32 to vector<30x64xf32>
    %100 = arith.addf %99, %98 : vector<30x64xf32>
    %101 = arith.mulf %96, %100 : vector<30x64xf32>
    %cst_47 = arith.constant 1.42141378 : f32
    %102 = vector.broadcast %cst_47 : f32 to vector<30x64xf32>
    %103 = arith.addf %102, %101 : vector<30x64xf32>
    %104 = arith.mulf %96, %103 : vector<30x64xf32>
    %cst_48 = arith.constant -0.284496725 : f32
    %105 = vector.broadcast %cst_48 : f32 to vector<30x64xf32>
    %106 = arith.addf %105, %104 : vector<30x64xf32>
    %107 = arith.mulf %96, %106 : vector<30x64xf32>
    %cst_49 = arith.constant 0.254829586 : f32
    %108 = vector.broadcast %cst_49 : f32 to vector<30x64xf32>
    %109 = arith.addf %108, %107 : vector<30x64xf32>
    %110 = arith.mulf %96, %109 : vector<30x64xf32>
    %cst_50 = arith.constant 0.000000e+00 : f32
    %111 = vector.broadcast %cst_50 : f32 to vector<30x64xf32>
    %112 = arith.subf %111, %90 : vector<30x64xf32>
    %113 = arith.mulf %112, %90 : vector<30x64xf32>
    %114 = math.exp %113 : vector<30x64xf32>
    %115 = arith.mulf %110, %114 : vector<30x64xf32>
    %cst_51 = arith.constant 1.000000e+00 : f32
    %116 = vector.broadcast %cst_51 : f32 to vector<30x64xf32>
    %117 = arith.subf %116, %115 : vector<30x64xf32>
    %cst_52 = arith.constant 0.000000e+00 : f32
    %118 = vector.broadcast %cst_52 : f32 to vector<30x64xf32>
    %119 = arith.cmpf oge, %89, %118 : vector<30x64xf32>
    %cst_53 = arith.constant 0.000000e+00 : f32
    %120 = vector.broadcast %cst_53 : f32 to vector<30x64xf32>
    %121 = arith.subf %120, %117 : vector<30x64xf32>
    %122 = arith.select %119, %117, %121 : vector<30x64xi1>, vector<30x64xf32>
    %cst_54 = arith.constant 5.000000e-01 : f32
    %123 = vector.broadcast %cst_54 : f32 to vector<30x64xf32>
    %124 = arith.mulf %123, %87 : vector<30x64xf32>
    %cst_55 = arith.constant 1.000000e+00 : f32
    %125 = vector.broadcast %cst_55 : f32 to vector<30x64xf32>
    %126 = arith.addf %125, %122 : vector<30x64xf32>
    %127 = arith.mulf %124, %126 : vector<30x64xf32>
    %128 = arith.truncf %127 : vector<30x64xf32> to vector<30x64xbf16>
    %cst_56 = arith.constant dense<0.000000e+00> : vector<30x32xf32>
    %129 = tpu.matmul %128, %2, %cst_56 {dimension_numbers = #tpu.dot_dimension_numbers<[1], [0], [0], [1], [0, 0, 1, 1], [], []>} : vector<30x64xbf16>, vector<64x32xbf16>, vector<30x32xf32> -> vector<30x32xf32>
    %130 = vector.broadcast %3 : vector<1x32xf32> to vector<30x32xf32>
    %131 = arith.addf %129, %130 : vector<30x32xf32>
    %132 = arith.addf %131, %83 : vector<30x32xf32>
    %cst_57 = arith.constant dense<0.000000e+00> : vector<30xf32>
    %133 = vector.multi_reduction <add>, %132, %cst_57 [1] : vector<30x32xf32> to vector<30xf32>
    %134 = vector.shape_cast %133 : vector<30xf32> to vector<30x1xf32>
    %cst_58 = arith.constant 3.200000e+01 : f32
    %135 = vector.broadcast %cst_58 : f32 to vector<30x1xf32>
    %136 = arith.divf %134, %135 : vector<30x1xf32>
    %137 = vector.broadcast %136 : vector<30x1xf32> to vector<30x32xf32>
    %138 = arith.subf %132, %137 : vector<30x32xf32>
    %139 = arith.mulf %138, %138 : vector<30x32xf32>
    %cst_59 = arith.constant dense<0.000000e+00> : vector<30xf32>
    %140 = vector.multi_reduction <add>, %139, %cst_59 [1] : vector<30x32xf32> to vector<30xf32>
    %141 = vector.shape_cast %140 : vector<30xf32> to vector<30x1xf32>
    %cst_60 = arith.constant 3.200000e+01 : f32
    %142 = vector.broadcast %cst_60 : f32 to vector<30x1xf32>
    %143 = arith.divf %141, %142 : vector<30x1xf32>
    %144 = vector.broadcast %136 : vector<30x1xf32> to vector<30x32xf32>
    %145 = arith.subf %132, %144 : vector<30x32xf32>
    %cst_61 = arith.constant 9.99999997E-7 : f32
    %146 = vector.broadcast %cst_61 : f32 to vector<30x1xf32>
    %147 = arith.addf %143, %146 : vector<30x1xf32>
    %148 = math.rsqrt %147 : vector<30x1xf32>
    %149 = vector.broadcast %148 : vector<30x1xf32> to vector<30x32xf32>
    %150 = arith.mulf %145, %149 : vector<30x32xf32>
    %151 = vector.broadcast %4 : vector<1x32xf32> to vector<30x32xf32>
    %152 = arith.mulf %150, %151 : vector<30x32xf32>
    %153 = vector.broadcast %5 : vector<1x32xf32> to vector<30x32xf32>
    %154 = arith.addf %152, %153 : vector<30x32xf32>
    %c1_62 = arith.constant 1 : index
    %c0_63 = arith.constant 0 : index
    %c0_64 = arith.constant 0 : index
    %155 = vector.load %arg7[%c1_62, %c0_63, %c0_64] : memref<2x30x32xf32, #tpu.memory_space<vmem>>, vector<1x30x32xf32>
    %156 = vector.shape_cast %155 : vector<1x30x32xf32> to vector<30x32xf32>
    %157 = vector.shape_cast %154 : vector<30x32xf32> to vector<1x30x32xf32>
    tpu.vector_store %arg7[%c1_62, %c0_63, %c0_64], %157 {strides = array<i32>} : memref<2x30x32xf32, #tpu.memory_space<vmem>>, vector<1x30x32xf32>,
    return
  }
}

</mosaic_0001>

<bundles_post_ra>
// kernel: encoder_forward.6
= control target key start
LH: loop header
LB: loop body
LE: loop exit
PB: predicated region body
PF: predicated region fallthrough
CT: control target
= control target key end

     0   :  { %vm77_vm0 = vcmask 1041408   ;;  %vm49_vm1 = vcmask 1045504   ;;  %vm73_vm2 = vcmask 31744   ;;  %vm45_vm3 = vcmask 97280   ;;  %s276_s4 = inlined_call_operand.vmem [shape: bf16[4,32], index: 4, kind: input, shape index: {}]   ;;  %s277_s1 = inlined_call_operand.vmem [shape: bf16[12,32], index: 1, kind: input, shape index: {}]   ;;  %s278_s3 = inlined_call_operand.vmem [shape: f32[2,16,4], index: 3, kind: input, shape index: {}]   ;;  %s279_s0 = inlined_call_operand.vmem [shape: f32[2,16,12], index: 0, kind: input, shape index: {}]   ;;  %s280_s5 = inlined_call_operand.vmem [shape: f32[1,32], index: 5, kind: input, shape index: {}]   ;;  %s281_s2 = inlined_call_operand.vmem [shape: f32[1,32], index: 2, kind: input, shape index: {}]   ;;  %s282_s6 = inlined_call_operand.vmem [shape: f32[16,32], index: 6, kind: input, shape index: {}]   ;;  %s283_s7 = inlined_call_operand.vmem [shape: f32[2,16,32], index: 7, kind: output, shape index: {}]  }
   0x1   :  { %v30_v0 = vld [vmem:[%s276_s4] sm:$0x3]  ;;  %v169_v2 = vld [vmem:[%s277_s1] sm:$0x30]  ;;  %v68_v6 = vld [vmem:[%s278_s3 + $0x8] sm:$0xff]  ;;  %vm99_vm4 = vcmask 261120  }
   0x2   :  { %v157_v1 = vld [vmem:[%s277_s1] sm:$0xf]  ;;  %v79_v3 = vsel %vm77_vm0, %v30_v0, 0  ;;  %v164_v7 = vld [vmem:[%s278_s3 + $0x10] sm:$0xff]  ;;  %v165_v9 = vld [vmem:[%s278_s3 + $0x18] sm:$0xff] }
   0x3   :  { %v158_v4 = vor.u32 %v169_v2, %v157_v1  ;;  %v67_v5 = vld [vmem:[%s278_s3] sm:$0xff]  ;;  %88 = vmatpush.bf16.msra.mxu1 %v79_v3  ;;  %137 = vmatpush.bf16.msra.mxu3 %v79_v3  ;;  %v35_v11 = vld [vmem:[%s279_s0 + $0x8] sm:$0xff]  ;;  %v126_v13 = vpack.c.bf16 %v165_v9, %v164_v7  ;;  %v161_v15 = vld [vmem:[%s279_s0 + $0x10] sm:$0xff] }
   0x4   :  { %v69_v8 = vpack.c.bf16 %v68_v6, %v67_v5  ;;  %v34_v10 = vld [vmem:[%s279_s0] sm:$0xff]  ;;  %v162_v16 = vld [vmem:[%s279_s0 + $0x18] sm:$0xff]  ;;  %v33_v36 = vld [vmem:[%s282_s6 + $0x8] sm:$0xff] }
   0x5   :  { %v51_v12 = vsel %vm49_vm1, %v158_v4, 0  ;;  %v36_v14 = vpack.c.bf16 %v35_v11, %v34_v10  ;;  %v105_v17 = vpack.c.bf16 %v162_v16, %v161_v15  ;;  %v170_v18 = vld [vmem:[%s280_s5] ss:$0 sm:$0xff] }
   0x6   :  { %60 = vmatpush.bf16.msra.mxu0 %v51_v12  ;;  %116 = vmatpush.bf16.msra.mxu2 %v51_v12  ;;  %v171_v19 = vld [vmem:[%s281_s2] ss:$0 sm:$0xff] }
   0x7   :  { %160 = vmatmul.msk.bf16.vlgmr.msra.gmra.mxu1 %vm73_vm2, %v69_v8  ;;  %166 = vmatmul.msk.bf16.vlgmr.msra.gmra.mxu3 %vm73_vm2, %v126_v13  ;;  %v32_v24 = vld [vmem:[%s282_s6] sm:$0xff] }
   0x9   :  { %159 = vmatmul.msk.bf16.vlgmr.msra.gmra.mxu0 %vm45_vm3, %v36_v14  ;;  %163 = vmatmul.msk.bf16.vlgmr.msra.gmra.mxu2 %vm45_vm3, %v105_v17 }
  0x84   :  { %v90_v20 = vpop.f32.mrf.mxu1 }
  0x85   :  { %v91_v21 = vadd.f32 %v170_v18, %v90_v20 }
  0x86   :  { %v62_v22 = vpop.f32.mrf.mxu0 }
  0x87   :  { %v63_v23 = vadd.f32 %v171_v19, %v62_v22 }
  0x89   :  { %v95_v25 = vadd.f32 %v91_v21, %v63_v23 }
  0x8a   :  { %v139_v26 = vpop.f32.mrf.mxu3 }
  0x8b   :  { %v97_v27 = vadd.f32 %v95_v25, %v32_v24  ;;  %v140_v28 = vadd.f32 %v170_v18, %v139_v26 }
  0x8c   :  { %v92_v29 = vpop.f32.mrf.mxu1  ;;  %v118_v30 = vpop.f32.mrf.mxu2 }
  0x8d   :  { %100 = vst.msk [vmem:[%s283_s7] sm:$0xff] %vm99_vm4, %v97_v27  ;;  %v119_v31 = vadd.f32 %v171_v19, %v118_v30  ;;  %v93_v33 = vadd.f32 %v170_v18, %v92_v29 }
  0x8e   :  { %v64_v32 = vpop.f32.mrf.mxu0 }
  0x8f   :  { %v144_v34 = vadd.f32 %v140_v28, %v119_v31  ;;  %v65_v35 = vadd.f32 %v171_v19, %v64_v32 }
  0x91   :  { %v146_v37 = vadd.f32 %v144_v34, %v32_v24  ;;  %v96_v38 = vadd.f32 %v93_v33, %v65_v35 }
  0x92   :  { %v141_v39 = vpop.f32.mrf.mxu3 }
  0x93   :  { %167 = vst.msk [vmem:[%s283_s7 + $0x10] sm:$0xff] %vm99_vm4, %v146_v37  ;;  %v98_v40 = vadd.f32 %v96_v38, %v33_v36  ;;  %v142_v42 = vadd.f32 %v170_v18, %v141_v39 }
  0x94   :  { %v120_v41 = vpop.f32.mrf.mxu2 }
  0x95   :  { %101 = vst.msk [vmem:[%s283_s7 + $0x8] sm:$0xff] %vm99_vm4, %v98_v40  ;;  %v121_v43 = vadd.f32 %v171_v19, %v120_v41 }
  0x97   :  { %v145_v44 = vadd.f32 %v142_v42, %v121_v43 }
  0x99   :  { %v147_v45 = vadd.f32 %v145_v44, %v33_v36 }
  0x9b   :  { %168 = vst.msk [vmem:[%s283_s7 + $0x18] sm:$0xff] %vm99_vm4, %v147_v45 }

// kernel: encoder_forward.8
= control target key start
LH: loop header
LB: loop body
LE: loop exit
PB: predicated region body
PF: predicated region fallthrough
CT: control target
= control target key end

     0   :  { %vm56_vm0 = vcmask 261120   ;;  %s1094_s8 = smov 96   ;;  %s1095_s9 = smov 64   ;;  %vm90_vm1 = vcmask 130048   ;;  %vm181_vm2 = vcmask 1046528   ;;  %vm122_vm3 = vcmask 244736   ;;  %s1594_s1 = inlined_call_operand.vmem [shape: bf16[32,96], index: 1, kind: input, shape index: {}]   ;;  %s1595_s0 = inlined_call_operand.vmem [shape: f32[2,30,32], index: 0, kind: input, shape index: {}]   ;;  %s1596_s3 = inlined_call_operand.vmem [shape: f32[30,30], index: 3, kind: input, shape index: {}]   ;;  %s1597_s2 = inlined_call_operand.vmem [shape: bf16[32,32], index: 2, kind: input, shape index: {}]   ;;  %s1598_s4 = inlined_call_operand.vmem [shape: f32[1,32], index: 4, kind: input, shape index: {}]   ;;  %s1599_s5 = inlined_call_operand.vmem [shape: f32[1,32], index: 5, kind: input, shape index: {}]   ;;  %s1600_s6 = inlined_call_operand.vmem [shape: f32[2,30,32], index: 6, kind: output, shape index: {}]  }
   0x1   :  { %v1138_v0 = vld [vmem:[%s1594_s1 + $0x8] sm:$0xff]  ;;  %v1143_v1 = vld [vmem:[%s1594_s1] sm:$0xff]  ;;  %v1148_v2 = vld [vmem:[%s1595_s0 + $0x10] sm:$0xff]  ;;  %vm132_vm4 = vcmask 242688   ;;  %s1096_s16 = smov 80   ;;  %s1097_s17 = smov 112  }
   0x2   :  { %1001 = vmatpush.bf16.msra.mxu2 %v1138_v0  ;;  %69 = vmatpush.bf16.msra.mxu0 %v1138_v0  ;;  %v1155_v3 = vld [vmem:[%s1595_s0 + $0x18] sm:$0x3f]  ;;  %v1160_v4 = vld [vmem:[%s1595_s0] sm:$0xff]  ;;  %v1165_v5 = vld [vmem:[%s1595_s0 + $0x8] sm:$0xff]  ;;  %vm405_vm5 = vcmask 259072  }
   0x3   :  { %v43_v6 = vpack.c.bf16 %v1155_v3, %v1148_v2  ;;  %v42_v7 = vpack.c.bf16 %v1165_v5, %v1160_v4  ;;  %v1195_v20 = vld [vmem:[%s1596_s3] sm:$0xff]  ;;  %v1202_v24 = vld [vmem:[%s1596_s3 + $0x8] sm:$0xff]  ;;  %v1209_v29 = vld [vmem:[%s1596_s3 + $0x18] sm:$0x3f] }
   0x4   :  { %v1226_v43 = vld [vmem:[%s1596_s3 + $0x10] sm:$0xff] }
   0x6   :  { %1002 = vmatpush.bf16.msra.mxu2 %v1143_v1  ;;  %70 = vmatpush.bf16.msra.mxu0 %v1143_v1 }
   0x9   :  { %954 = vmatmul.msk.bf16.vlgmr.msra.gmra.mxu2 %vm56_vm0, %v43_v6  ;;  %953 = vmatmul.msk.bf16.vlgmr.msra.gmra.mxu0 %vm56_vm0, %v42_v7  ;;  %v1238_v6 = vld [vmem:[%s1597_s2] sm:$0xff] }
   0xa   :  { %1003 = vmatpush.bf16.msra.mxu3 %v1238_v6 }
  0x86   :  { %v72_v9 = vpop.f32.mrf.mxu0 }
  0x8c   :  { %v77_v8 = vpop.f32.mrf.mxu2 }
  0x8e   :  { %v74_v12 = vpop.f32.mrf.mxu0 }
  0x8f   :  { %v1179_v13 = vpack.c.bf16 %v74_v12, %v72_v9 }
  0x94   :  { %v79_v10 = vpop.f32.mrf.mxu2 }
  0x95   :  { %v1175_v11 = vpack.c.bf16 %v79_v10, %v77_v8 }
  0x97   :  { %88 = vrot.lane.b32.xlu0 %v1175_v11, %s1094_s8 }
  0x9f   :  { %86 = vrot.lane.b32.xlu0 %v1179_v13, %s1094_s8 }
  0xa7   :  { %172 = vrot.lane.b32.xlu0 %v1175_v11, %s1095_s9 }
 0x109   :  { %v89_v14 = vpop.permute.xlu0 %88 }
 0x10a   :  { %v101_v15 = vsel %vm90_vm1, %v89_v14, 0 }
 0x10b   :  { %109 = vmatpush.bf16.xpose.msra.mxu1 %v101_v15 }
 0x111   :  { %v87_v16 = vpop.permute.xlu0 %86 }
 0x112   :  { %v98_v17 = vsel %vm90_vm1, %v87_v16, 0 }
 0x113   :  { %110 = vmatpush.bf16.xpose.msra.mxu1 %v98_v17 }
 0x119   :  { %v173_v18 = vpop.permute.xlu0 %172 }
 0x11a   :  { %955 = vmatmul.msk.bf16.vlgmr.msra.gmra.mxu1 %vm90_vm1, %v1179_v13  ;;  %v183_v19 = vsel %vm181_vm2, %v173_v18, 0 }
 0x11b   :  { %191 = vmatpush.bf16.msrb.mxu2 %v183_v19  ;;  %225 = vmatpush.bf16.msrb.mxu1 %v1238_v6 }
 0x11f   :  { %529 = vmatpush.bf16.msra.mxu1 %v1138_v0 }
 0x123   :  { %530 = vmatpush.bf16.msra.mxu1 %v1143_v1 }
 0x12a   :  { %956 = vmatmul.msk.bf16.gmra.mxu1 %vm90_vm1, %v1175_v11 }
 0x197   :  { %v112_v21 = vpop.f32.mrf.mxu1 }
 0x198   :  { %v113_v22 = vadd.f32 %v112_v21, %v1195_v20 }
 0x19a   :  { %v123_v23 = vsel %vm122_vm3, %v113_v22, -inf }
 0x19b   :  { %124 = vmax.xlane.f32.xlu1 %v123_v23  ;;  %v1256_v23 = vld [vmem:[%s1595_s0 + $0x28] sm:$0xff] }
 0x19f   :  { %v114_v25 = vpop.f32.mrf.mxu1 }
 0x1a0   :  { %v115_v26 = vadd.f32 %v114_v25, %v1202_v24 }
 0x1a2   :  { %v126_v27 = vsel %vm122_vm3, %v115_v26, -inf }
 0x1a3   :  { %127 = vmax.xlane.f32.xlu1 %v126_v27  ;;  %v1269_v27 = vld [vmem:[%s1595_s0 + $0x38] sm:$0x3f] }
 0x1a7   :  { %v117_v28 = vpop.f32.mrf.mxu1 }
 0x1a8   :  { %v118_v44 = vadd.f32 %v117_v28, %v1226_v43 }
 0x1aa   :  { %v129_v45 = vsel %vm122_vm3, %v118_v44, -inf }
 0x1af   :  { %v119_v30 = vpop.f32.mrf.mxu1 }
 0x1b0   :  { %v120_v31 = vadd.f32 %v119_v30, %v1209_v29 }
 0x1b2   :  { %v133_v32 = vsel %vm132_vm4, %v120_v31, -inf }
 0x1b3   :  { %134 = vmax.xlane.f32.xlu0 %v133_v32 }
 0x1bc   :  { %170 = vrot.lane.b32.xlu1 %v1179_v13, %s1095_s9 }
 0x1c4   :  { %245 = vrot.lane.b32.xlu1 %v1179_v13, %s1096_s16 }
 0x1cc   :  { %241 = vrot.lane.b32.xlu1 %v1179_v13, %s1097_s17 }
 0x1d4   :  { %243 = vrot.lane.b32.xlu1 %v1175_v11, %s1097_s17 }
 0x20e   :  { %v125_v33 = vpop.xlane.xlu1 %124 }
 0x20f   :  { %v136_v34 = vsub.f32 %v113_v22, %v125_v33  ;;  %v1251_v22 = vld [vmem:[%s1595_s0 + $0x20] sm:$0xff] }
 0x210   :  { %v515_v25 = vpack.c.bf16 %v1256_v23, %v1251_v22 }
 0x211   :  { %v140_v35 = vmul.f32 1.442695, %v136_v34 }
 0x213   :  { %1012 = vpow2.f32 %v140_v35 }
 0x216   :  { %v128_v36 = vpop.xlane.xlu1 %127 }
 0x217   :  { %v137_v37 = vsub.f32 %v115_v26, %v128_v36  ;;  %v1264_v26 = vld [vmem:[%s1595_s0 + $0x30] sm:$0xff]  ;;  %s1098_s0 = smov 48  }
 0x218   :  { %v516_v28 = vpack.c.bf16 %v1269_v27, %v1264_v26 }
 0x219   :  { %v1013_v38 = vpop.eup %1012  ;;  %v142_v39 = vmul.f32 1.442695, %v137_v37 }
 0x21a   :  { %v148_v40 = vsel %vm122_vm3, %v1013_v38, 0.0 }
 0x21b   :  { %1014 = vpow2.f32 %v142_v39  ;;  %149 = vadd.xlane.f32.xlu2 %v148_v40 }
 0x221   :  { %v1015_v41 = vpop.eup %1014 }
 0x222   :  { %v151_v42 = vsel %vm122_vm3, %v1015_v41, 0.0 }
 0x223   :  { %152 = vadd.xlane.f32.xlu2 %v151_v42 }
 0x226   :  { %v135_v51 = vpop.xlane.xlu0 %134 }
 0x227   :  { %v139_v57 = vsub.f32 %v120_v31, %v135_v51 }
 0x229   :  { %v146_v59 = vmul.f32 1.442695, %v139_v57 }
 0x22b   :  { %130 = vmax.xlane.f32.xlu2 %v129_v45 }
 0x22e   :  { %v171_v46 = vpop.permute.xlu1 %170 }
 0x22f   :  { %192 = vmatpush.bf16.msrb.mxu2 %v171_v46 }
 0x236   :  { %v246_v1 = vpop.permute.xlu1 %245 }
 0x237   :  { %v256_v21 = vsel %vm90_vm1, %v246_v1, 0 }
 0x23e   :  { %v242_v39 = vpop.permute.xlu1 %241 }
 0x246   :  { %v244_v42 = vpop.permute.xlu1 %243 }
 0x28e   :  { %v150_v47 = vpop.xlane.xlu2 %149 }
 0x28f   :  { %1016 = vrcp.f32 %v150_v47 }
 0x295   :  { %v1017_v49 = vpop.eup %1016 }
 0x296   :  { %v153_v48 = vpop.xlane.xlu2 %152  ;;  %v164_v52 = vmul.f32 %v1017_v49, %v1013_v38 }
 0x297   :  { %1018 = vrcp.f32 %v153_v48 }
 0x29d   :  { %v1019_v50 = vpop.eup %1018 }
 0x29e   :  { %v165_v53 = vmul.f32 %v1019_v50, %v1015_v41  ;;  %v131_v54 = vpop.xlane.xlu2 %130 }
 0x29f   :  { %v138_v55 = vsub.f32 %v118_v44, %v131_v54 }
 0x2a0   :  { %v168_v56 = vpack.c.bf16 %v165_v53, %v164_v52 }
 0x2a1   :  { %v144_v58 = vmul.f32 1.442695, %v138_v55 }
 0x2a2   :  { %957 = vmatmul.msk.bf16.vlgmr.msrb.gmra.mxu2 %vm122_vm3, %v168_v56 }
 0x2a3   :  { %1020 = vpow2.f32 %v144_v58 }
 0x2a4   :  { %1022 = vpow2.f32 %v146_v59 }
 0x2a9   :  { %v1021_v60 = vpop.eup %1020 }
 0x2aa   :  { %v154_v61 = vsel %vm122_vm3, %v1021_v60, 0.0  ;;  %v1023_v62 = vpop.eup %1022 }
 0x2ab   :  { %155 = vadd.xlane.f32.xlu2 %v154_v61  ;;  %v157_v63 = vsel %vm132_vm4, %v1023_v62, 0.0 }
 0x2b3   :  { %158 = vadd.xlane.f32.xlu2 %v157_v63 }
 0x2cb   :  { %247 = vrot.lane.b32.xlu2 %v1175_v11, %s1096_s16 }
 0x31e   :  { %v156_v7 = vpop.xlane.xlu2 %155 }
 0x31f   :  { %1024 = vrcp.f32 %v156_v7 }
 0x325   :  { %v194_v8 = vpop.f32.mrf.mxu2  ;;  %v1025_v10 = vpop.eup %1024 }
 0x326   :  { %v159_v9 = vpop.xlane.xlu2 %158  ;;  %v166_v17 = vmul.f32 %v1025_v10, %v1021_v60 }
 0x327   :  { %1026 = vrcp.f32 %v159_v9 }
 0x32d   :  { %v1027_v12 = vpop.eup %1026  ;;  %v196_v14 = vpop.f32.mrf.mxu2 }
 0x32e   :  { %v204_v15 = vpack.c.bf16 %v196_v14, %v194_v8  ;;  %v248_v16 = vpop.permute.xlu2 %247  ;;  %v167_v18 = vmul.f32 %v1027_v12, %v1023_v62 }
 0x32f   :  { %v259_v19 = vsel %vm90_vm1, %v248_v16, 0 }
 0x330   :  { %963 = vmatmul.msk.bf16.vlgmr.msrb.gmra.mxu1 %vm90_vm1, %v204_v15  ;;  %267 = vmatpush.bf16.xpose.msrb.mxu3 %v259_v19  ;;  %v169_v0 = vpack.c.bf16 %v167_v18, %v166_v17 }
 0x332   :  { %958 = vmatmul.msk.bf16.gmra.mxu2 %vm122_vm3, %v169_v0 }
 0x338   :  { %268 = vmatpush.bf16.xpose.msrb.mxu3 %v256_v21 }
 0x340   :  { %979 = vmatmul.msk.bf16.vlgmr.msra.gmra.mxu1 %vm56_vm0, %v515_v25 }
 0x350   :  { %980 = vmatmul.msk.bf16.gmra.mxu1 %vm56_vm0, %v516_v28 }
 0x3ad   :  { %v1274_v30 = vpop.f32.mrf.mxu1 }
 0x3b5   :  { %v199_v31 = vpop.f32.mrf.mxu2  ;;  %v1276_v32 = vpop.f32.mrf.mxu1 }
 0x3bd   :  { %v201_v33 = vpop.f32.mrf.mxu2  ;;  %v532_v34 = vpop.f32.mrf.mxu1 }
 0x3be   :  { %v205_v35 = vpack.c.bf16 %v201_v33, %v199_v31 }
 0x3c0   :  { %964 = vmatmul.msk.bf16.vlgmr.msra.gmra.mxu3 %vm90_vm1, %v205_v35 }
 0x3c5   :  { %v534_v36 = vpop.f32.mrf.mxu1 }
 0x3c6   :  { %v1279_v37 = vpack.c.bf16 %v534_v36, %v532_v34 }
 0x3c8   :  { %546 = vrot.lane.b32.xlu1 %v1279_v37, %s1094_s8 }
 0x3cd   :  { %v537_v38 = vpop.f32.mrf.mxu1 }
 0x3d0   :  { %691 = vrot.lane.b32.xlu1 %v1279_v37, %s1097_s17  ;;  %965 = vmatmul.msk.bf16.vlgmr.msrb.gmra.mxu3 %vm90_vm1, %v242_v39 }
 0x3d5   :  { %v539_v40 = vpop.f32.mrf.mxu1 }
 0x3d6   :  { %v1286_v41 = vpack.c.bf16 %v539_v40, %v537_v38 }
 0x3d8   :  { %697 = vrot.lane.b32.xlu0 %v1286_v41, %s1096_s16  ;;  %548 = vrot.lane.b32.xlu2 %v1286_v41, %s1094_s8 }
 0x3e0   :  { %695 = vrot.lane.b32.xlu2 %v1279_v37, %s1096_s16  ;;  %966 = vmatmul.msk.bf16.gmra.mxu3 %vm90_vm1, %v244_v42 }
 0x3e8   :  { %693 = vrot.lane.b32.xlu2 %v1286_v41, %s1097_s17 }
 0x432   :  { %v549_v44 = vpop.permute.xlu2 %548 }
 0x433   :  { %v560_v45 = vsel %vm90_vm1, %v549_v44, 0 }
 0x434   :  { %568 = vmatpush.bf16.xpose.msra.mxu3 %v560_v45 }
 0x43a   :  { %v547_v46 = vpop.permute.xlu1 %546  ;;  %v696_v52 = vpop.permute.xlu2 %695 }
 0x43b   :  { %v557_v47 = vsel %vm90_vm1, %v547_v46, 0  ;;  %v706_v53 = vsel %vm90_vm1, %v696_v52, 0 }
 0x43c   :  { %569 = vmatpush.bf16.xpose.msra.mxu3 %v557_v47 }
 0x442   :  { %v692_v57 = vpop.permute.xlu1 %691  ;;  %v694_v7 = vpop.permute.xlu2 %693 }
 0x443   :  { %v1299_v48 = vpop.f32.mrf.mxu3  ;;  %981 = vmatmul.msk.bf16.vlgmr.msra.gmra.mxu3 %vm90_vm1, %v1279_v37 }
 0x44a   :  { %v698_v49 = vpop.permute.xlu0 %697 }
 0x44b   :  { %v709_v50 = vsel %vm90_vm1, %v698_v49, 0  ;;  %v1304_v51 = vpop.f32.mrf.mxu3 }
 0x44c   :  { %717 = vmatpush.bf16.xpose.msrb.mxu1 %v709_v50 }
 0x453   :  { %v270_v54 = vpop.f32.mrf.mxu3  ;;  %982 = vmatmul.msk.bf16.gmra.mxu3 %vm90_vm1, %v1286_v41 }
 0x454   :  { %v271_v55 = vadd.f32 %v270_v54, %v1195_v20  ;;  %718 = vmatpush.bf16.xpose.msrb.mxu1 %v706_v53 }
 0x456   :  { %v280_v56 = vsel %vm122_vm3, %v271_v55, -inf }
 0x457   :  { %281 = vmax.xlane.f32.xlu1 %v280_v56 }
 0x45b   :  { %v272_v58 = vpop.f32.mrf.mxu3  ;;  %987 = vmatmul.msk.bf16.vlgmr.msrb.gmra.mxu1 %vm90_vm1, %v692_v57 }
 0x45c   :  { %v273_v59 = vadd.f32 %v272_v58, %v1202_v24 }
 0x45e   :  { %v283_v60 = vsel %vm122_vm3, %v273_v59, -inf }
 0x45f   :  { %284 = vmax.xlane.f32.xlu0 %v283_v60 }
 0x463   :  { %v275_v61 = vpop.f32.mrf.mxu3 }
 0x464   :  { %v276_v62 = vadd.f32 %v275_v61, %v1226_v43 }
 0x466   :  { %v286_v63 = vsel %vm122_vm3, %v276_v62, -inf }
 0x467   :  { %287 = vmax.xlane.f32.xlu2 %v286_v63 }
 0x46b   :  { %v277_v8 = vpop.f32.mrf.mxu3  ;;  %988 = vmatmul.msk.bf16.gmra.mxu1 %vm90_vm1, %v694_v7 }
 0x46c   :  { %v278_v9 = vadd.f32 %v277_v8, %v1209_v29 }
 0x46e   :  { %v289_v10 = vsel %vm132_vm4, %v278_v9, -inf }
 0x46f   :  { %290 = vmax.xlane.f32.xlu1 %v289_v10 }
 0x47f   :  { %328 = vrot.lane.b32.xlu2 %v1175_v11, %s1098_s0 }
 0x4c6   :  { %v571_v12 = vpop.f32.mrf.mxu3 }
 0x4c7   :  { %v572_v45 = vadd.f32 %v571_v12, %v1195_v20 }
 0x4c9   :  { %v581_v52 = vsel %vm122_vm3, %v572_v45, -inf }
 0x4ca   :  { %v282_v14 = vpop.xlane.xlu1 %281 }
 0x4cb   :  { %v292_v15 = vsub.f32 %v271_v55, %v282_v14 }
 0x4cd   :  { %v296_v16 = vmul.f32 1.442695, %v292_v15 }
 0x4ce   :  { %v573_v17 = vpop.f32.mrf.mxu3 }
 0x4cf   :  { %1028 = vpow2.f32 %v296_v16  ;;  %v574_v18 = vadd.f32 %v573_v17, %v1202_v24 }
 0x4d1   :  { %v584_v19 = vsel %vm122_vm3, %v574_v18, -inf }
 0x4d2   :  { %585 = vmax.xlane.f32.xlu2 %v584_v19  ;;  %v285_v0 = vpop.xlane.xlu0 %284 }
 0x4d3   :  { %v293_v1 = vsub.f32 %v273_v59, %v285_v0 }
 0x4d5   :  { %v1323_v21 = vpop.eup %1028  ;;  %v298_v25 = vmul.f32 1.442695, %v293_v1 }
 0x4d6   :  { %v576_v28 = vpop.f32.mrf.mxu3  ;;  %v304_v11 = vsel %vm122_vm3, %v1323_v21, 0.0 }
 0x4d7   :  { %1030 = vpow2.f32 %v298_v25  ;;  %v1328_v31 = vadd.f32 %v576_v28, %v1226_v43  ;;  %305 = vadd.xlane.f32.xlu1 %v304_v11 }
 0x4d8   :  { %v720_v33 = vpop.f32.mrf.mxu1 }
 0x4d9   :  { %v587_v34 = vsel %vm122_vm3, %v1328_v31, -inf  ;;  %v721_v35 = vadd.f32 %v720_v33, %v1195_v20 }
 0x4da   :  { %588 = vmax.xlane.f32.xlu2 %v587_v34  ;;  %v288_v36 = vpop.xlane.xlu2 %287 }
 0x4db   :  { %v730_v39 = vsel %vm122_vm3, %v721_v35, -inf  ;;  %v294_v55 = vsub.f32 %v276_v62, %v288_v36 }
 0x4dd   :  { %v1333_v38 = vpop.eup %1030  ;;  %v300_v57 = vmul.f32 1.442695, %v294_v55 }
 0x4de   :  { %v307_v40 = vsel %vm122_vm3, %v1333_v38, 0.0  ;;  %v578_v42 = vpop.f32.mrf.mxu3 }
 0x4df   :  { %731 = vmax.xlane.f32.xlu1 %v730_v39  ;;  %308 = vadd.xlane.f32.xlu0 %v307_v40  ;;  %v1340_v46 = vadd.f32 %v578_v42, %v1209_v29  ;;  %1032 = vpow2.f32 %v300_v57 }
 0x4e0   :  { %v722_v44 = vpop.f32.mrf.mxu1 }
 0x4e1   :  { %v590_v50 = vsel %vm132_vm4, %v1340_v46, -inf  ;;  %v723_v54 = vadd.f32 %v722_v44, %v1202_v24 }
 0x4e2   :  { %v329_v47 = vpop.permute.xlu2 %328  ;;  %v291_v59 = vpop.xlane.xlu1 %290 }
 0x4e3   :  { %v338_v49 = vsel %vm181_vm2, %v329_v47, 0  ;;  %v733_v20 = vsel %vm122_vm3, %v723_v54, -inf  ;;  %v295_v63 = vsub.f32 %v278_v9, %v291_v59 }
 0x4e4   :  { %346 = vmatpush.bf16.msrb.mxu0 %v338_v49 }
 0x4e5   :  { %v302_v62 = vmul.f32 1.442695, %v295_v63  ;;  %v1355_v7 = vpop.eup %1032 }
 0x4e7   :  { %591 = vmax.xlane.f32.xlu1 %v590_v50  ;;  %582 = vmax.xlane.f32.xlu0 %v581_v52  ;;  %1034 = vpow2.f32 %v302_v62 }
 0x4e8   :  { %v725_v53 = vpop.f32.mrf.mxu1 }
 0x4e9   :  { %v726_v60 = vadd.f32 %v725_v53, %v1226_v43 }
 0x4eb   :  { %v736_v24 = vsel %vm122_vm3, %v726_v60, -inf }
 0x4ed   :  { %v1361_v43 = vpop.eup %1034 }
 0x4ee   :  { %v313_v8 = vsel %vm132_vm4, %v1361_v43, 0.0 }
 0x4ef   :  { %734 = vmax.xlane.f32.xlu0 %v733_v20 }
 0x4f0   :  { %v727_v56 = vpop.f32.mrf.mxu1 }
 0x4f1   :  { %v1349_v58 = vadd.f32 %v727_v56, %v1209_v29  ;;  %v310_v29 = vsel %vm122_vm3, %v1355_v7, 0.0 }
 0x4f3   :  { %v739_v61 = vsel %vm132_vm4, %v1349_v58, -inf }
 0x4f4   :  { %740 = vmax.xlane.f32.xlu2 %v739_v61 }
 0x4f7   :  { %737 = vmax.xlane.f32.xlu0 %v736_v24 }
 0x4ff   :  { %311 = vadd.xlane.f32.xlu0 %v310_v29 }
 0x500   :  { %326 = vrot.lane.b32.xlu1 %v1179_v13, %s1098_s0 }
 0x507   :  { %314 = vadd.xlane.f32.xlu0 %v313_v8 }
 0x51b   :  { %629 = vrot.lane.b32.xlu0 %v1286_v41, %s1095_s9 }
 0x523   :  { %778 = vrot.lane.b32.xlu0 %v1286_v41, %s1098_s0 }
 0x545   :  { %v586_v9 = vpop.xlane.xlu2 %585 }
 0x546   :  { %v594_v10 = vsub.f32 %v574_v18, %v586_v9 }
 0x548   :  { %v599_v12 = vmul.f32 1.442695, %v594_v10 }
 0x54a   :  { %1036 = vpow2.f32 %v599_v12  ;;  %v306_v14 = vpop.xlane.xlu1 %305 }
 0x54d   :  { %v589_v13 = vpop.xlane.xlu2 %588 }
 0x54e   :  { %v595_v1 = vsub.f32 %v1328_v31, %v589_v13 }
 0x550   :  { %v1369_v15 = vpop.eup %1036  ;;  %v601_v41 = vmul.f32 1.442695, %v595_v1 }
 0x551   :  { %v608_v16 = vsel %vm122_vm3, %v1369_v15, 0.0 }
 0x552   :  { %609 = vadd.xlane.f32.xlu2 %v608_v16  ;;  %v732_v17 = vpop.xlane.xlu1 %731  ;;  %v309_v19 = vpop.xlane.xlu0 %308 }
 0x553   :  { %v742_v0 = vsub.f32 %v721_v35, %v732_v17 }
 0x555   :  { %v746_v25 = vmul.f32 1.442695, %v742_v0 }
 0x557   :  { %1038 = vpow2.f32 %v746_v25 }
 0x558   :  { %1040 = vpow2.f32 %v601_v41  ;;  %v1000_v41 = vld [vmem:[%s1597_s2 + $0x8] sm:$0xff] }
 0x559   :  { %380 = vmatpush.bf16.msra.mxu2 %v1000_v41 }
 0x55a   :  { %v583_v28 = vpop.xlane.xlu0 %582 }
 0x55b   :  { %v593_v18 = vsub.f32 %v572_v45, %v583_v28  ;;  %v592_v45 = vpop.xlane.xlu1 %591 }
 0x55c   :  { %v596_v0 = vsub.f32 %v1340_v46, %v592_v45 }
 0x55d   :  { %v1374_v11 = vpop.eup %1038  ;;  %v597_v33 = vmul.f32 1.442695, %v593_v18  ;;  %675 = vmatpush.bf16.msrb.mxu2 %v1238_v6 }
 0x55e   :  { %v754_v34 = vsel %vm122_vm3, %v1374_v11, 0.0  ;;  %v1378_v39 = vpop.eup %1040  ;;  %v603_v1 = vmul.f32 1.442695, %v596_v0 }
 0x55f   :  { %755 = vadd.xlane.f32.xlu1 %v754_v34  ;;  %1042 = vpow2.f32 %v597_v33  ;;  %v611_v42 = vsel %vm122_vm3, %v1378_v39, 0.0 }
 0x560   :  { %1044 = vrcp.f32 %v309_v19 }
 0x562   :  { %v735_v36 = vpop.xlane.xlu0 %734 }
 0x563   :  { %v743_v35 = vsub.f32 %v723_v54, %v735_v36 }
 0x565   :  { %v748_v40 = vmul.f32 1.442695, %v743_v35  ;;  %v1380_v31 = vpop.eup %1042 }
 0x566   :  { %v605_v44 = vsel %vm122_vm3, %v1380_v31, 0.0  ;;  %v1045_v52 = vpop.eup %1044 }
 0x567   :  { %1046 = vpow2.f32 %v748_v40  ;;  %612 = vadd.xlane.f32.xlu1 %v611_v42  ;;  %606 = vadd.xlane.f32.xlu0 %v605_v44  ;;  %v741_v47 = vpop.xlane.xlu2 %740  ;;  %v321_v57 = vmul.f32 %v1045_v52, %v1333_v38 }
 0x568   :  { %1048 = vrcp.f32 %v306_v14  ;;  %v745_v54 = vsub.f32 %v1349_v58, %v741_v47 }
 0x56a   :  { %627 = vrot.lane.b32.xlu2 %v1279_v37, %s1095_s9  ;;  %v738_v49 = vpop.xlane.xlu0 %737  ;;  %v752_v59 = vmul.f32 1.442695, %v745_v54 }
 0x56b   :  { %v744_v50 = vsub.f32 %v726_v60, %v738_v49 }
 0x56d   :  { %v1388_v53 = vpop.eup %1046  ;;  %v750_v55 = vmul.f32 1.442695, %v744_v50 }
 0x56e   :  { %v757_v20 = vsel %vm122_vm3, %v1388_v53, 0.0  ;;  %v1049_v56 = vpop.eup %1048 }
 0x56f   :  { %1050 = vpow2.f32 %v750_v55  ;;  %758 = vadd.xlane.f32.xlu0 %v757_v20  ;;  %v320_v61 = vmul.f32 %v1049_v56, %v1323_v21 }
 0x570   :  { %1052 = vpow2.f32 %v752_v59 }
 0x571   :  { %v324_v60 = vpack.c.bf16 %v321_v57, %v320_v61 }
 0x572   :  { %v327_v63 = vpop.permute.xlu1 %326  ;;  %v312_v24 = vpop.xlane.xlu0 %311 }
 0x573   :  { %347 = vmatpush.bf16.msrb.mxu0 %v327_v63  ;;  %1054 = vrcp.f32 %v312_v24 }
 0x575   :  { %v1395_v62 = vpop.eup %1050 }
 0x576   :  { %967 = vmatmul.msk.bf16.vlgmr.msrb.gmra.mxu0 %vm122_vm3, %v324_v60  ;;  %v760_v58 = vsel %vm122_vm3, %v1395_v62, 0.0  ;;  %v1400_v38 = vpop.eup %1052 }
 0x577   :  { %761 = vadd.xlane.f32.xlu1 %v760_v58  ;;  %v763_v21 = vsel %vm132_vm4, %v1400_v38, 0.0 }
 0x579   :  { %v1055_v8 = vpop.eup %1054 }
 0x57a   :  { %v315_v29 = vpop.xlane.xlu0 %314  ;;  %v322_v10 = vmul.f32 %v1055_v8, %v1355_v7 }
 0x57b   :  { %1056 = vrcp.f32 %v315_v29 }
 0x57c   :  { %1058 = vpow2.f32 %v603_v1 }
 0x57f   :  { %764 = vadd.xlane.f32.xlu1 %v763_v21 }
 0x581   :  { %v1057_v9 = vpop.eup %1056 }
 0x582   :  { %v323_v12 = vmul.f32 %v1057_v9, %v1361_v43  ;;  %v1059_v7 = vpop.eup %1058 }
 0x583   :  { %776 = vrot.lane.b32.xlu0 %v1279_v37, %s1098_s0  ;;  %v614_v43 = vsel %vm132_vm4, %v1059_v7, 0.0 }
 0x584   :  { %v325_v14 = vpack.c.bf16 %v323_v12, %v322_v10  ;;  %v237_v12 = vadd.f32 %v1274_v30, %v1160_v4  ;;  %v239_v4 = vadd.f32 %v1299_v48, %v1148_v2 }
 0x586   :  { %968 = vmatmul.msk.bf16.gmra.mxu0 %vm122_vm3, %v325_v14 }
 0x58d   :  { %v630_v13 = vpop.permute.xlu0 %629 }
 0x58e   :  { %v639_v16 = vsel %vm181_vm2, %v630_v13, 0 }
 0x58f   :  { %647 = vmatpush.bf16.msra.mxu0 %v639_v16 }
 0x595   :  { %v779_v17 = vpop.permute.xlu0 %778 }
 0x596   :  { %v788_v19 = vsel %vm181_vm2, %v779_v17, 0 }
 0x597   :  { %796 = vmatpush.bf16.msrb.mxu3 %v788_v19  ;;  %v238_v19 = vadd.f32 %v1276_v32, %v1165_v5 }
 0x5ad   :  { %615 = vadd.xlane.f32.xlu0 %v614_v43 }
 0x5c5   :  { %v610_v37 = vpop.xlane.xlu2 %609 }
 0x5c6   :  { %1060 = vrcp.f32 %v610_v37 }
 0x5cc   :  { %v1061_v46 = vpop.eup %1060 }
 0x5cd   :  { %v628_v25 = vpop.permute.xlu2 %627  ;;  %v622_v34 = vmul.f32 %v1061_v46, %v1369_v15 }
 0x5ce   :  { %648 = vmatpush.bf16.msra.mxu0 %v628_v25 }
 0x5d2   :  { %v756_v18 = vpop.xlane.xlu1 %755  ;;  %824 = vmatpush.bf16.msrb.mxu0 %v1000_v41  ;;  %v240_v41 = vadd.f32 %v1304_v51, %v1155_v3 }
 0x5da   :  { %v607_v28 = vpop.xlane.xlu0 %606  ;;  %v613_v40 = vpop.xlane.xlu1 %612 }
 0x5db   :  { %1062 = vrcp.f32 %v607_v28 }
 0x5e1   :  { %v1063_v33 = vpop.eup %1062 }
 0x5e2   :  { %v621_v36 = vmul.f32 %v1063_v33, %v1380_v31  ;;  %v759_v42 = vpop.xlane.xlu0 %758 }
 0x5e3   :  { %1064 = vrcp.f32 %v759_v42 }
 0x5e4   :  { %v625_v35 = vpack.c.bf16 %v622_v34, %v621_v36  ;;  %1066 = vrcp.f32 %v756_v18  ;;  %v1099_v34 = vmov 32.0  }
 0x5e6   :  { %983 = vmatmul.msk.bf16.vlgmr.msra.gmra.mxu0 %vm122_vm3, %v625_v35 }
 0x5e9   :  { %v1065_v45 = vpop.eup %1064 }
 0x5ea   :  { %v762_v44 = vpop.xlane.xlu1 %761  ;;  %v1067_v47 = vpop.eup %1066  ;;  %v771_v50 = vmul.f32 %v1065_v45, %v1388_v53 }
 0x5eb   :  { %v770_v6 = vmul.f32 %v1067_v47, %v1374_v11 }
 0x5ed   :  { %v774_v15 = vpack.c.bf16 %v771_v50, %v770_v6 }
 0x5f2   :  { %v765_v54 = vpop.xlane.xlu1 %764 }
 0x5f3   :  { %v349_v49 = vpop.f32.mrf.mxu0  ;;  %1068 = vrcp.f32 %v765_v54 }
 0x5f4   :  { %1070 = vrcp.f32 %v762_v44 }
 0x5f5   :  { %v777_v52 = vpop.permute.xlu0 %776  ;;  %1072 = vrcp.f32 %v613_v40 }
 0x5f6   :  { %797 = vmatpush.bf16.msrb.mxu3 %v777_v52 }
 0x5f9   :  { %989 = vmatmul.msk.bf16.vlgmr.msrb.gmra.mxu3 %vm122_vm3, %v774_v15  ;;  %v1069_v20 = vpop.eup %1068 }
 0x5fa   :  { %v1071_v56 = vpop.eup %1070  ;;  %v773_v59 = vmul.f32 %v1069_v20, %v1400_v38 }
 0x5fb   :  { %v351_v31 = vpop.f32.mrf.mxu0  ;;  %v772_v53 = vmul.f32 %v1071_v56, %v1395_v62  ;;  %v1073_v60 = vpop.eup %1072 }
 0x5fc   :  { %v359_v55 = vpack.c.bf16 %v351_v31, %v349_v49  ;;  %v623_v29 = vmul.f32 %v1073_v60, %v1378_v39 }
 0x5fd   :  { %v775_v11 = vpack.c.bf16 %v773_v59, %v772_v53 }
 0x5fe   :  { %973 = vmatmul.msk.bf16.vlgmr.msra.gmra.mxu2 %vm90_vm1, %v359_v55 }
 0x603   :  { %v354_v57 = vpop.f32.mrf.mxu0 }
 0x609   :  { %990 = vmatmul.msk.bf16.gmra.mxu3 %vm122_vm3, %v775_v11 }
 0x60b   :  { %v356_v61 = vpop.f32.mrf.mxu0 }
 0x60c   :  { %v360_v63 = vpack.c.bf16 %v356_v61, %v354_v57 }
 0x60e   :  { %974 = vmatmul.msk.bf16.gmra.mxu2 %vm90_vm1, %v360_v63 }
 0x620   :  { %v616_v24 = vpop.xlane.xlu0 %615 }
 0x621   :  { %1074 = vrcp.f32 %v616_v24 }
 0x622   :  { %1076 = vrcp.f32 %v1099_v34  ;;  %v1507_v34 = vld [vmem:[%s1598_s4] ss:$0 sm:$0xff] }
 0x627   :  { %v1075_v58 = vpop.eup %1074 }
 0x628   :  { %v624_v21 = vmul.f32 %v1075_v58, %v1059_v7  ;;  %v1077_v36 = vpop.eup %1076 }
 0x629   :  { %v410_v35 = vmul.f32 32.0, %v1077_v36  ;;  %vm414_vm6 = vweird.f32 %v1077_v36 }
 0x62a   :  { %v626_v8 = vpack.c.bf16 %v624_v21, %v623_v29 }
 0x62b   :  { %v411_v40 = vsub.f32 1.0, %v410_v35 }
 0x62c   :  { %984 = vmatmul.msk.bf16.gmra.mxu0 %vm122_vm3, %v626_v8 }
 0x62d   :  { %v412_v42 = vmul.f32 %v1077_v36, %v411_v40  ;;  %v1514_v40 = vld [vmem:[%s1599_s5] ss:$0 sm:$0xff] }
 0x62f   :  { %v413_v3 = vadd.f32 %v1077_v36, %v412_v42 }
 0x631   :  { %v1452_v51 = vsel %vm414_vm6, %v1077_v36, %v413_v3 }
 0x663   :  { %v650_v38 = vpop.f32.mrf.mxu0 }
 0x66b   :  { %v652_v62 = vpop.f32.mrf.mxu0 }
 0x66c   :  { %v660_v9 = vpack.c.bf16 %v652_v62, %v650_v38 }
 0x66e   :  { %985 = vmatmul.msk.bf16.vlgmr.msrb.gmra.mxu2 %vm90_vm1, %v660_v9 }
 0x67c   :  { %v799_v10 = vpop.f32.mrf.mxu3 }
 0x681   :  { %v382_v14 = vpop.f32.mrf.mxu2 }
 0x682   :  { %v392_v13 = vadd.f32 %v382_v14, %v237_v12 }
 0x684   :  { %v396_v16 = vsel %vm56_vm0, %v392_v13, 0.0  ;;  %v801_v17 = vpop.f32.mrf.mxu3 }
 0x685   :  { %397 = vadd.xlane.f32.xlu2 %v396_v16  ;;  %v809_v39 = vpack.c.bf16 %v801_v17, %v799_v10 }
 0x687   :  { %991 = vmatmul.msk.bf16.vlgmr.msrb.gmra.mxu0 %vm90_vm1, %v809_v39 }
 0x689   :  { %v384_v0 = vpop.f32.mrf.mxu2 }
 0x68a   :  { %v1437_v1 = vadd.f32 %v384_v0, %v238_v19 }
 0x68c   :  { %v399_v7 = vsel %vm56_vm0, %v1437_v1, 0.0  ;;  %v804_v43 = vpop.f32.mrf.mxu3 }
 0x68d   :  { %400 = vadd.xlane.f32.xlu1 %v399_v7 }
 0x691   :  { %v387_v30 = vpop.f32.mrf.mxu2 }
 0x692   :  { %v1443_v37 = vadd.f32 %v387_v30, %v239_v4 }
 0x694   :  { %v402_v25 = vsel %vm56_vm0, %v1443_v37, 0.0  ;;  %v806_v5 = vpop.f32.mrf.mxu3 }
 0x695   :  { %403 = vadd.xlane.f32.xlu1 %v402_v25  ;;  %v810_v32 = vpack.c.bf16 %v806_v5, %v804_v43 }
 0x697   :  { %992 = vmatmul.msk.bf16.gmra.mxu0 %vm90_vm1, %v810_v32 }
 0x699   :  { %v389_v28 = vpop.f32.mrf.mxu2 }
 0x69a   :  { %v395_v18 = vadd.f32 %v389_v28, %v240_v41 }
 0x69c   :  { %v406_v46 = vsel %vm405_vm5, %v395_v18, 0.0 }
 0x69d   :  { %407 = vadd.xlane.f32.xlu1 %v406_v46 }
 0x6a9   :  { %v655_v2 = vpop.f32.mrf.mxu0 }
 0x6b1   :  { %v657_v48 = vpop.f32.mrf.mxu0 }
 0x6b2   :  { %v661_v33 = vpack.c.bf16 %v657_v48, %v655_v2 }
 0x6b4   :  { %986 = vmatmul.msk.bf16.gmra.mxu2 %vm90_vm1, %v661_v33 }
 0x6f1   :  { %v677_v50 = vpop.f32.mrf.mxu2 }
 0x6f2   :  { %v687_v15 = vadd.f32 %v1251_v22, %v677_v50 }
 0x6f8   :  { %v398_v44 = vpop.xlane.xlu2 %397 }
 0x6f9   :  { %v416_v45 = vmul.f32 %v1452_v51, %v398_v44  ;;  %v679_v56 = vpop.f32.mrf.mxu2 }
 0x6fa   :  { %v688_v57 = vadd.f32 %v1256_v23, %v679_v56 }
 0x6fb   :  { %v1455_v47 = vsub.f32 %v392_v13, %v416_v45 }
 0x6fd   :  { %v424_v49 = vmul.f32 %v1455_v47, %v1455_v47 }
 0x6ff   :  { %v428_v6 = vsel %vm56_vm0, %v424_v49, 0.0 }
 0x700   :  { %429 = vadd.xlane.f32.xlu2 %v428_v6  ;;  %v401_v52 = vpop.xlane.xlu1 %400 }
 0x701   :  { %v417_v23 = vmul.f32 %v1452_v51, %v401_v52 }
 0x703   :  { %v1475_v38 = vsub.f32 %v1437_v1, %v417_v23 }
 0x704   :  { %v826_v54 = vpop.f32.mrf.mxu0 }
 0x705   :  { %v836_v31 = vadd.f32 %v826_v54, %v687_v15  ;;  %v425_v14 = vmul.f32 %v1475_v38, %v1475_v38 }
 0x707   :  { %v840_v20 = vsel %vm56_vm0, %v836_v31, 0.0  ;;  %v431_v17 = vsel %vm56_vm0, %v425_v14, 0.0 }
 0x708   :  { %v404_v55 = vpop.xlane.xlu1 %403  ;;  %841 = vadd.xlane.f32.xlu0 %v840_v20 }
 0x709   :  { %v418_v10 = vmul.f32 %v1452_v51, %v404_v55 }
 0x70c   :  { %v828_v59 = vpop.f32.mrf.mxu0 }
 0x70d   :  { %v837_v53 = vadd.f32 %v828_v59, %v688_v57 }
 0x70f   :  { %v843_v61 = vsel %vm56_vm0, %v837_v53, 0.0 }
 0x710   :  { %v408_v11 = vpop.xlane.xlu1 %407  ;;  %844 = vadd.xlane.f32.xlu1 %v843_v61 }
 0x711   :  { %v419_v63 = vmul.f32 %v1452_v51, %v408_v11 }
 0x713   :  { %v1465_v24 = vsub.f32 %v395_v18, %v419_v63 }
 0x714   :  { %v831_v58 = vpop.f32.mrf.mxu0 }
 0x715   :  { %v427_v22 = vmul.f32 %v1465_v24, %v1465_v24 }
 0x717   :  { %v437_v60 = vsel %vm405_vm5, %v427_v22, 0.0 }
 0x718   :  { %438 = vadd.xlane.f32.xlu2 %v437_v60 }
 0x71c   :  { %v833_v13 = vpop.f32.mrf.mxu0 }
 0x737   :  { %v682_v29 = vpop.f32.mrf.mxu2 }
 0x738   :  { %v689_v21 = vadd.f32 %v1264_v26, %v682_v29  ;;  %v1486_v26 = vsub.f32 %v1443_v37, %v418_v10 }
 0x73a   :  { %v1472_v8 = vadd.f32 %v831_v58, %v689_v21  ;;  %v426_v19 = vmul.f32 %v1486_v26, %v1486_v26 }
 0x73c   :  { %v846_v62 = vsel %vm56_vm0, %v1472_v8, 0.0 }
 0x73d   :  { %847 = vadd.xlane.f32.xlu0 %v846_v62 }
 0x73f   :  { %v684_v9 = vpop.f32.mrf.mxu2 }
 0x740   :  { %v690_v12 = vadd.f32 %v1269_v27, %v684_v9  ;;  %v434_v27 = vsel %vm56_vm0, %v426_v19, 0.0 }
 0x742   :  { %v1483_v16 = vadd.f32 %v833_v13, %v690_v12 }
 0x744   :  { %v849_v39 = vsel %vm405_vm5, %v1483_v16, 0.0 }
 0x745   :  { %432 = vadd.xlane.f32.xlu0 %v431_v17  ;;  %850 = vadd.xlane.f32.xlu1 %v849_v39 }
 0x74d   :  { %435 = vadd.xlane.f32.xlu1 %v434_v27 }
 0x773   :  { %v430_v0 = vpop.xlane.xlu2 %429 }
 0x774   :  { %v440_v1 = vmul.f32 %v430_v0, %v1452_v51 }
 0x776   :  { %v444_v7 = vadd.f32 1e-06, %v440_v1 }
 0x778   :  { %1078 = vrsqrt.f32 %v444_v7  ;;  %vm454_vm8 = vweird.f32 %v444_v7 }
 0x77b   :  { %v842_v43 = vpop.xlane.xlu0 %841 }
 0x77c   :  { %v852_v4 = vmul.f32 %v842_v43, %v1452_v51 }
 0x77e   :  { %v1079_v30 = vpop.eup %1078  ;;  %v1496_v25 = vsub.f32 %v836_v31, %v852_v4 }
 0x77f   :  { %v449_v37 = vmul.f32 %v1079_v30, %v444_v7  ;;  %vm455_vm7 = vweird.f32 %v1079_v30 }
 0x780   :  { %v860_v32 = vmul.f32 %v1496_v25, %v1496_v25  ;;  %vm456_vm9 = vmor %vm454_vm8, %vm455_vm7 }
 0x781   :  { %v450_v5 = vmul.f32 %v1079_v30, %v449_v37 }
 0x782   :  { %v864_v28 = vsel %vm56_vm0, %v860_v32, 0.0 }
 0x783   :  { %v451_v41 = vmul.f32 0.5, %v450_v5  ;;  %v845_v18 = vpop.xlane.xlu1 %844  ;;  %865 = vadd.xlane.f32.xlu0 %v864_v28 }
 0x784   :  { %v853_v2 = vmul.f32 %v845_v18, %v1452_v51 }
 0x785   :  { %v452_v46 = vsub.f32 1.5, %v451_v41 }
 0x786   :  { %v1502_v33 = vsub.f32 %v837_v53, %v853_v2 }
 0x787   :  { %v453_v48 = vmul.f32 %v1079_v30, %v452_v46 }
 0x788   :  { %v861_v35 = vmul.f32 %v1502_v33, %v1502_v33 }
 0x789   :  { %v457_v36 = vsel %vm456_vm9, %v1079_v30, %v453_v48 }
 0x78a   :  { %v488_v42 = vmul.f32 %v457_v36, %v1455_v47  ;;  %v867_v44 = vsel %vm56_vm0, %v861_v35, 0.0 }
 0x78b   :  { %v439_v3 = vpop.xlane.xlu2 %438  ;;  %868 = vadd.xlane.f32.xlu1 %v867_v44 }
 0x78c   :  { %v495_v45 = vmul.f32 %v1507_v34, %v488_v42  ;;  %v443_v49 = vmul.f32 %v439_v3, %v1452_v51 }
 0x78e   :  { %v502_v50 = vadd.f32 %v1514_v40, %v495_v45  ;;  %v447_v6 = vadd.f32 1e-06, %v443_v49 }
 0x790   :  { %506 = vst.msk [vmem:[%s1600_s6] sm:$0xff] %vm56_vm0, %v502_v50  ;;  %1080 = vrsqrt.f32 %v447_v6  ;;  %vm484_vm11 = vweird.f32 %v447_v6 }
 0x796   :  { %v1081_v52 = vpop.eup %1080 }
 0x797   :  { %v479_v15 = vmul.f32 %v1081_v52, %v447_v6  ;;  %vm485_vm10 = vweird.f32 %v1081_v52 }
 0x798   :  { %vm486_vm12 = vmor %vm484_vm11, %vm485_vm10 }
 0x799   :  { %v480_v47 = vmul.f32 %v1081_v52, %v479_v15 }
 0x79b   :  { %v481_v54 = vmul.f32 0.5, %v480_v47 }
 0x79d   :  { %v482_v31 = vsub.f32 1.5, %v481_v54 }
 0x79f   :  { %v483_v55 = vmul.f32 %v1081_v52, %v482_v31 }
 0x7a1   :  { %v487_v20 = vsel %vm486_vm12, %v1081_v52, %v483_v55 }
 0x7a2   :  { %v491_v56 = vmul.f32 %v487_v20, %v1465_v24 }
 0x7a4   :  { %v498_v57 = vmul.f32 %v1507_v34, %v491_v56 }
 0x7a6   :  { %v505_v59 = vadd.f32 %v1514_v40, %v498_v57 }
 0x7a8   :  { %509 = vst.msk [vmem:[%s1600_s6 + $0x18] sm:$0x3f] %vm405_vm5, %v505_v59 }
 0x7b0   :  { %v848_v53 = vpop.xlane.xlu0 %847 }
 0x7b1   :  { %v854_v11 = vmul.f32 %v848_v53, %v1452_v51 }
 0x7b3   :  { %v1534_v61 = vsub.f32 %v1472_v8, %v854_v11 }
 0x7b5   :  { %v862_v63 = vmul.f32 %v1534_v61, %v1534_v61 }
 0x7b7   :  { %v870_v24 = vsel %vm56_vm0, %v862_v63, 0.0 }
 0x7b8   :  { %871 = vadd.xlane.f32.xlu2 %v870_v24  ;;  %v433_v22 = vpop.xlane.xlu0 %432  ;;  %v851_v60 = vpop.xlane.xlu1 %850 }
 0x7b9   :  { %v441_v58 = vmul.f32 %v433_v22, %v1452_v51  ;;  %v855_v29 = vmul.f32 %v851_v60, %v1452_v51 }
 0x7bb   :  { %v445_v23 = vadd.f32 1e-06, %v441_v58  ;;  %v1542_v21 = vsub.f32 %v1483_v16, %v855_v29 }
 0x7bd   :  { %1082 = vrsqrt.f32 %v445_v23  ;;  %v863_v8 = vmul.f32 %v1542_v21, %v1542_v21  ;;  %vm464_vm14 = vweird.f32 %v445_v23 }
 0x7bf   :  { %v873_v62 = vsel %vm405_vm5, %v863_v8, 0.0 }
 0x7c0   :  { %874 = vadd.xlane.f32.xlu0 %v873_v62  ;;  %v436_v9 = vpop.xlane.xlu1 %435 }
 0x7c1   :  { %v442_v10 = vmul.f32 %v436_v9, %v1452_v51 }
 0x7c3   :  { %v1083_v12 = vpop.eup %1082  ;;  %v446_v14 = vadd.f32 1e-06, %v442_v10 }
 0x7c4   :  { %v459_v13 = vmul.f32 %v1083_v12, %v445_v23  ;;  %vm465_vm13 = vweird.f32 %v1083_v12 }
 0x7c5   :  { %1084 = vrsqrt.f32 %v446_v14  ;;  %vm466_vm15 = vmor %vm464_vm14, %vm465_vm13  ;;  %vm474_vm2 = vweird.f32 %v446_v14 }
 0x7c6   :  { %v460_v17 = vmul.f32 %v1083_v12, %v459_v13 }
 0x7c8   :  { %v461_v39 = vmul.f32 0.5, %v460_v17 }
 0x7ca   :  { %v462_v19 = vsub.f32 1.5, %v461_v39 }
 0x7cb   :  { %v1085_v16 = vpop.eup %1084 }
 0x7cc   :  { %v463_v27 = vmul.f32 %v1083_v12, %v462_v19  ;;  %v469_v0 = vmul.f32 %v1085_v16, %v446_v14  ;;  %vm475_vm1 = vweird.f32 %v1085_v16 }
 0x7cd   :  { %vm476_vm3 = vmor %vm474_vm2, %vm475_vm1 }
 0x7ce   :  { %v467_v1 = vsel %vm466_vm15, %v1083_v12, %v463_v27  ;;  %v470_v7 = vmul.f32 %v1085_v16, %v469_v0 }
 0x7cf   :  { %v489_v43 = vmul.f32 %v467_v1, %v1475_v38 }
 0x7d0   :  { %v471_v4 = vmul.f32 0.5, %v470_v7 }
 0x7d1   :  { %v496_v30 = vmul.f32 %v1507_v34, %v489_v43 }
 0x7d2   :  { %v472_v37 = vsub.f32 1.5, %v471_v4 }
 0x7d3   :  { %v503_v5 = vadd.f32 %v1514_v40, %v496_v30 }
 0x7d4   :  { %v473_v32 = vmul.f32 %v1085_v16, %v472_v37 }
 0x7d5   :  { %507 = vst.msk [vmem:[%s1600_s6 + $0x8] sm:$0xff] %vm56_vm0, %v503_v5 }
 0x7d6   :  { %v477_v41 = vsel %vm476_vm3, %v1085_v16, %v473_v32 }
 0x7d7   :  { %v490_v28 = vmul.f32 %v477_v41, %v1486_v26 }
 0x7d9   :  { %v497_v38 = vmul.f32 %v1507_v34, %v490_v28 }
 0x7db   :  { %v504_v18 = vadd.f32 %v1514_v40, %v497_v38 }
 0x7dd   :  { %508 = vst.msk [vmem:[%s1600_s6 + $0x10] sm:$0xff] %vm56_vm0, %v504_v18 }
 0x7f6   :  { %v866_v46 = vpop.xlane.xlu0 %865 }
 0x7f7   :  { %v876_v2 = vmul.f32 %v866_v46, %v1452_v51 }
 0x7f9   :  { %v880_v48 = vadd.f32 1e-06, %v876_v2 }
 0x7fb   :  { %1086 = vrsqrt.f32 %v880_v48  ;;  %vm890_vm6 = vweird.f32 %v880_v48 }
 0x7fe   :  { %v869_v36 = vpop.xlane.xlu1 %868 }
 0x7ff   :  { %v877_v35 = vmul.f32 %v869_v36, %v1452_v51 }
 0x801   :  { %v1087_v42 = vpop.eup %1086  ;;  %v881_v3 = vadd.f32 1e-06, %v877_v35 }
 0x802   :  { %v885_v26 = vmul.f32 %v1087_v42, %v880_v48  ;;  %vm891_vm4 = vweird.f32 %v1087_v42 }
 0x803   :  { %1088 = vrsqrt.f32 %v881_v3  ;;  %vm892_vm7 = vmor %vm890_vm6, %vm891_vm4  ;;  %vm900_vm9 = vweird.f32 %v881_v3 }
 0x804   :  { %v886_v44 = vmul.f32 %v1087_v42, %v885_v26 }
 0x806   :  { %v887_v45 = vmul.f32 0.5, %v886_v44 }
 0x808   :  { %v888_v49 = vsub.f32 1.5, %v887_v45 }
 0x809   :  { %v1089_v50 = vpop.eup %1088 }
 0x80a   :  { %v889_v6 = vmul.f32 %v1087_v42, %v888_v49  ;;  %v895_v52 = vmul.f32 %v1089_v50, %v881_v3  ;;  %vm901_vm8 = vweird.f32 %v1089_v50 }
 0x80b   :  { %vm902_vm10 = vmor %vm900_vm9, %vm901_vm8 }
 0x80c   :  { %v893_v15 = vsel %vm892_vm7, %v1087_v42, %v889_v6  ;;  %v896_v47 = vmul.f32 %v1089_v50, %v895_v52 }
 0x80d   :  { %v924_v54 = vmul.f32 %v893_v15, %v1496_v25 }
 0x80e   :  { %v897_v31 = vmul.f32 0.5, %v896_v47 }
 0x80f   :  { %v928_v55 = vmul.f32 %v1507_v34, %v924_v54 }
 0x810   :  { %v898_v20 = vsub.f32 1.5, %v897_v31 }
 0x811   :  { %v932_v56 = vadd.f32 %v1514_v40, %v928_v55 }
 0x812   :  { %v899_v57 = vmul.f32 %v1089_v50, %v898_v20 }
 0x813   :  { %993 = vst.msk [vmem:[%s1600_s6 + $0x20] sm:$0xff] %vm56_vm0, %v932_v56 }
 0x814   :  { %v903_v59 = vsel %vm902_vm10, %v1089_v50, %v899_v57 }
 0x815   :  { %v925_v53 = vmul.f32 %v903_v59, %v1502_v33 }
 0x817   :  { %v929_v25 = vmul.f32 %v1507_v34, %v925_v53 }
 0x819   :  { %v933_v11 = vadd.f32 %v1514_v40, %v929_v25 }
 0x81b   :  { %994 = vst.msk [vmem:[%s1600_s6 + $0x28] sm:$0xff] %vm56_vm0, %v933_v11 }
 0x82b   :  { %v872_v63 = vpop.xlane.xlu2 %871 }
 0x82c   :  { %v878_v24 = vmul.f32 %v872_v63, %v1452_v51 }
 0x82e   :  { %v882_v22 = vadd.f32 1e-06, %v878_v24 }
 0x830   :  { %1090 = vrsqrt.f32 %v882_v22  ;;  %vm910_vm12 = vweird.f32 %v882_v22 }
 0x833   :  { %v875_v60 = vpop.xlane.xlu0 %874 }
 0x834   :  { %v879_v58 = vmul.f32 %v875_v60, %v1452_v51 }
 0x836   :  { %v1091_v29 = vpop.eup %1090  ;;  %v883_v23 = vadd.f32 1e-06, %v879_v58 }
 0x837   :  { %v905_v33 = vmul.f32 %v1091_v29, %v882_v22  ;;  %vm911_vm11 = vweird.f32 %v1091_v29 }
 0x838   :  { %1092 = vrsqrt.f32 %v883_v23  ;;  %vm912_vm13 = vmor %vm910_vm12, %vm911_vm11  ;;  %vm920_vm15 = vweird.f32 %v883_v23 }
 0x839   :  { %v906_v8 = vmul.f32 %v1091_v29, %v905_v33 }
 0x83b   :  { %v907_v62 = vmul.f32 0.5, %v906_v8 }
 0x83d   :  { %v908_v9 = vsub.f32 1.5, %v907_v62 }
 0x83e   :  { %v1093_v10 = vpop.eup %1092 }
 0x83f   :  { %v909_v12 = vmul.f32 %v1091_v29, %v908_v9  ;;  %v915_v14 = vmul.f32 %v1093_v10, %v883_v23  ;;  %vm921_vm14 = vweird.f32 %v1093_v10 }
 0x840   :  { %vm922_vm1 = vmor %vm920_vm15, %vm921_vm14 }
 0x841   :  { %v913_v13 = vsel %vm912_vm13, %v1091_v29, %v909_v12  ;;  %v916_v17 = vmul.f32 %v1093_v10, %v915_v14 }
 0x842   :  { %v926_v39 = vmul.f32 %v913_v13, %v1534_v61 }
 0x843   :  { %v917_v19 = vmul.f32 0.5, %v916_v17 }
 0x844   :  { %v930_v51 = vmul.f32 %v1507_v34, %v926_v39 }
 0x845   :  { %v918_v16 = vsub.f32 1.5, %v917_v19 }
 0x846   :  { %v934_v27 = vadd.f32 %v1514_v40, %v930_v51 }
 0x847   :  { %v919_v0 = vmul.f32 %v1093_v10, %v918_v16 }
 0x848   :  { %995 = vst.msk [vmem:[%s1600_s6 + $0x30] sm:$0xff] %vm56_vm0, %v934_v27 }
 0x849   :  { %v923_v1 = vsel %vm922_vm1, %v1093_v10, %v919_v0 }
 0x84a   :  { %v927_v7 = vmul.f32 %v923_v1, %v1542_v21 }
 0x84c   :  { %v931_v61 = vmul.f32 %v1507_v34, %v927_v7 }
 0x84e   :  { %v935_v43 = vadd.f32 %v1514_v40, %v931_v61 }
 0x850   :  { %996 = vst.msk [vmem:[%s1600_s6 + $0x38] sm:$0x3f] %vm405_vm5, %v935_v43 }

// kernel: encoder_forward.9
= control target key start
LH: loop header
LB: loop body
LE: loop exit
PB: predicated region body
PF: predicated region fallthrough
CT: control target
= control target key end

     0   :  { %vm64_vm0 = vcmask 261120   ;;  %s1319_s1 = inlined_call_operand.vmem [shape: bf16[32,64], index: 1, kind: input, shape index: {}]   ;;  %s1320_s0 = inlined_call_operand.vmem [shape: f32[2,30,32], index: 0, kind: input, shape index: {}]   ;;  %s1321_s2 = inlined_call_operand.vmem [shape: f32[1,64], index: 2, kind: input, shape index: {}]   ;;  %s1322_s4 = inlined_call_operand.vmem [shape: f32[1,32], index: 4, kind: input, shape index: {}]   ;;  %s1323_s3 = inlined_call_operand.vmem [shape: bf16[64,32], index: 3, kind: input, shape index: {}]   ;;  %s1324_s5 = inlined_call_operand.vmem [shape: f32[1,32], index: 5, kind: input, shape index: {}]   ;;  %s1325_s6 = inlined_call_operand.vmem [shape: f32[1,32], index: 6, kind: input, shape index: {}]   ;;  %s1326_s7 = inlined_call_operand.vmem [shape: f32[2,30,32], index: 7, kind: output, shape index: {}]  }
   0x1   :  { %v792_v0 = vld [vmem:[%s1319_s1 + $0x8] sm:$0xff]  ;;  %v791_v1 = vld [vmem:[%s1319_s1] sm:$0xff]  ;;  %v928_v8 = vld [vmem:[%s1320_s0 + $0x10] sm:$0xff] }
   0x2   :  { %v902_v2 = vld [vmem:[%s1320_s0] sm:$0xff]  ;;  %77 = vmatpush.bf16.msra.mxu0 %v792_v0  ;;  %442 = vmatpush.bf16.msra.mxu2 %v792_v0  ;;  %v907_v3 = vld [vmem:[%s1320_s0 + $0x8] sm:$0xff]  ;;  %v933_v9 = vld [vmem:[%s1320_s0 + $0x18] sm:$0x3f] }
   0x3   :  { %v912_v4 = vld [vmem:[%s1320_s0 + $0x20] sm:$0xff]  ;;  %v917_v5 = vld [vmem:[%s1320_s0 + $0x28] sm:$0xff]  ;;  %v47_v6 = vpack.c.bf16 %v907_v3, %v902_v2  ;;  %v938_v10 = vld [vmem:[%s1320_s0 + $0x30] sm:$0xff]  ;;  %v48_v12 = vpack.c.bf16 %v933_v9, %v928_v8 }
   0x4   :  { %v428_v7 = vpack.c.bf16 %v917_v5, %v912_v4  ;;  %v943_v11 = vld [vmem:[%s1320_s0 + $0x38] sm:$0x3f]  ;;  %v954_v14 = vld [vmem:[%s1321_s2] ss:$0 sm:$0xff] }
   0x5   :  { %v429_v13 = vpack.c.bf16 %v943_v11, %v938_v10 }
   0x6   :  { %78 = vmatpush.bf16.msra.mxu0 %v791_v1  ;;  %443 = vmatpush.bf16.msra.mxu2 %v791_v1 }
   0x9   :  { %759 = vmatmul.msk.bf16.vlgmr.msra.gmra.mxu0 %vm64_vm0, %v47_v6  ;;  %783 = vmatmul.msk.bf16.vlgmr.msra.gmra.mxu2 %vm64_vm0, %v428_v7 }
  0x19   :  { %760 = vmatmul.msk.bf16.gmra.mxu0 %vm64_vm0, %v48_v12  ;;  %784 = vmatmul.msk.bf16.gmra.mxu2 %vm64_vm0, %v429_v13 }
  0x86   :  { %v80_v15 = vpop.f32.mrf.mxu0 }
  0x87   :  { %v957_v16 = vadd.f32 %v954_v14, %v80_v15 }
  0x89   :  { %v960_v17 = vmul.f32 0.70710677, %v957_v16 }
  0x8b   :  { %v94_v18 = vand.u32 2147483647, %v960_v17 }
  0x8c   :  { %v445_v19 = vpop.f32.mrf.mxu2 }
  0x8d   :  { %v98_v20 = vmul.f32 0.3275911, %v94_v18  ;;  %v964_v21 = vadd.f32 %v954_v14, %v445_v19  ;;  %v202_v28 = vsub.f32 0.0, %v94_v18 }
  0x8e   :  { %v82_v22 = vpop.f32.mrf.mxu0 }
  0x8f   :  { %v102_v23 = vadd.f32 1.0, %v98_v20  ;;  %v967_v24 = vmul.f32 0.70710677, %v964_v21  ;;  %v970_v25 = vadd.f32 %v954_v14, %v82_v22  ;;  %v206_v38 = vmul.f32 %v202_v28, %v94_v18 }
  0x91   :  { %802 = vrcp.f32 %v102_v23  ;;  %v459_v26 = vand.u32 2147483647, %v967_v24  ;;  %v974_v27 = vmul.f32 0.70710677, %v970_v25  ;;  %v115_v41 = vand.u32 2147483647, %v102_v23 }
  0x92   :  { %v117_v45 = vand.u32 2147483648, %v102_v23  ;;  %v210_v47 = vmul.f32 1.442695, %v206_v38  ;;  %vm111_vm2 = vweird.f32 %v102_v23 }
  0x93   :  { %v463_v29 = vmul.f32 0.3275911, %v459_v26  ;;  %v95_v31 = vand.u32 2147483647, %v974_v27  ;;  %v567_v42 = vsub.f32 0.0, %v459_v26  ;;  %vm116_vm3 = vcmp.eq.f32.partialorder %v115_v41, 8.507059e+37 }
  0x94   :  { %v447_v30 = vpop.f32.mrf.mxu2  ;;  %v118_v55 = vor.u32 1.1754944e-38, %v117_v45 }
  0x95   :  { %v978_v32 = vadd.f32 %v954_v14, %v447_v30  ;;  %v467_v33 = vadd.f32 1.0, %v463_v29  ;;  %v99_v35 = vmul.f32 0.3275911, %v95_v31  ;;  %v571_v53 = vmul.f32 %v567_v42, %v459_v26 }
  0x96   :  { %v85_v44 = vpop.f32.mrf.mxu0  ;;  %v203_v60 = vsub.f32 0.0, %v95_v31 }
  0x97   :  { %v803_v34 = vpop.eup %802  ;;  %v981_v36 = vmul.f32 0.70710677, %v978_v32  ;;  %804 = vrcp.f32 %v467_v33  ;;  %v983_v39 = vadd.f32 1.0, %v99_v35  ;;  %v991_v49 = vadd.f32 %v954_v14, %v85_v44 }
  0x98   :  { %v107_v37 = vmul.f32 %v803_v34, %v102_v23  ;;  %vm112_vm1 = vweird.f32 %v803_v34  ;;  %v480_v52 = vand.u32 2147483647, %v467_v33  ;;  %v482_v57 = vand.u32 2147483648, %v467_v33 }
  0x99   :  { %v986_v43 = vand.u32 2147483647, %v981_v36  ;;  %806 = vrcp.f32 %v983_v39  ;;  %vm113_vm4 = vmor %vm111_vm2, %vm112_vm1  ;;  %v996_v61 = vmul.f32 0.70710677, %v991_v49  ;;  %vm476_vm5 = vweird.f32 %v467_v33 }
  0x9a   :  { %v108_v40 = vsub.f32 1.0, %v107_v37  ;;  %808 = vpow2.f32 %v210_v47  ;;  %vm1005_vm6 = vcmp.eq.f32.partialorder %v480_v52, 8.507059e+37  ;;  %v1009_v12 = vmul.f32 1.442695, %v571_v53 }
  0x9b   :  { %v464_v48 = vmul.f32 0.3275911, %v986_v43  ;;  %v483_v15 = vor.u32 1.1754944e-38, %v482_v57  ;;  %v130_v20 = vand.u32 2147483647, %v983_v39  ;;  %v207_v22 = vmul.f32 %v203_v60, %v95_v31 }
  0x9c   :  { %v109_v46 = vmul.f32 %v803_v34, %v108_v40  ;;  %v450_v54 = vpop.f32.mrf.mxu2  ;;  %v1014_v23 = vand.u32 2147483647, %v996_v61  ;;  %v132_v29 = vand.u32 2147483648, %v983_v39  ;;  %vm126_vm9 = vweird.f32 %v983_v39 }
  0x9d   :  { %v805_v50 = vpop.eup %804  ;;  %v993_v58 = vadd.f32 1.0, %v464_v48  ;;  %v1002_v0 = vadd.f32 %v954_v14, %v450_v54  ;;  %v568_v37 = vsub.f32 0.0, %v986_v43  ;;  %vm1032_vm11 = vcmp.eq.f32.partialorder %v130_v20, 8.507059e+37 }
  0x9e   :  { %v110_v51 = vadd.f32 %v803_v34, %v109_v46  ;;  %v472_v56 = vmul.f32 %v805_v50, %v467_v33  ;;  %vm477_vm7 = vweird.f32 %v805_v50  ;;  %v100_v31 = vmul.f32 0.3275911, %v1014_v23 }
  0x9f   :  { %810 = vrcp.f32 %v993_v58  ;;  %v807_v1 = vpop.eup %806  ;;  %v1018_v30 = vmul.f32 0.70710677, %v1002_v0  ;;  %vm478_vm8 = vmor %vm476_vm5, %vm477_vm7  ;;  %v495_v54 = vand.u32 2147483647, %v993_v58  ;;  %vm491_vm14 = vweird.f32 %v993_v58 }
  0xa0   :  { %v114_v59 = vsel %vm113_vm4, %v803_v34, %v110_v51  ;;  %v473_v63 = vsub.f32 1.0, %v472_v56  ;;  %v122_v18 = vmul.f32 %v807_v1, %v983_v39  ;;  %v809_v34 = vpop.eup %808  ;;  %vm127_vm10 = vweird.f32 %v807_v1 }
  0xa1   :  { %v998_v62 = vsel %vm116_vm3, %v118_v55, %v114_v59  ;;  %v1026_v42 = vand.u32 2147483647, %v1018_v30  ;;  %v1038_v51 = vadd.f32 1.0, %v100_v31  ;;  %vm128_vm12 = vmor %vm126_vm9, %vm127_vm10  ;;  %v497_v59 = vand.u32 2147483648, %v993_v58 }
  0xa2   :  { %v166_v6 = vmul.f32 1.0614054, %v998_v62  ;;  %v474_v13 = vmul.f32 %v805_v50, %v473_v63  ;;  %v123_v28 = vsub.f32 1.0, %v122_v18  ;;  %vm496_vm1 = vcmp.eq.f32.partialorder %v495_v54, 8.507059e+37 }
  0xa3   :  { %v465_v55 = vmul.f32 0.3275911, %v1026_v42  ;;  %812 = vrcp.f32 %v1038_v51  ;;  %vm141_vm2 = vweird.f32 %v1038_v51  ;;  %vm226_vm10 = vcmp.ge.f32.partialorder %v960_v17, 0.0 }
  0xa4   :  { %v170_v19 = vadd.f32 -1.4531521, %v166_v6  ;;  %v475_v26 = vadd.f32 %v805_v50, %v474_v13  ;;  %v124_v41 = vmul.f32 %v807_v1, %v123_v28  ;;  %v212_v13 = vmul.f32 1.442695, %v207_v22 }
  0xa5   :  { %v811_v38 = vpop.eup %810  ;;  %v498_v28 = vor.u32 1.1754944e-38, %v497_v59 }
  0xa6   :  { %v174_v35 = vmul.f32 %v170_v19, %v998_v62  ;;  %v479_v40 = vsel %vm478_vm8, %v805_v50, %v475_v26  ;;  %v487_v46 = vmul.f32 %v811_v38, %v993_v58  ;;  %v125_v48 = vadd.f32 %v807_v1, %v124_v41 }
  0xa7   :  { %v1030_v45 = vsel %vm1005_vm6, %v483_v15, %v479_v40  ;;  %v133_v50 = vor.u32 1.1754944e-38, %v132_v29  ;;  %vm492_vm13 = vweird.f32 %v811_v38  ;;  %v572_v15 = vmul.f32 %v568_v37, %v986_v43 }
  0xa8   :  { %v178_v44 = vadd.f32 1.4214138, %v174_v35  ;;  %v531_v47 = vmul.f32 1.0614054, %v1030_v45  ;;  %v488_v53 = vsub.f32 1.0, %v487_v46  ;;  %v129_v57 = vsel %vm128_vm12, %v807_v1, %v125_v48  ;;  %vm493_vm15 = vmor %vm491_vm14, %vm492_vm13 }
  0xa9   :  { %v1049_v63 = vsel %vm1032_vm11, %v133_v50, %v129_v57  ;;  %v1056_v19 = vadd.f32 1.0, %v465_v55  ;;  %v813_v31 = vpop.eup %812  ;;  %v577_v40 = vmul.f32 1.442695, %v572_v15  ;;  %vm227_vm11 = vcmp.ge.f32.partialorder %v974_v27, 0.0 }
  0xaa   :  { %v182_v52 = vmul.f32 %v178_v44, %v998_v62  ;;  %v535_v56 = vadd.f32 -1.4531521, %v531_v47  ;;  %v489_v6 = vmul.f32 %v811_v38, %v488_v53  ;;  %v167_v7 = vmul.f32 1.0614054, %v1049_v63 }
  0xab   :  { %814 = vrcp.f32 %v1056_v19  ;;  %v137_v44 = vmul.f32 %v813_v31, %v1038_v51  ;;  %v145_v47 = vand.u32 2147483647, %v1038_v51  ;;  %v147_v53 = vand.u32 2147483648, %v1038_v51 }
  0xac   :  { %v186_v60 = vadd.f32 -0.28449672, %v182_v52  ;;  %v539_v39 = vmul.f32 %v535_v56, %v1030_v45  ;;  %v490_v18 = vadd.f32 %v811_v38, %v489_v6  ;;  %v171_v26 = vadd.f32 -1.4531521, %v167_v7 }
  0xad   :  { %816 = vpow2.f32 %v1009_v12  ;;  %v138_v52 = vsub.f32 1.0, %v137_v44  ;;  %vm142_vm3 = vweird.f32 %v813_v31  ;;  %vm1078_vm4 = vcmp.eq.f32.partialorder %v145_v47, 8.507059e+37 }
  0xae   :  { %v190_v1 = vmul.f32 %v186_v60, %v998_v62  ;;  %v543_v20 = vadd.f32 1.4214138, %v539_v39  ;;  %v494_v35 = vsel %vm493_vm15, %v811_v38, %v490_v18  ;;  %v175_v43 = vmul.f32 %v171_v26, %v1049_v63  ;;  %v87_v38 = vpop.f32.mrf.mxu0  ;;  %vm143_vm5 = vmor %vm141_vm2, %vm142_vm3 }
  0xaf   :  { %v1061_v37 = vsel %vm496_vm1, %v498_v28, %v494_v35  ;;  %818 = vpow2.f32 %v212_v13  ;;  %v1074_v54 = vadd.f32 %v954_v14, %v87_v38  ;;  %v139_v57 = vmul.f32 %v813_v31, %v138_v52  ;;  %v796_v35 = vld [vmem:[%s1323_s3 + $0x18] sm:$0xff]  ;;  %v795_v52 = vld [vmem:[%s1323_s3 + $0x10] sm:$0xff] }
  0xb0   :  { %v194_v29 = vadd.f32 0.2548296, %v190_v1  ;;  %v547_v22 = vmul.f32 %v543_v20, %v1030_v45  ;;  %v532_v41 = vmul.f32 1.0614054, %v1061_v37  ;;  %v179_v46 = vadd.f32 1.4214138, %v175_v43  ;;  %290 = vmatpush.bf16.msra.mxu1 %v796_v35  ;;  %627 = vmatpush.bf16.msra.mxu3 %v796_v35 }
  0xb1   :  { %820 = vpow2.f32 %v577_v40  ;;  %v815_v55 = vpop.eup %814  ;;  %v140_v15 = vadd.f32 %v813_v31, %v139_v57  ;;  %v148_v1 = vor.u32 1.1754944e-38, %v147_v53  ;;  %v510_v40 = vand.u32 2147483647, %v1056_v19 }
  0xb2   :  { %v198_v58 = vmul.f32 %v194_v29, %v998_v62  ;;  %v551_v33 = vadd.f32 -0.28449672, %v547_v22  ;;  %v536_v50 = vadd.f32 -1.4531521, %v532_v41  ;;  %v183_v12 = vmul.f32 %v179_v46, %v1049_v63 }
  0xb3   :  { %v502_v6 = vmul.f32 %v815_v55, %v1056_v19  ;;  %v817_v39 = vpop.eup %816  ;;  %v1089_v29 = vmul.f32 0.70710677, %v1074_v54  ;;  %v144_v43 = vsel %vm143_vm5, %v813_v31, %v140_v15  ;;  %vm507_vm6 = vweird.f32 %v815_v55  ;;  %v794_v15 = vld [vmem:[%s1323_s3 + $0x8] sm:$0xff] }
  0xb4   :  { %v1068_v48 = vmul.f32 %v809_v34, %v198_v58  ;;  %v555_v62 = vmul.f32 %v551_v33, %v1030_v45  ;;  %v540_v56 = vmul.f32 %v536_v50, %v1061_v37  ;;  %v187_v59 = vadd.f32 -0.28449672, %v183_v12  ;;  %291 = vmatpush.bf16.msra.mxu1 %v795_v52  ;;  %628 = vmatpush.bf16.msra.mxu3 %v795_v52 }
  0xb5   :  { %v819_v18 = vpop.eup %818  ;;  %v503_v28 = vsub.f32 1.0, %v502_v6  ;;  %v1099_v51 = vsel %vm1078_vm4, %v148_v1, %v144_v43  ;;  %v1103_v31 = vand.u32 2147483647, %v1089_v29  ;;  %vm506_vm7 = vweird.f32 %v1056_v19  ;;  %v452_v6 = vpop.f32.mrf.mxu2 }
  0xb6   :  { %v559_v34 = vadd.f32 0.2548296, %v555_v62  ;;  %v222_v7 = vsub.f32 1.0, %v1068_v48  ;;  %v544_v13 = vadd.f32 1.4214138, %v540_v56  ;;  %v191_v26 = vmul.f32 %v187_v59, %v1049_v63  ;;  %vm508_vm8 = vmor %vm506_vm7, %vm507_vm6 }
  0xb7   :  { %v821_v58 = vpop.eup %820  ;;  %v168_v33 = vmul.f32 1.0614054, %v1099_v51  ;;  %v504_v46 = vmul.f32 %v815_v55, %v503_v28  ;;  %v101_v56 = vmul.f32 0.3275911, %v1103_v31  ;;  %vm511_vm9 = vcmp.eq.f32.partialorder %v510_v40, 8.507059e+37 }
  0xb8   :  { %v563_v20 = vmul.f32 %v559_v34, %v1030_v45  ;;  %v548_v22 = vmul.f32 %v544_v13, %v1061_v37  ;;  %v512_v45 = vand.u32 2147483648, %v1056_v19  ;;  %v195_v44 = vadd.f32 0.2548296, %v191_v26  ;;  %292 = vmatpush.bf16.msra.mxu1 %v794_v15  ;;  %629 = vmatpush.bf16.msra.mxu3 %v794_v15 }
  0xb9   :  { %v230_v47 = vsub.f32 0.0, %v222_v7  ;;  %v172_v62 = vadd.f32 -1.4531521, %v168_v33  ;;  %v505_v12 = vadd.f32 %v815_v55, %v504_v46  ;;  %v1114_v60 = vadd.f32 1.0, %v101_v56 }
  0xba   :  { %v583_v41 = vmul.f32 %v817_v39, %v563_v20  ;;  %v552_v38 = vadd.f32 -0.28449672, %v548_v22  ;;  %v199_v50 = vmul.f32 %v195_v44, %v1049_v63  ;;  %v513_v34 = vor.u32 1.1754944e-38, %v512_v45 }
  0xbb   :  { %v176_v19 = vmul.f32 %v172_v62, %v1099_v51  ;;  %v509_v59 = vsel %vm508_vm8, %v815_v55, %v505_v12  ;;  %v234_v1 = vsel %vm226_vm10, %v222_v7, %v230_v47  ;;  %822 = vrcp.f32 %v1114_v60 }
  0xbc   :  { %v587_v48 = vsub.f32 1.0, %v583_v41  ;;  %v556_v53 = vmul.f32 %v552_v38, %v1061_v37  ;;  %v219_v57 = vmul.f32 %v819_v18, %v199_v50  ;;  %v1117_v13 = vsel %vm511_vm9, %v513_v34, %v509_v59 }
  0xbd   :  { %v180_v28 = vadd.f32 1.4214138, %v176_v19  ;;  %v1125_v55 = vadd.f32 %v954_v14, %v452_v6  ;;  %v533_v35 = vmul.f32 1.0614054, %v1117_v13  ;;  %vm591_vm12 = vcmp.ge.f32.partialorder %v967_v24, 0.0 }
  0xbe   :  { %v560_v63 = vadd.f32 0.2548296, %v556_v53  ;;  %v223_v39 = vsub.f32 1.0, %v219_v57  ;;  %v595_v18 = vsub.f32 0.0, %v587_v48  ;;  %v242_v22 = vadd.f32 1.0, %v234_v1 }
  0xbf   :  { %v239_v43 = vmul.f32 0.5, %v970_v25  ;;  %v238_v45 = vmul.f32 0.5, %v957_v16  ;;  %v184_v27 = vmul.f32 %v180_v28, %v1099_v51  ;;  %v204_v38 = vsub.f32 0.0, %v1014_v23 }
  0xc0   :  { %v564_v20 = vmul.f32 %v560_v63, %v1061_v37  ;;  %v231_v26 = vsub.f32 0.0, %v223_v39  ;;  %v793_v37 = vld [vmem:[%s1323_s3] sm:$0xff]  ;;  %v599_v41 = vsel %vm591_vm12, %v587_v48, %v595_v18  ;;  %v537_v33 = vadd.f32 -1.4531521, %v533_v35 }
  0xc1   :  { %293 = vmatpush.bf16.msra.mxu1 %v793_v37  ;;  %630 = vmatpush.bf16.msra.mxu3 %v793_v37  ;;  %v823_v46 = vpop.eup %822  ;;  %vm592_vm13 = vcmp.ge.f32.partialorder %v981_v36, 0.0  ;;  %v604_v25 = vmul.f32 0.5, %v978_v32  ;;  %v246_v47 = vmul.f32 %v242_v22, %v238_v45  ;;  %v607_v48 = vadd.f32 1.0, %v599_v41 }
  0xc2   :  { %v584_v17 = vmul.f32 %v821_v58, %v564_v20  ;;  %v235_v7 = vsel %vm227_vm11, %v223_v39, %v231_v26  ;;  %v1137_v58 = vmul.f32 0.70710677, %v1125_v55  ;;  %v152_v52 = vmul.f32 %v823_v46, %v1114_v60 }
  0xc3   :  { %v243_v40 = vadd.f32 1.0, %v235_v7  ;;  %v188_v62 = vadd.f32 -0.28449672, %v184_v27  ;;  %vm279_vm14 = vcmask 523264   ;;  %v208_v56 = vmul.f32 %v204_v38, %v1014_v23 }
  0xc4   :  { %v588_v14 = vsub.f32 1.0, %v584_v17  ;;  %v1143_v16 = vand.u32 2147483647, %v1137_v58  ;;  %v541_v57 = vmul.f32 %v537_v33, %v1117_v13  ;;  %v153_v36 = vsub.f32 1.0, %v152_v52 }
  0xc5   :  { %v247_v24 = vmul.f32 %v243_v40, %v239_v43  ;;  %v603_v32 = vmul.f32 0.5, %v964_v21  ;;  %v162_v19 = vand.u32 2147483648, %v1114_v60  ;;  %vm157_vm15 = vweird.f32 %v823_v46 }
  0xc6   :  { %v596_v44 = vsub.f32 0.0, %v588_v14  ;;  %v466_v12 = vmul.f32 0.3275911, %v1143_v16  ;;  %v154_v6 = vmul.f32 %v823_v46, %v153_v36  ;;  %v160_v39 = vand.u32 2147483647, %v1114_v60 }
  0xc7   :  { %v250_v34 = vpack.c.bf16 %v247_v24, %v246_v47  ;;  %v611_v15 = vmul.f32 %v607_v48, %v603_v32  ;;  %v192_v1 = vmul.f32 %v188_v62, %v1099_v51  ;;  %v214_v23 = vmul.f32 1.442695, %v208_v56 }
  0xc8   :  { %v600_v50 = vsel %vm592_vm13, %v588_v14, %v596_v44  ;;  %v470_v59 = vadd.f32 1.0, %v466_v12  ;;  %v545_v18 = vadd.f32 1.4214138, %v541_v57  ;;  %v155_v20 = vadd.f32 %v823_v46, %v154_v6 }
  0xc9   :  { %v608_v53 = vadd.f32 1.0, %v600_v50  ;;  %777 = vmatmul.msk.bf16.vlgmr.msra.gmra.mxu1 %vm279_vm14, %v250_v34  ;;  %vm156_vm1 = vweird.f32 %v1114_v60  ;;  %v163_v21 = vor.u32 1.1754944e-38, %v162_v19  ;;  %vm161_vm3 = vcmp.eq.f32.partialorder %v160_v39, 8.507059e+37 }
  0xca   :  { %824 = vrcp.f32 %v470_v59  ;;  %vm158_vm2 = vmor %vm156_vm1, %vm157_vm15  ;;  %v196_v17 = vadd.f32 0.2548296, %v192_v1  ;;  %v205_v7 = vsub.f32 0.0, %v1103_v31  ;;  %v549_v37 = vmul.f32 %v545_v18, %v1117_v13 }
  0xcb   :  { %v612_v63 = vmul.f32 %v608_v53, %v604_v25  ;;  %v159_v28 = vsel %vm158_vm2, %v823_v46, %v155_v20  ;;  %826 = vpow2.f32 %v214_v23  ;;  %v569_v40 = vsub.f32 0.0, %v1026_v42 }
  0xcc   :  { %v164_v35 = vsel %vm161_vm3, %v163_v21, %v159_v28  ;;  %v200_v45 = vmul.f32 %v196_v17, %v1099_v51  ;;  %v209_v41 = vmul.f32 %v205_v7, %v1103_v31  ;;  %v553_v27 = vadd.f32 -0.28449672, %v549_v37 }
  0xcd   :  { %v615_v26 = vpack.c.bf16 %v612_v63, %v611_v15  ;;  %v169_v22 = vmul.f32 1.0614054, %v164_v35  ;;  %v573_v38 = vmul.f32 %v569_v40, %v1026_v42  ;;  %v527_v33 = vand.u32 2147483648, %v470_v59 }
  0xce   :  { %v525_v48 = vand.u32 2147483647, %v470_v59  ;;  %v216_v52 = vmul.f32 1.442695, %v209_v41  ;;  %v557_v53 = vmul.f32 %v553_v27, %v1117_v13  ;;  %vm521_vm5 = vweird.f32 %v470_v59 }
  0xcf   :  { %785 = vmatmul.msk.bf16.vlgmr.msra.gmra.mxu3 %vm279_vm14, %v615_v26  ;;  %v173_v14 = vadd.f32 -1.4531521, %v169_v22  ;;  %v579_v51 = vmul.f32 1.442695, %v573_v38  ;;  %v528_v31 = vor.u32 1.1754944e-38, %v527_v33  ;;  %v570_v36 = vsub.f32 0.0, %v1143_v16 }
  0xd0   :  { %v825_v43 = vpop.eup %824  ;;  %vm526_vm7 = vcmp.eq.f32.partialorder %v525_v48, 8.507059e+37  ;;  %828 = vpow2.f32 %v216_v52  ;;  %v561_v32 = vadd.f32 0.2548296, %v557_v53  ;;  %vm228_vm8 = vcmp.ge.f32.partialorder %v996_v61, 0.0 }
  0xd1   :  { %v517_v60 = vmul.f32 %v825_v43, %v470_v59  ;;  %v177_v24 = vmul.f32 %v173_v14, %v164_v35  ;;  %v827_v46 = vpop.eup %826  ;;  %vm522_vm4 = vweird.f32 %v825_v43  ;;  %830 = vpow2.f32 %v579_v51 }
  0xd2   :  { %v220_v50 = vmul.f32 %v827_v46, %v200_v45  ;;  %vm523_vm6 = vmor %vm521_vm5, %vm522_vm4  ;;  %v574_v15 = vmul.f32 %v570_v36, %v1143_v16  ;;  %v565_v1 = vmul.f32 %v561_v32, %v1117_v13  ;;  %vm229_vm9 = vcmp.ge.f32.partialorder %v1089_v29, 0.0 }
  0xd3   :  { %v518_v44 = vsub.f32 1.0, %v517_v60  ;;  %v181_v25 = vadd.f32 1.4214138, %v177_v24  ;;  %v240_v45 = vmul.f32 0.5, %v991_v49  ;;  %v241_v41 = vmul.f32 0.5, %v1074_v54 }
  0xd4   :  { %v224_v34 = vsub.f32 1.0, %v220_v50  ;;  %v581_v17 = vmul.f32 1.442695, %v574_v15  ;;  %vm593_vm10 = vcmp.ge.f32.partialorder %v1018_v30, 0.0  ;;  %vm594_vm11 = vcmp.ge.f32.partialorder %v1137_v58, 0.0 }
  0xd5   :  { %v519_v47 = vmul.f32 %v825_v43, %v518_v44  ;;  %v185_v62 = vmul.f32 %v181_v25, %v164_v35  ;;  %v605_v54 = vmul.f32 0.5, %v1002_v0  ;;  %v606_v53 = vmul.f32 0.5, %v1125_v55  ;;  %v799_v30 = vld [vmem:[%s1322_s4] ss:$0 sm:$0xff] }
  0xd6   :  { %v232_v59 = vsub.f32 0.0, %v224_v34  ;;  %v829_v20 = vpop.eup %828  ;;  %832 = vpow2.f32 %v581_v17  ;;  %vm318_vm12 = vcmask 259072  }
  0xd7   :  { %v520_v12 = vadd.f32 %v825_v43, %v519_v47  ;;  %v189_v56 = vadd.f32 -0.28449672, %v185_v62  ;;  %v831_v28 = vpop.eup %830 }
  0xd8   :  { %v236_v7 = vsel %vm228_vm8, %v224_v34, %v232_v59  ;;  %v585_v37 = vmul.f32 %v831_v28, %v565_v1 }
  0xd9   :  { %v524_v57 = vsel %vm523_vm6, %v825_v43, %v520_v12  ;;  %v193_v63 = vmul.f32 %v189_v56, %v164_v35  ;;  %v244_v60 = vadd.f32 1.0, %v236_v7 }
  0xda   :  { %v529_v42 = vsel %vm526_vm7, %v528_v31, %v524_v57  ;;  %v589_v13 = vsub.f32 1.0, %v585_v37 }
  0xdb   :  { %v534_v19 = vmul.f32 1.0614054, %v529_v42  ;;  %v197_v6 = vadd.f32 0.2548296, %v193_v63  ;;  %v248_v24 = vmul.f32 %v244_v60, %v240_v45 }
  0xdc   :  { %v597_v38 = vsub.f32 0.0, %v589_v13  ;;  %v833_v46 = vpop.eup %832 }
  0xdd   :  { %v538_v39 = vadd.f32 -1.4531521, %v534_v19  ;;  %v201_v23 = vmul.f32 %v197_v6, %v164_v35 }
  0xde   :  { %v601_v29 = vsel %vm593_vm10, %v589_v13, %v597_v38 }
  0xdf   :  { %v542_v18 = vmul.f32 %v538_v39, %v529_v42  ;;  %v221_v21 = vmul.f32 %v829_v20, %v201_v23  ;;  %v609_v52 = vadd.f32 1.0, %v601_v29 }
  0xe1   :  { %v546_v26 = vadd.f32 1.4214138, %v542_v18  ;;  %v225_v22 = vsub.f32 1.0, %v221_v21  ;;  %v613_v12 = vmul.f32 %v609_v52, %v605_v54 }
  0xe3   :  { %v550_v43 = vmul.f32 %v546_v26, %v529_v42  ;;  %v233_v40 = vsub.f32 0.0, %v225_v22 }
  0xe5   :  { %v554_v14 = vadd.f32 -0.28449672, %v550_v43  ;;  %v237_v16 = vsel %vm229_vm9, %v225_v22, %v233_v40  ;;  %v852_v40 = vmov 32.0  }
  0xe6   :  { %v245_v27 = vadd.f32 1.0, %v237_v16  ;;  %834 = vrcp.f32 %v852_v40  ;;  %v1251_v40 = vld [vmem:[%s1324_s5] ss:$0 sm:$0xff] }
  0xe7   :  { %v558_v35 = vmul.f32 %v554_v14, %v529_v42 }
  0xe8   :  { %v249_v44 = vmul.f32 %v245_v27, %v241_v41 }
  0xe9   :  { %v562_v61 = vadd.f32 0.2548296, %v558_v35 }
  0xea   :  { %v251_v25 = vpack.c.bf16 %v249_v44, %v248_v24 }
  0xeb   :  { %v566_v33 = vmul.f32 %v562_v61, %v529_v42 }
  0xec   :  { %778 = vmatmul.msk.bf16.gmra.mxu1 %vm279_vm14, %v251_v25 }
  0xed   :  { %v586_v47 = vmul.f32 %v833_v46, %v566_v33 }
  0xef   :  { %v590_v48 = vsub.f32 1.0, %v586_v47 }
  0xf1   :  { %v598_v50 = vsub.f32 0.0, %v590_v48 }
  0xf3   :  { %v602_v49 = vsel %vm594_vm11, %v590_v48, %v598_v50 }
  0xf4   :  { %v610_v62 = vadd.f32 1.0, %v602_v49 }
  0xf6   :  { %v614_v51 = vmul.f32 %v610_v62, %v606_v53 }
  0xf8   :  { %v616_v31 = vpack.c.bf16 %v614_v51, %v613_v12 }
  0xfa   :  { %786 = vmatmul.msk.bf16.gmra.mxu3 %vm279_vm14, %v616_v31 }
 0x146   :  { %v295_v56 = vpop.f32.mrf.mxu1 }
 0x147   :  { %v296_v57 = vadd.f32 %v799_v30, %v295_v56 }
 0x149   :  { %v305_v42 = vadd.f32 %v296_v57, %v902_v2 }
 0x14b   :  { %v309_v58 = vsel %vm64_vm0, %v305_v42, 0.0 }
 0x14c   :  { %310 = vadd.xlane.f32.xlu0 %v309_v58 }
 0x14e   :  { %v297_v0 = vpop.f32.mrf.mxu1 }
 0x14f   :  { %v298_v36 = vadd.f32 %v799_v30, %v297_v0 }
 0x151   :  { %v306_v34 = vadd.f32 %v298_v36, %v907_v3 }
 0x152   :  { %v632_v55 = vpop.f32.mrf.mxu3 }
 0x153   :  { %v633_v32 = vadd.f32 %v799_v30, %v632_v55  ;;  %v312_v63 = vsel %vm64_vm0, %v306_v34, 0.0 }
 0x154   :  { %313 = vadd.xlane.f32.xlu0 %v312_v63 }
 0x155   :  { %v642_v19 = vadd.f32 %v912_v4, %v633_v32 }
 0x157   :  { %v646_v6 = vsel %vm64_vm0, %v642_v19, 0.0 }
 0x158   :  { %647 = vadd.xlane.f32.xlu2 %v646_v6 }
 0x15a   :  { %v634_v39 = vpop.f32.mrf.mxu3 }
 0x15b   :  { %v635_v15 = vadd.f32 %v799_v30, %v634_v39 }
 0x15d   :  { %v643_v2 = vadd.f32 %v917_v5, %v635_v15 }
 0x15f   :  { %v649_v59 = vsel %vm64_vm0, %v643_v2, 0.0 }
 0x160   :  { %650 = vadd.xlane.f32.xlu2 %v649_v59 }
 0x169   :  { %v300_v1 = vpop.f32.mrf.mxu1 }
 0x16a   :  { %v301_v23 = vadd.f32 %v799_v30, %v300_v1 }
 0x16c   :  { %v307_v3 = vadd.f32 %v301_v23, %v928_v8 }
 0x16e   :  { %v315_v18 = vsel %vm64_vm0, %v307_v3, 0.0 }
 0x16f   :  { %316 = vadd.xlane.f32.xlu1 %v315_v18 }
 0x171   :  { %v302_v20 = vpop.f32.mrf.mxu1 }
 0x172   :  { %v303_v21 = vadd.f32 %v799_v30, %v302_v20 }
 0x174   :  { %v308_v4 = vadd.f32 %v303_v21, %v933_v9  ;;  %v835_v9 = vpop.eup %834 }
 0x175   :  { %v323_v14 = vmul.f32 32.0, %v835_v9  ;;  %vm327_vm13 = vweird.f32 %v835_v9 }
 0x176   :  { %v319_v26 = vsel %vm318_vm12, %v308_v4, 0.0 }
 0x177   :  { %320 = vadd.xlane.f32.xlu1 %v319_v26  ;;  %v324_v60 = vsub.f32 1.0, %v323_v14 }
 0x179   :  { %v325_v13 = vmul.f32 %v835_v9, %v324_v60  ;;  %v1256_v60 = vld [vmem:[%s1325_s6] ss:$0 sm:$0xff] }
 0x17b   :  { %v326_v16 = vadd.f32 %v835_v9, %v325_v13 }
 0x17d   :  { %v637_v28 = vpop.f32.mrf.mxu3  ;;  %v1195_v35 = vsel %vm327_vm13, %v835_v9, %v326_v16 }
 0x17e   :  { %v638_v5 = vadd.f32 %v799_v30, %v637_v28 }
 0x180   :  { %v644_v17 = vadd.f32 %v938_v10, %v638_v5 }
 0x182   :  { %v652_v7 = vsel %vm64_vm0, %v644_v17, 0.0 }
 0x183   :  { %653 = vadd.xlane.f32.xlu0 %v652_v7 }
 0x185   :  { %v639_v37 = vpop.f32.mrf.mxu3 }
 0x186   :  { %v640_v8 = vadd.f32 %v799_v30, %v639_v37 }
 0x188   :  { %v645_v22 = vadd.f32 %v943_v11, %v640_v8 }
 0x18a   :  { %v655_v43 = vsel %vm318_vm12, %v645_v22, 0.0 }
 0x18b   :  { %656 = vadd.xlane.f32.xlu1 %v655_v43 }
 0x1bf   :  { %v311_v10 = vpop.xlane.xlu0 %310 }
 0x1c0   :  { %v329_v45 = vmul.f32 %v1195_v35, %v311_v10 }
 0x1c2   :  { %v1198_v41 = vsub.f32 %v305_v42, %v329_v45 }
 0x1c4   :  { %v337_v11 = vmul.f32 %v1198_v41, %v1198_v41 }
 0x1c6   :  { %v341_v27 = vsel %vm64_vm0, %v337_v11, 0.0 }
 0x1c7   :  { %342 = vadd.xlane.f32.xlu2 %v341_v27  ;;  %v314_v61 = vpop.xlane.xlu0 %313 }
 0x1c8   :  { %v330_v24 = vmul.f32 %v1195_v35, %v314_v61 }
 0x1ca   :  { %v1204_v44 = vsub.f32 %v306_v34, %v330_v24 }
 0x1cb   :  { %v648_v38 = vpop.xlane.xlu2 %647 }
 0x1cc   :  { %v658_v33 = vmul.f32 %v648_v38, %v1195_v35  ;;  %v338_v46 = vmul.f32 %v1204_v44, %v1204_v44 }
 0x1ce   :  { %v1209_v25 = vsub.f32 %v642_v19, %v658_v33  ;;  %v344_v47 = vsel %vm64_vm0, %v338_v46, 0.0 }
 0x1cf   :  { %345 = vadd.xlane.f32.xlu0 %v344_v47 }
 0x1d0   :  { %v666_v29 = vmul.f32 %v1209_v25, %v1209_v25 }
 0x1d2   :  { %v670_v48 = vsel %vm64_vm0, %v666_v29, 0.0 }
 0x1d3   :  { %v651_v52 = vpop.xlane.xlu2 %650 }
 0x1d4   :  { %v659_v53 = vmul.f32 %v651_v52, %v1195_v35 }
 0x1d6   :  { %v1221_v12 = vsub.f32 %v643_v2, %v659_v53 }
 0x1d7   :  { %671 = vadd.xlane.f32.xlu0 %v670_v48 }
 0x1d8   :  { %v667_v57 = vmul.f32 %v1221_v12, %v1221_v12 }
 0x1da   :  { %v673_v58 = vsel %vm64_vm0, %v667_v57, 0.0 }
 0x1e2   :  { %v317_v50 = vpop.xlane.xlu1 %316 }
 0x1e3   :  { %v331_v49 = vmul.f32 %v1195_v35, %v317_v50 }
 0x1e5   :  { %v1216_v54 = vsub.f32 %v307_v3, %v331_v49 }
 0x1e7   :  { %v339_v62 = vmul.f32 %v1216_v54, %v1216_v54 }
 0x1e9   :  { %v347_v51 = vsel %vm64_vm0, %v339_v62, 0.0 }
 0x1ea   :  { %348 = vadd.xlane.f32.xlu1 %v347_v51  ;;  %v321_v31 = vpop.xlane.xlu1 %320 }
 0x1eb   :  { %v332_v30 = vmul.f32 %v1195_v35, %v321_v31 }
 0x1ed   :  { %v1225_v56 = vsub.f32 %v308_v4, %v332_v30 }
 0x1ef   :  { %v340_v42 = vmul.f32 %v1225_v56, %v1225_v56 }
 0x1f1   :  { %v350_v0 = vsel %vm318_vm12, %v340_v42, 0.0 }
 0x1f2   :  { %674 = vadd.xlane.f32.xlu1 %v673_v58  ;;  %351 = vadd.xlane.f32.xlu2 %v350_v0 }
 0x1f6   :  { %v654_v36 = vpop.xlane.xlu0 %653 }
 0x1f7   :  { %v660_v55 = vmul.f32 %v654_v36, %v1195_v35 }
 0x1f9   :  { %v1234_v34 = vsub.f32 %v644_v17, %v660_v55 }
 0x1fb   :  { %v668_v32 = vmul.f32 %v1234_v34, %v1234_v34 }
 0x1fd   :  { %v676_v63 = vsel %vm64_vm0, %v668_v32, 0.0 }
 0x1fe   :  { %v657_v19 = vpop.xlane.xlu1 %656  ;;  %677 = vadd.xlane.f32.xlu2 %v676_v63 }
 0x1ff   :  { %v661_v6 = vmul.f32 %v657_v19, %v1195_v35 }
 0x201   :  { %v1240_v39 = vsub.f32 %v645_v22, %v661_v6 }
 0x203   :  { %v669_v15 = vmul.f32 %v1240_v39, %v1240_v39 }
 0x205   :  { %v679_v2 = vsel %vm318_vm12, %v669_v15, 0.0 }
 0x206   :  { %680 = vadd.xlane.f32.xlu0 %v679_v2 }
 0x23a   :  { %v343_v59 = vpop.xlane.xlu2 %342 }
 0x23b   :  { %v353_v1 = vmul.f32 %v343_v59, %v1195_v35 }
 0x23d   :  { %v357_v23 = vadd.f32 1e-06, %v353_v1 }
 0x23f   :  { %836 = vrsqrt.f32 %v357_v23  ;;  %vm367_vm15 = vweird.f32 %v357_v23 }
 0x242   :  { %v346_v3 = vpop.xlane.xlu0 %345 }
 0x243   :  { %v354_v18 = vmul.f32 %v346_v3, %v1195_v35 }
 0x245   :  { %v837_v20 = vpop.eup %836  ;;  %v358_v21 = vadd.f32 1e-06, %v354_v18 }
 0x246   :  { %v362_v4 = vmul.f32 %v837_v20, %v357_v23  ;;  %vm368_vm14 = vweird.f32 %v837_v20 }
 0x247   :  { %838 = vrsqrt.f32 %v358_v21  ;;  %vm369_vm1 = vmor %vm367_vm15, %vm368_vm14  ;;  %vm377_vm3 = vweird.f32 %v358_v21 }
 0x248   :  { %v363_v26 = vmul.f32 %v837_v20, %v362_v4 }
 0x24a   :  { %v364_v28 = vmul.f32 0.5, %v363_v26  ;;  %v672_v5 = vpop.xlane.xlu0 %671 }
 0x24b   :  { %v682_v17 = vmul.f32 %v672_v5, %v1195_v35 }
 0x24c   :  { %v365_v7 = vsub.f32 1.5, %v364_v28 }
 0x24d   :  { %v839_v37 = vpop.eup %838  ;;  %v686_v8 = vadd.f32 1e-06, %v682_v17 }
 0x24e   :  { %v366_v22 = vmul.f32 %v837_v20, %v365_v7  ;;  %v372_v43 = vmul.f32 %v839_v37, %v358_v21  ;;  %vm378_vm2 = vweird.f32 %v839_v37 }
 0x24f   :  { %840 = vrsqrt.f32 %v686_v8  ;;  %vm379_vm4 = vmor %vm377_vm3, %vm378_vm2  ;;  %vm696_vm6 = vweird.f32 %v686_v8 }
 0x250   :  { %v370_v9 = vsel %vm369_vm1, %v837_v20, %v366_v22  ;;  %v373_v14 = vmul.f32 %v839_v37, %v372_v43 }
 0x251   :  { %v401_v13 = vmul.f32 %v370_v9, %v1198_v41 }
 0x252   :  { %v374_v16 = vmul.f32 0.5, %v373_v14 }
 0x253   :  { %v408_v10 = vmul.f32 %v1251_v40, %v401_v13 }
 0x254   :  { %v375_v45 = vsub.f32 1.5, %v374_v16 }
 0x255   :  { %v841_v11 = vpop.eup %840  ;;  %v415_v27 = vadd.f32 %v1256_v60, %v408_v10 }
 0x256   :  { %v376_v61 = vmul.f32 %v839_v37, %v375_v45  ;;  %v691_v24 = vmul.f32 %v841_v11, %v686_v8  ;;  %vm697_vm5 = vweird.f32 %v841_v11 }
 0x257   :  { %419 = vst.msk [vmem:[%s1326_s7] sm:$0xff] %vm64_vm0, %v415_v27  ;;  %vm698_vm7 = vmor %vm696_vm6, %vm697_vm5 }
 0x258   :  { %v380_v38 = vsel %vm379_vm4, %v839_v37, %v376_v61  ;;  %v692_v33 = vmul.f32 %v841_v11, %v691_v24 }
 0x259   :  { %v402_v41 = vmul.f32 %v380_v38, %v1204_v44 }
 0x25a   :  { %v693_v46 = vmul.f32 0.5, %v692_v33 }
 0x25b   :  { %v409_v47 = vmul.f32 %v1251_v40, %v402_v41 }
 0x25c   :  { %v694_v29 = vsub.f32 1.5, %v693_v46 }
 0x25d   :  { %v416_v48 = vadd.f32 %v1256_v60, %v409_v47  ;;  %v349_v52 = vpop.xlane.xlu1 %348 }
 0x25e   :  { %v695_v50 = vmul.f32 %v841_v11, %v694_v29  ;;  %v355_v49 = vmul.f32 %v349_v52, %v1195_v35 }
 0x25f   :  { %420 = vst.msk [vmem:[%s1326_s7 + $0x8] sm:$0xff] %vm64_vm0, %v416_v48 }
 0x260   :  { %v699_v53 = vsel %vm698_vm7, %v841_v11, %v695_v50  ;;  %v359_v62 = vadd.f32 1e-06, %v355_v49 }
 0x261   :  { %v730_v44 = vmul.f32 %v699_v53, %v1209_v25 }
 0x262   :  { %842 = vrsqrt.f32 %v359_v62  ;;  %vm387_vm9 = vweird.f32 %v359_v62 }
 0x263   :  { %v734_v51 = vmul.f32 %v1251_v40, %v730_v44 }
 0x265   :  { %v738_v31 = vadd.f32 %v1256_v60, %v734_v51  ;;  %v675_v30 = vpop.xlane.xlu1 %674  ;;  %v352_v57 = vpop.xlane.xlu2 %351 }
 0x266   :  { %v683_v42 = vmul.f32 %v675_v30, %v1195_v35  ;;  %v356_v58 = vmul.f32 %v352_v57, %v1195_v35 }
 0x267   :  { %787 = vst.msk [vmem:[%s1326_s7 + $0x20] sm:$0xff] %vm64_vm0, %v738_v31 }
 0x268   :  { %v843_v0 = vpop.eup %842  ;;  %v687_v36 = vadd.f32 1e-06, %v683_v42  ;;  %v360_v25 = vadd.f32 1e-06, %v356_v58 }
 0x269   :  { %v382_v55 = vmul.f32 %v843_v0, %v359_v62  ;;  %vm388_vm8 = vweird.f32 %v843_v0 }
 0x26a   :  { %844 = vrsqrt.f32 %v687_v36  ;;  %vm389_vm10 = vmor %vm387_vm9, %vm388_vm8  ;;  %vm706_vm14 = vweird.f32 %v687_v36  ;;  %vm397_vm1 = vweird.f32 %v360_v25 }
 0x26b   :  { %v383_v32 = vmul.f32 %v843_v0, %v382_v55  ;;  %846 = vrsqrt.f32 %v360_v25 }
 0x26d   :  { %v384_v63 = vmul.f32 0.5, %v383_v32 }
 0x26f   :  { %v385_v19 = vsub.f32 1.5, %v384_v63 }
 0x270   :  { %v845_v15 = vpop.eup %844 }
 0x271   :  { %v678_v6 = vpop.xlane.xlu2 %677  ;;  %v847_v59 = vpop.eup %846  ;;  %v386_v1 = vmul.f32 %v843_v0, %v385_v19  ;;  %v701_v23 = vmul.f32 %v845_v15, %v687_v36  ;;  %vm707_vm11 = vweird.f32 %v845_v15 }
 0x272   :  { %v684_v2 = vmul.f32 %v678_v6, %v1195_v35  ;;  %v392_v3 = vmul.f32 %v847_v59, %v360_v25  ;;  %vm398_vm13 = vweird.f32 %v847_v59  ;;  %vm708_vm15 = vmor %vm706_vm14, %vm707_vm11 }
 0x273   :  { %v390_v20 = vsel %vm389_vm10, %v843_v0, %v386_v1  ;;  %v702_v21 = vmul.f32 %v845_v15, %v701_v23  ;;  %vm399_vm2 = vmor %vm397_vm1, %vm398_vm13 }
 0x274   :  { %v688_v18 = vadd.f32 1e-06, %v684_v2  ;;  %v403_v4 = vmul.f32 %v390_v20, %v1216_v54  ;;  %v393_v26 = vmul.f32 %v847_v59, %v392_v3 }
 0x275   :  { %v703_v28 = vmul.f32 0.5, %v702_v21 }
 0x276   :  { %848 = vrsqrt.f32 %v688_v18  ;;  %v410_v5 = vmul.f32 %v1251_v40, %v403_v4  ;;  %v394_v17 = vmul.f32 0.5, %v393_v26  ;;  %vm716_vm4 = vweird.f32 %v688_v18 }
 0x277   :  { %v704_v7 = vsub.f32 1.5, %v703_v28 }
 0x278   :  { %v417_v8 = vadd.f32 %v1256_v60, %v410_v5  ;;  %v395_v22 = vsub.f32 1.5, %v394_v17 }
 0x279   :  { %v681_v37 = vpop.xlane.xlu0 %680  ;;  %v705_v9 = vmul.f32 %v845_v15, %v704_v7 }
 0x27a   :  { %v685_v43 = vmul.f32 %v681_v37, %v1195_v35  ;;  %421 = vst.msk [vmem:[%s1326_s7 + $0x10] sm:$0xff] %vm64_vm0, %v417_v8  ;;  %v396_v54 = vmul.f32 %v847_v59, %v395_v22 }
 0x27b   :  { %v709_v16 = vsel %vm708_vm15, %v845_v15, %v705_v9 }
 0x27c   :  { %v849_v14 = vpop.eup %848  ;;  %v689_v13 = vadd.f32 1e-06, %v685_v43  ;;  %v731_v45 = vmul.f32 %v709_v16, %v1221_v12  ;;  %v400_v11 = vsel %vm399_vm2, %v847_v59, %v396_v54 }
 0x27d   :  { %v711_v10 = vmul.f32 %v849_v14, %v688_v18  ;;  %v404_v35 = vmul.f32 %v400_v11, %v1225_v56  ;;  %vm717_vm3 = vweird.f32 %v849_v14 }
 0x27e   :  { %850 = vrsqrt.f32 %v689_v13  ;;  %v735_v61 = vmul.f32 %v1251_v40, %v731_v45  ;;  %vm718_vm5 = vmor %vm716_vm4, %vm717_vm3  ;;  %vm726_vm7 = vweird.f32 %v689_v13 }
 0x27f   :  { %v712_v27 = vmul.f32 %v849_v14, %v711_v10  ;;  %v411_v24 = vmul.f32 %v1251_v40, %v404_v35 }
 0x280   :  { %v739_v33 = vadd.f32 %v1256_v60, %v735_v61 }
 0x281   :  { %v713_v38 = vmul.f32 0.5, %v712_v27  ;;  %v418_v41 = vadd.f32 %v1256_v60, %v411_v24 }
 0x282   :  { %788 = vst.msk [vmem:[%s1326_s7 + $0x28] sm:$0xff] %vm64_vm0, %v739_v33 }
 0x283   :  { %v714_v46 = vsub.f32 1.5, %v713_v38  ;;  %422 = vst.msk [vmem:[%s1326_s7 + $0x18] sm:$0x3f] %vm318_vm12, %v418_v41 }
 0x284   :  { %v851_v47 = vpop.eup %850 }
 0x285   :  { %v715_v12 = vmul.f32 %v849_v14, %v714_v46  ;;  %v721_v56 = vmul.f32 %v851_v47, %v689_v13  ;;  %vm727_vm6 = vweird.f32 %v851_v47 }
 0x286   :  { %vm728_vm8 = vmor %vm726_vm7, %vm727_vm6 }
 0x287   :  { %v719_v29 = vsel %vm718_vm5, %v849_v14, %v715_v12  ;;  %v722_v48 = vmul.f32 %v851_v47, %v721_v56 }
 0x288   :  { %v732_v50 = vmul.f32 %v719_v29, %v1234_v34 }
 0x289   :  { %v723_v52 = vmul.f32 0.5, %v722_v48 }
 0x28a   :  { %v736_v49 = vmul.f32 %v1251_v40, %v732_v50 }
 0x28b   :  { %v724_v53 = vsub.f32 1.5, %v723_v52 }
 0x28c   :  { %v740_v44 = vadd.f32 %v1256_v60, %v736_v49 }
 0x28d   :  { %v725_v62 = vmul.f32 %v851_v47, %v724_v53 }
 0x28e   :  { %789 = vst.msk [vmem:[%s1326_s7 + $0x30] sm:$0xff] %vm64_vm0, %v740_v44 }
 0x28f   :  { %v729_v51 = vsel %vm728_vm8, %v851_v47, %v725_v62 }
 0x290   :  { %v733_v31 = vmul.f32 %v729_v51, %v1240_v39 }
 0x292   :  { %v737_v34 = vmul.f32 %v1251_v40, %v733_v31 }
 0x294   :  { %v741_v30 = vadd.f32 %v1256_v60, %v737_v34 }
 0x296   :  { %790 = vst.msk [vmem:[%s1326_s7 + $0x38] sm:$0x3f] %vm318_vm12, %v741_v30 }

// kernel: encoder_forward.7
= control target key start
LH: loop header
LB: loop body
LE: loop exit
PB: predicated region body
PF: predicated region fallthrough
CT: control target
= control target key end

     0   :  { %vm69_vm0 = vcmask 261120   ;;  %vm178_vm1 = vcmask 130048   ;;  %v55_v12 = vlaneseq  ;;  %v1289_v18 = vmov 0.0   ;;  %s1723_s1 = inlined_call_operand.vmem [shape: bf16[32,16], index: 1, kind: input, shape index: {}]   ;;  %s1724_s0 = inlined_call_operand.vmem [shape: f32[2,16,32], index: 0, kind: input, shape index: {}]   ;;  %s1725_s2 = inlined_call_operand.vmem [shape: f32[1,16], index: 2, kind: input, shape index: {}]   ;;  %s1726_s3 = inlined_call_operand.vmem [shape: bf16[32,16], index: 3, kind: input, shape index: {}]   ;;  %s1727_s4 = inlined_call_operand.vmem [shape: f32[1,16], index: 4, kind: input, shape index: {}]   ;;  %s1728_s10 = inlined_call_operand.vmem [shape: f32[1,32], index: 10, kind: input, shape index: {}]   ;;  %s1729_s9 = inlined_call_operand.vmem [shape: bf16[16,32], index: 9, kind: input, shape index: {}]   ;;  %s1730_s5 = inlined_call_operand.vmem [shape: bf16[32,16], index: 5, kind: input, shape index: {}]   ;;  %s1731_s6 = inlined_call_operand.vmem [shape: f32[1,16], index: 6, kind: input, shape index: {}]   ;;  %s1732_s7 = inlined_call_operand.vmem [shape: bf16[32,16], index: 7, kind: input, shape index: {}]   ;;  %s1733_s8 = inlined_call_operand.vmem [shape: f32[1,16], index: 8, kind: input, shape index: {}]   ;;  %s1734_s11 = inlined_call_operand.vmem [shape: f32[1,32], index: 11, kind: input, shape index: {}]   ;;  %s1735_s12 = inlined_call_operand.vmem [shape: f32[1,32], index: 12, kind: input, shape index: {}]   ;;  %s1736_s13 = inlined_call_operand.vmem [shape: f32[2,30,32], index: 13, kind: output, shape index: {}]  }
   0x1   :  { %v1364_v0 = vld [vmem:[%s1723_s1 + $0x8] sm:$0xff]  ;;  %v1370_v1 = vld [vmem:[%s1723_s1] sm:$0xff]  ;;  %vm349_vm5 = vcmask 64512   ;;  %v1461_v63 = vld [vmem:[%s1724_s0 + $0x10] sm:$0xff]  ;;  %vm442_vm7 = vcmask 257024   ;;  %vm495_vm8 = vcmask 1043456  }
   0x2   :  { %158 = vmatpush.bf16.msra.mxu0 %v1364_v0  ;;  %v1375_v2 = vld [vmem:[%s1724_s0] sm:$0xff]  ;;  %v1380_v3 = vld [vmem:[%s1724_s0 + $0x8] sm:$0xff]  ;;  %v56_v13 = vshrl.u32 %v55_v12, 7  ;;  %v58_v15 = vand.u32 127, %v55_v12  ;;  %vm492_vm9 = vcmask 31744   ;;  %vm592_vm11 = vcmask 254976  }
   0x3   :  { %v133_v4 = vpack.c.bf16 %v1380_v3, %v1375_v2  ;;  %v1231_v5 = vld [vmem:[%s1726_s3] sm:$0xff]  ;;  %v1232_v20 = vld [vmem:[%s1726_s3 + $0x8] sm:$0xff] }
   0x4   :  { %189 = vmatpush.bf16.msra.mxu1 %v1231_v5  ;;  %v1392_v7 = vld [vmem:[%s1725_s2] ss:$0 sm:$0xff]  ;;  %v59_v16 = vmul.u32 2, %v56_v13  ;;  %v1234_v28 = vld [vmem:[%s1730_s5 + $0x8] sm:$0xff] }
   0x5   :  { %v1412_v26 = vld [vmem:[%s1729_s9] sm:$0xff]  ;;  %v1236_v50 = vld [vmem:[%s1732_s7 + $0x8] sm:$0xff] }
   0x6   :  { %159 = vmatpush.bf16.msra.mxu0 %v1370_v1  ;;  %vm60_vm2 = vcmp.eq.s32.totalorder %v58_v15, %v59_v16  ;;  %v63_v23 = vadd.s32 1, %v59_v16  ;;  %v1233_v27 = vld [vmem:[%s1730_s5] sm:$0xff] }
   0x7   :  { %v1397_v19 = vsel %vm60_vm2, 1.0, %v1289_v18  ;;  %v1246_v29 = vld [vmem:[%s1727_s4] ss:$0 sm:$0xff] }
   0x8   :  { %vm64_vm3 = vcmp.eq.s32.totalorder %v58_v15, %v63_v23  ;;  %294 = vmatpush.bf16.msrb.mxu1 %v1412_v26  ;;  %v1432_v40 = vld [vmem:[%s1728_s10] ss:$0 sm:$0xff] }
   0x9   :  { %1127 = vmatmul.msk.bf16.vlgmr.msra.gmra.mxu0 %vm69_vm0, %v133_v4  ;;  %v1405_v25 = vsel %vm64_vm3, 1.0, %v1289_v18  ;;  %v1235_v49 = vld [vmem:[%s1732_s7] sm:$0xff] }
   0xa   :  { %389 = vmatpush.bf16.msrb.mxu0 %v1234_v28  ;;  %v1248_v52 = vld [vmem:[%s1731_s6] ss:$0 sm:$0xff] }
   0xe   :  { %536 = vmatpush.bf16.msra.mxu0 %v1236_v50 }
  0x86   :  { %v161_v6 = vpop.f32.mrf.mxu0 }
  0x87   :  { %v162_v9 = vadd.f32 %v1392_v7, %v161_v6 }
  0x8e   :  { %v163_v8 = vpop.f32.mrf.mxu0 }
  0x8f   :  { %v164_v10 = vadd.f32 %v1392_v7, %v163_v8 }
  0x91   :  { %v171_v11 = vpack.c.bf16 %v164_v10, %v162_v9  ;;  %v1237_v10 = vld [vmem:[%s1726_s3] sm:$0xff] }
  0x93   :  { %1132 = vmatmul.msk.bf16.vlgmr.msra.gmra.mxu1 %vm178_vm1, %v171_v11 }
  0x94   :  { %436 = vmatpush.bf16.msra.mxu1 %v1412_v26 }
 0x110   :  { %v191_v14 = vpop.f32.mrf.mxu1 }
 0x118   :  { %v193_v17 = vpop.f32.mrf.mxu1 }
 0x119   :  { %213 = vmatpush.msra.mxu3 %v193_v17 }
 0x11b   :  { %214 = vmatpush.msra.mxu3 %v191_v14 }
 0x11c   :  { %1133 = vmatmul.msk.f32.vlgmr.msra.gmra.mxu3 %vm178_vm1, %v1397_v19 }
 0x11d   :  { %236 = vmatpush.bf16.msrb.mxu3 %v1232_v20 }
 0x124   :  { %1138 = vmatmul.msk.bf16.vlgmr.msrb.gmra.mxu3 %vm178_vm1, %v171_v11 }
 0x19f   :  { %v216_v21 = vpop.f32.mrf.mxu3 }
 0x1a0   :  { %v222_v30 = vadd.f32 %v1246_v29, %v216_v21  ;;  %v1249_v21 = vld [vmem:[%s1733_s8] ss:$0 sm:$0xff] }
 0x1a7   :  { %v238_v22 = vpop.f32.mrf.mxu3 }
 0x1af   :  { %v240_v24 = vpop.f32.mrf.mxu3 }
 0x1b0   :  { %260 = vmatpush.msra.mxu2 %v240_v24 }
 0x1b2   :  { %261 = vmatpush.msra.mxu2 %v238_v22 }
 0x1b3   :  { %1139 = vmatmul.msk.f32.vlgmr.msra.gmra.mxu2 %vm178_vm1, %v1405_v25 }
 0x1b4   :  { %343 = vmatpush.bf16.msrb.mxu2 %v1233_v27 }
 0x1b8   :  { %486 = vmatpush.bf16.msra.mxu2 %v1235_v49  ;;  %v1250_v49 = vld [vmem:[%s1727_s4] ss:$0 sm:$0xff] }
 0x236   :  { %v263_v31 = vpop.f32.mrf.mxu2 }
 0x237   :  { %v266_v32 = vadd.f32 %v263_v31, %v222_v30  ;;  %v621_v30 = vsel %vm69_vm0, %v1461_v63, 0.0 }
 0x238   :  { %622 = vadd.xlane.f32.xlu2 %v621_v30  ;;  %v1241_v30 = vld [vmem:[%s1732_s7] sm:$0xff] }
 0x239   :  { %v267_v33 = vmul.f32 0.999995, %v266_v32 }
 0x23b   :  { %v269_v34 = vmin.f32 %v267_v33, 0.0  ;;  %vm268_vm4 = vcmp.gt.f32.partialorder %v267_v33, 0.0 }
 0x23d   :  { %v270_v35 = vmul.f32 1.442695, %v269_v34 }
 0x23f   :  { %1255 = vpow2.f32 %v270_v35 }
 0x245   :  { %v1256_v36 = vpop.eup %1255 }
 0x246   :  { %v1140_v37 = vadd.f32 -1.0, %v1256_v36  ;;  %v1238_v36 = vld [vmem:[%s1726_s3 + $0x8] sm:$0xff] }
 0x248   :  { %v273_v38 = vsel %vm268_vm4, %v267_v33, %v1140_v37 }
 0x249   :  { %v274_v39 = vpack.c.bf16 %v273_v38, %v273_v38 }
 0x24b   :  { %1145 = vmatmul.msk.bf16.vlgmr.msrb.gmra.mxu1 %vm178_vm1, %v274_v39  ;;  %1150 = vmatmul.msk.bf16.vlgmr.msrb.gmra.mxu2 %vm178_vm1, %v274_v39 }
 0x24c   :  { %1156 = vmatmul.msk.bf16.vlgmr.msrb.gmra.mxu0 %vm178_vm1, %v274_v39  ;;  %586 = vmatpush.bf16.msrb.mxu1 %v1412_v26 }
 0x24d   :  { %682 = vmatpush.bf16.msrb.mxu2 %v1364_v0  ;;  %v1466_v0 = vld [vmem:[%s1724_s0 + $0x18] sm:$0xff] }
 0x251   :  { %683 = vmatpush.bf16.msrb.mxu2 %v1370_v1  ;;  %v672_v1 = vpack.c.bf16 %v1466_v0, %v1461_v63 }
 0x2c8   :  { %v296_v41 = vpop.f32.mrf.mxu1 }
 0x2c9   :  { %v1435_v42 = vadd.f32 %v1432_v40, %v296_v41  ;;  %v391_v43 = vpop.f32.mrf.mxu0 }
 0x2cb   :  { %v300_v44 = vsel %vm69_vm0, %v1435_v42, 0.0 }
 0x2cc   :  { %301 = vadd.xlane.f32.xlu1 %v300_v44 }
 0x2ce   :  { %v345_v45 = vpop.f32.mrf.mxu2 }
 0x2cf   :  { %367 = vmatpush.msra.mxu3 %v345_v45 }
 0x2d0   :  { %v298_v46 = vpop.f32.mrf.mxu1  ;;  %1151 = vmatmul.msk.f32.vlgmr.msra.gmra.mxu3 %vm349_vm5, %v1397_v19 }
 0x2d1   :  { %v393_v47 = vpop.f32.mrf.mxu0  ;;  %412 = vmatpush.msrb.mxu3 %v391_v43  ;;  %v1239_v46 = vld [vmem:[%s1730_s5] sm:$0xff] }
 0x2d2   :  { %v1240_v47 = vld [vmem:[%s1730_s5 + $0x8] sm:$0xff] }
 0x2d6   :  { %v347_v48 = vpop.f32.mrf.mxu2 }
 0x2d7   :  { %v70_v48 = vsel %vm69_vm0, %v1375_v2, 0.0 }
 0x2d8   :  { %1157 = vmatmul.msk.f32.vlgmr.msrb.gmra.mxu3 %vm349_vm5, %v1405_v25  ;;  %71 = vadd.xlane.f32.xlu0 %v70_v48 }
 0x353   :  { %v369_v51 = vpop.f32.mrf.mxu3 }
 0x354   :  { %v375_v53 = vadd.f32 %v1248_v52, %v369_v51 }
 0x35b   :  { %v414_v54 = vpop.f32.mrf.mxu3 }
 0x35c   :  { %v417_v55 = vadd.f32 %v414_v54, %v375_v53 }
 0x35e   :  { %v418_v56 = vmul.f32 0.999995, %v417_v55 }
 0x360   :  { %v420_v57 = vmin.f32 %v418_v56, 0.0  ;;  %vm419_vm6 = vcmp.gt.f32.partialorder %v418_v56, 0.0 }
 0x362   :  { %v421_v58 = vmul.f32 1.442695, %v420_v57 }
 0x364   :  { %1257 = vpow2.f32 %v421_v58 }
 0x36a   :  { %v1258_v59 = vpop.eup %1257 }
 0x36b   :  { %v1158_v60 = vadd.f32 -1.0, %v1258_v59 }
 0x36d   :  { %v424_v61 = vsel %vm419_vm6, %v418_v56, %v1158_v60  ;;  %v1290_v60 = vmov 32.0  }
 0x36e   :  { %v425_v62 = vpack.c.bf16 %v424_v61, %v424_v61 }
 0x370   :  { %1159 = vmatmul.msk.bf16.vlgmr.msra.gmra.mxu1 %vm178_vm1, %v425_v62  ;;  %1164 = vmatmul.msk.bf16.vlgmr.msra.gmra.mxu2 %vm178_vm1, %v425_v62 }
 0x371   :  { %1171 = vmatmul.msk.bf16.vlgmr.msra.gmra.mxu0 %vm178_vm1, %v425_v62  ;;  %802 = vmatpush.bf16.msra.mxu2 %v1412_v26 }
 0x380   :  { %1180 = vmatmul.msk.bf16.vlgmr.msrb.gmra.mxu2 %vm69_vm0, %v672_v1 }
 0x381   :  { %939 = vmatpush.bf16.msrb.mxu2 %v1412_v26 }
 0x3ed   :  { %v438_v4 = vpop.f32.mrf.mxu1 }
 0x3ee   :  { %v1473_v5 = vadd.f32 %v1432_v40, %v438_v4  ;;  %v538_v6 = vpop.f32.mrf.mxu0 }
 0x3f0   :  { %v443_v8 = vsel %vm442_vm7, %v1473_v5, 0.0 }
 0x3f1   :  { %444 = vadd.xlane.f32.xlu1 %v443_v8  ;;  %v72_v8 = vpop.xlane.xlu0 %71 }
 0x3f3   :  { %v488_v9 = vpop.f32.mrf.mxu2 }
 0x3f4   :  { %1165 = vmatpush.msk.msra.mxu3 %vm495_vm8, %v488_v9 }
 0x3f5   :  { %v440_v11 = vpop.f32.mrf.mxu1  ;;  %1166 = vmatmul.msk.f32.vlgmr.msra.gmra.mxu3 %vm492_vm9, %v1397_v19 }
 0x3f6   :  { %v540_v12 = vpop.f32.mrf.mxu0  ;;  %1172 = vmatpush.msk.msrb.mxu3 %vm495_vm8, %v538_v6  ;;  %v1525_v11 = vpop.xlane.xlu1 %301 }
 0x3f8   :  { %712 = vmatpush.bf16.msra.mxu3 %v1237_v10 }
 0x3fb   :  { %v490_v13 = vpop.f32.mrf.mxu2 }
 0x3fd   :  { %1173 = vmatmul.msk.f32.vlgmr.msrb.gmra.mxu3 %vm492_vm9, %v1405_v25 }
 0x3fe   :  { %851 = vmatpush.bf16.msrb.mxu3 %v1239_v46 }
 0x403   :  { %v685_v14 = vpop.f32.mrf.mxu2 }
 0x404   :  { %v686_v16 = vadd.f32 %v1392_v7, %v685_v14 }
 0x40b   :  { %v687_v15 = vpop.f32.mrf.mxu2 }
 0x40c   :  { %v688_v17 = vadd.f32 %v1392_v7, %v687_v15 }
 0x40e   :  { %v695_v18 = vpack.c.bf16 %v688_v17, %v686_v16 }
 0x410   :  { %1185 = vmatmul.msk.bf16.vlgmr.msra.gmra.mxu3 %vm178_vm1, %v695_v18 }
 0x411   :  { %988 = vmatpush.bf16.msra.mxu3 %v1241_v30 }
 0x478   :  { %v516_v20 = vpop.f32.mrf.mxu3 }
 0x479   :  { %v522_v22 = vadd.f32 %v1249_v21, %v516_v20 }
 0x480   :  { %v564_v23 = vpop.f32.mrf.mxu3 }
 0x481   :  { %v567_v24 = vadd.f32 %v564_v23, %v522_v22 }
 0x483   :  { %v568_v27 = vmul.f32 0.999995, %v567_v24 }
 0x485   :  { %v570_v28 = vmin.f32 %v568_v27, 0.0  ;;  %vm569_vm10 = vcmp.gt.f32.partialorder %v568_v27, 0.0 }
 0x487   :  { %v571_v29 = vmul.f32 1.442695, %v570_v28 }
 0x489   :  { %1259 = vpow2.f32 %v571_v29 }
 0x48f   :  { %v1260_v7 = vpop.eup %1259 }
 0x490   :  { %v1174_v31 = vadd.f32 -1.0, %v1260_v7  ;;  %v1242_v7 = vld [vmem:[%s1732_s7 + $0x8] sm:$0xff] }
 0x492   :  { %v574_v32 = vsel %vm569_vm10, %v568_v27, %v1174_v31 }
 0x493   :  { %v575_v33 = vpack.c.bf16 %v574_v32, %v574_v32  ;;  %v714_v34 = vpop.f32.mrf.mxu3 }
 0x495   :  { %1175 = vmatmul.msk.bf16.vlgmr.msrb.gmra.mxu1 %vm178_vm1, %v575_v33  ;;  %v1251_v33 = vld [vmem:[%s1731_s6] ss:$0 sm:$0xff] }
 0x49b   :  { %v716_v35 = vpop.f32.mrf.mxu3 }
 0x49c   :  { %733 = vmatpush.msrb.mxu0 %v716_v35  ;;  %v73_v35 = vsel %vm69_vm0, %v1380_v3, 0.0 }
 0x49d   :  { %74 = vadd.xlane.f32.xlu0 %v73_v35 }
 0x49e   :  { %734 = vmatpush.msrb.mxu0 %v714_v34 }
 0x49f   :  { %1186 = vmatmul.msk.f32.vlgmr.msrb.gmra.mxu0 %vm178_vm1, %v1397_v19 }
 0x4a0   :  { %756 = vmatpush.bf16.msra.mxu0 %v1238_v36 }
 0x4a4   :  { %894 = vmatpush.bf16.msrb.mxu0 %v1240_v47 }
 0x4a7   :  { %1191 = vmatmul.msk.bf16.vlgmr.msra.gmra.mxu0 %vm178_vm1, %v695_v18  ;;  %v445_v18 = vpop.xlane.xlu1 %444 }
 0x4a8   :  { %1034 = vmatpush.bf16.msra.mxu0 %v1242_v7 }
 0x512   :  { %v588_v37 = vpop.f32.mrf.mxu1 }
 0x513   :  { %v1502_v38 = vadd.f32 %v1432_v40, %v588_v37 }
 0x515   :  { %v593_v39 = vsel %vm592_vm11, %v1502_v38, 0.0 }
 0x516   :  { %594 = vadd.xlane.f32.xlu2 %v593_v39 }
 0x51a   :  { %v590_v41 = vpop.f32.mrf.mxu1 }
 0x51c   :  { %v736_v43 = vpop.f32.mrf.mxu0 }
 0x51d   :  { %v742_v50 = vadd.f32 %v1250_v49, %v736_v43 }
 0x524   :  { %v758_v44 = vpop.f32.mrf.mxu0 }
 0x52c   :  { %v760_v45 = vpop.f32.mrf.mxu0 }
 0x52d   :  { %777 = vmatpush.msra.mxu1 %v760_v45 }
 0x52f   :  { %778 = vmatpush.msra.mxu1 %v758_v44 }
 0x530   :  { %1192 = vmatmul.msk.f32.vlgmr.msra.gmra.mxu1 %vm178_vm1, %v1405_v25 }
 0x5ad   :  { %v780_v51 = vpop.f32.mrf.mxu1 }
 0x5ae   :  { %v783_v52 = vadd.f32 %v780_v51, %v742_v50 }
 0x5b0   :  { %v784_v53 = vmul.f32 0.999995, %v783_v52 }
 0x5b2   :  { %v786_v54 = vmin.f32 %v784_v53, 0.0  ;;  %vm785_vm12 = vcmp.gt.f32.partialorder %v784_v53, 0.0 }
 0x5b4   :  { %v787_v55 = vmul.f32 1.442695, %v786_v54 }
 0x5b6   :  { %1261 = vpow2.f32 %v787_v55 }
 0x5b7   :  { %1263 = vrcp.f32 %v1290_v60 }
 0x5bc   :  { %v1262_v56 = vpop.eup %1261 }
 0x5bd   :  { %v1193_v57 = vadd.f32 -1.0, %v1262_v56  ;;  %v1264_v61 = vpop.eup %1263 }
 0x5be   :  { %v77_v62 = vmul.f32 32.0, %v1264_v61  ;;  %vm81_vm13 = vweird.f32 %v1264_v61 }
 0x5bf   :  { %v790_v58 = vsel %vm785_vm12, %v784_v53, %v1193_v57 }
 0x5c0   :  { %v791_v59 = vpack.c.bf16 %v790_v58, %v790_v58  ;;  %v78_v1 = vsub.f32 1.0, %v77_v62 }
 0x5c2   :  { %1194 = vmatmul.msk.bf16.vlgmr.msra.gmra.mxu2 %vm178_vm1, %v791_v59  ;;  %1200 = vmatmul.msk.bf16.vlgmr.msrb.gmra.mxu3 %vm178_vm1, %v791_v59  ;;  %v79_v4 = vmul.f32 %v1264_v61, %v78_v1  ;;  %v1569_v1 = vld [vmem:[%s1735_s12] ss:$0 sm:$0xff] }
 0x5c3   :  { %1206 = vmatmul.msk.bf16.vlgmr.msrb.gmra.mxu0 %vm178_vm1, %v791_v59  ;;  %1082 = vmatpush.bf16.msra.mxu2 %v1412_v26  ;;  %v1564_v59 = vld [vmem:[%s1734_s11] ss:$0 sm:$0xff] }
 0x5c4   :  { %v80_v6 = vadd.f32 %v1264_v61, %v79_v4 }
 0x5c6   :  { %v1523_v10 = vsel %vm81_vm13, %v1264_v61, %v80_v6 }
 0x5c7   :  { %v83_v12 = vmul.f32 %v1523_v10, %v72_v8  ;;  %v446_v21 = vmul.f32 %v445_v18, %v1523_v10  ;;  %v1587_v18 = vpop.xlane.xlu2 %622 }
 0x5c9   :  { %v85_v15 = vsub.f32 %v1375_v2, %v83_v12  ;;  %v1541_v2 = vsub.f32 %v1473_v5, %v446_v21 }
 0x5cb   :  { %v87_v20 = vmul.f32 %v85_v15, %v85_v15  ;;  %v448_v27 = vmul.f32 %v1541_v2, %v1541_v2 }
 0x5cd   :  { %v89_v24 = vsel %vm69_vm0, %v87_v20, 0.0  ;;  %v449_v28 = vsel %vm442_vm7, %v448_v27, 0.0  ;;  %v75_v20 = vpop.xlane.xlu0 %74 }
 0x5cf   :  { %v595_v7 = vpop.xlane.xlu2 %594 }
 0x640   :  { %v896_v9 = vpop.f32.mrf.mxu0 }
 0x645   :  { %v804_v13 = vpop.f32.mrf.mxu2  ;;  %v853_v14 = vpop.f32.mrf.mxu3 }
 0x646   :  { %v1529_v26 = vadd.f32 %v1432_v40, %v804_v13  ;;  %872 = vmatpush.msrb.mxu1 %v853_v14 }
 0x647   :  { %1201 = vmatmul.msk.f32.vlgmr.msrb.gmra.mxu1 %vm349_vm5, %v1397_v19 }
 0x648   :  { %v898_v16 = vpop.f32.mrf.mxu0  ;;  %915 = vmatpush.msra.mxu1 %v896_v9  ;;  %v808_v17 = vsel %vm69_vm0, %v1529_v26, 0.0 }
 0x649   :  { %809 = vadd.xlane.f32.xlu1 %v808_v17 }
 0x64d   :  { %v806_v22 = vpop.f32.mrf.mxu2  ;;  %v855_v23 = vpop.f32.mrf.mxu3 }
 0x64e   :  { %v84_v22 = vmul.f32 %v1523_v10, %v75_v20 }
 0x64f   :  { %1207 = vmatmul.msk.f32.vlgmr.msra.gmra.mxu1 %vm349_vm5, %v1405_v25 }
 0x651   :  { %90 = vadd.xlane.f32.xlu1 %v89_v24 }
 0x659   :  { %450 = vadd.xlane.f32.xlu1 %v449_v28 }
 0x6bc   :  { %v1546_v29 = vpop.xlane.xlu1 %809 }
 0x6c4   :  { %v874_v5 = vpop.f32.mrf.mxu1  ;;  %v91_v31 = vpop.xlane.xlu1 %90 }
 0x6c5   :  { %v95_v32 = vmul.f32 %v91_v31, %v1523_v10  ;;  %v880_v36 = vadd.f32 %v1251_v33, %v874_v5  ;;  %v596_v31 = vmul.f32 %v595_v7, %v1523_v10 }
 0x6c7   :  { %v97_v34 = vadd.f32 1e-05, %v95_v32 }
 0x6c9   :  { %1265 = vrsqrt.f32 %v97_v34  ;;  %vm105_vm14 = vweird.f32 %v97_v34 }
 0x6cc   :  { %v917_v37 = vpop.f32.mrf.mxu1  ;;  %v451_v39 = vpop.xlane.xlu1 %450 }
 0x6cd   :  { %v920_v41 = vadd.f32 %v917_v37, %v880_v36  ;;  %v452_v43 = vmul.f32 %v451_v39, %v1523_v10 }
 0x6cf   :  { %v1266_v44 = vpop.eup %1265  ;;  %v921_v45 = vmul.f32 0.999995, %v920_v41  ;;  %v453_v46 = vadd.f32 1e-05, %v452_v43 }
 0x6d0   :  { %v100_v47 = vmul.f32 %v1266_v44, %v97_v34  ;;  %vm106_vm15 = vweird.f32 %v1266_v44 }
 0x6d1   :  { %v923_v48 = vmin.f32 %v921_v45, 0.0  ;;  %1267 = vrsqrt.f32 %v453_v46  ;;  %vm107_vm2 = vmor %vm105_vm14, %vm106_vm15  ;;  %vm922_vm3 = vcmp.gt.f32.partialorder %v921_v45, 0.0  ;;  %vm460_vm5 = vweird.f32 %v453_v46 }
 0x6d2   :  { %v101_v49 = vmul.f32 %v1266_v44, %v100_v47 }
 0x6d3   :  { %v924_v50 = vmul.f32 1.442695, %v923_v48 }
 0x6d4   :  { %v102_v51 = vmul.f32 0.5, %v101_v49 }
 0x6d5   :  { %1269 = vpow2.f32 %v924_v50 }
 0x6d6   :  { %v103_v52 = vsub.f32 1.5, %v102_v51 }
 0x6d7   :  { %v1268_v53 = vpop.eup %1267 }
 0x6d8   :  { %v104_v54 = vmul.f32 %v1266_v44, %v103_v52  ;;  %v455_v55 = vmul.f32 %v1268_v53, %v453_v46  ;;  %vm461_vm4 = vweird.f32 %v1268_v53 }
 0x6d9   :  { %vm462_vm6 = vmor %vm460_vm5, %vm461_vm4 }
 0x6da   :  { %v108_v56 = vsel %vm107_vm2, %v1266_v44, %v104_v54  ;;  %v456_v57 = vmul.f32 %v1268_v53, %v455_v55  ;;  %v1254_v44 = vld [vmem:[%s1733_s8] ss:$0 sm:$0xff] }
 0x6db   :  { %v1270_v58 = vpop.eup %1269  ;;  %v119_v60 = vmul.f32 %v108_v56, %v85_v15 }
 0x6dc   :  { %v1208_v61 = vadd.f32 -1.0, %v1270_v58  ;;  %v457_v62 = vmul.f32 0.5, %v456_v57 }
 0x6dd   :  { %v124_v4 = vmul.f32 %v1564_v59, %v119_v60 }
 0x6de   :  { %v927_v6 = vsel %vm922_vm3, %v921_v45, %v1208_v61  ;;  %v458_v8 = vsub.f32 1.5, %v457_v62 }
 0x6df   :  { %v129_v9 = vadd.f32 %v1569_v1, %v124_v4  ;;  %v928_v12 = vpack.c.bf16 %v927_v6, %v927_v6 }
 0x6e0   :  { %v459_v13 = vmul.f32 %v1268_v53, %v458_v8 }
 0x6e1   :  { %131 = vst.msk [vmem:[%s1736_s13] sm:$0xff] %vm69_vm0, %v129_v9  ;;  %1209 = vmatmul.msk.bf16.vlgmr.msrb.gmra.mxu2 %vm178_vm1, %v928_v12  ;;  %1215 = vmatmul.msk.bf16.vlgmr.msra.gmra.mxu3 %vm178_vm1, %v928_v12 }
 0x6e2   :  { %v463_v14 = vsel %vm462_vm6, %v1268_v53, %v459_v13  ;;  %1222 = vmatmul.msk.bf16.vlgmr.msra.gmra.mxu0 %vm178_vm1, %v928_v12 }
 0x6e3   :  { %v464_v15 = vmul.f32 %v463_v14, %v1541_v2  ;;  %v86_v2 = vsub.f32 %v1380_v3, %v84_v22  ;;  %v1605_v3 = vsub.f32 %v1502_v38, %v596_v31  ;;  %v624_v38 = vsel %vm69_vm0, %v1466_v0, 0.0 }
 0x6e4   :  { %625 = vadd.xlane.f32.xlu0 %v624_v38 }
 0x6e5   :  { %v465_v16 = vmul.f32 %v1564_v59, %v464_v15  ;;  %v88_v5 = vmul.f32 %v86_v2, %v86_v2  ;;  %v598_v35 = vmul.f32 %v1605_v3, %v1605_v3 }
 0x6e7   :  { %v466_v17 = vadd.f32 %v1569_v1, %v465_v16  ;;  %v92_v34 = vsel %vm69_vm0, %v88_v5, 0.0  ;;  %v599_v37 = vsel %vm592_vm11, %v598_v35, 0.0 }
 0x6e9   :  { %467 = vst.msk [vmem:[%s1736_s13 + $0x18] sm:$0xf] %vm442_vm7, %v466_v17 }
 0x757   :  { %v626_v38 = vpop.xlane.xlu0 %625 }
 0x75f   :  { %v1036_v21 = vpop.f32.mrf.mxu0 }
 0x764   :  { %v941_v23 = vpop.f32.mrf.mxu2  ;;  %v990_v24 = vpop.f32.mrf.mxu3 }
 0x765   :  { %v1591_v27 = vadd.f32 %v1432_v40, %v941_v23  ;;  %1216 = vmatpush.msk.msrb.mxu1 %vm495_vm8, %v990_v24 }
 0x766   :  { %1217 = vmatmul.msk.f32.vlgmr.msrb.gmra.mxu1 %vm492_vm9, %v1397_v19  ;;  %v811_v19 = vmul.f32 %v1546_v29, %v1523_v10 }
 0x767   :  { %v1038_v28 = vpop.f32.mrf.mxu0  ;;  %1223 = vmatpush.msk.msra.mxu1 %vm495_vm8, %v1036_v21  ;;  %v945_v30 = vsel %vm442_vm7, %v1591_v27, 0.0 }
 0x768   :  { %946 = vadd.xlane.f32.xlu2 %v945_v30  ;;  %v1612_v36 = vsub.f32 %v1529_v26, %v811_v19 }
 0x76a   :  { %v813_v39 = vmul.f32 %v1612_v36, %v1612_v36 }
 0x76c   :  { %v943_v32 = vpop.f32.mrf.mxu2  ;;  %v992_v33 = vpop.f32.mrf.mxu3 }
 0x76e   :  { %1224 = vmatmul.msk.f32.vlgmr.msra.gmra.mxu1 %vm492_vm9, %v1405_v25  ;;  %v814_v25 = vsel %vm69_vm0, %v813_v39, 0.0 }
 0x770   :  { %93 = vadd.xlane.f32.xlu2 %v92_v34 }
 0x778   :  { %600 = vadd.xlane.f32.xlu2 %v599_v37 }
 0x780   :  { %815 = vadd.xlane.f32.xlu2 %v814_v25 }
 0x7db   :  { %v1620_v29 = vpop.xlane.xlu2 %946 }
 0x7e3   :  { %v1014_v41 = vpop.f32.mrf.mxu1  ;;  %v94_v43 = vpop.xlane.xlu2 %93 }
 0x7e4   :  { %v96_v26 = vmul.f32 %v94_v43, %v1523_v10  ;;  %v1020_v46 = vadd.f32 %v1254_v44, %v1014_v41  ;;  %v628_v41 = vmul.f32 %v626_v38, %v1523_v10 }
 0x7e6   :  { %v98_v45 = vadd.f32 1e-05, %v96_v26  ;;  %v630_v43 = vsub.f32 %v1466_v0, %v628_v41 }
 0x7e8   :  { %1271 = vrsqrt.f32 %v98_v45  ;;  %vm115_vm8 = vweird.f32 %v98_v45  ;;  %v632_v26 = vmul.f32 %v630_v43, %v630_v43 }
 0x7ea   :  { %v636_v44 = vsel %vm69_vm0, %v632_v26, 0.0 }
 0x7eb   :  { %v1060_v47 = vpop.f32.mrf.mxu1  ;;  %v601_v48 = vpop.xlane.xlu2 %600  ;;  %637 = vadd.xlane.f32.xlu1 %v636_v44 }
 0x7ec   :  { %v1063_v49 = vadd.f32 %v1060_v47, %v1020_v46  ;;  %v602_v50 = vmul.f32 %v601_v48, %v1523_v10 }
 0x7ee   :  { %v1272_v51 = vpop.eup %1271  ;;  %v1064_v52 = vmul.f32 0.999995, %v1063_v49  ;;  %v603_v53 = vadd.f32 1e-05, %v602_v50  ;;  %v627_v49 = vmul.f32 %v1587_v18, %v1523_v10 }
 0x7ef   :  { %v110_v54 = vmul.f32 %v1272_v51, %v98_v45  ;;  %vm116_vm9 = vweird.f32 %v1272_v51 }
 0x7f0   :  { %v1066_v55 = vmin.f32 %v1064_v52, 0.0  ;;  %1273 = vrsqrt.f32 %v603_v53  ;;  %vm117_vm10 = vmor %vm115_vm8, %vm116_vm9  ;;  %vm1065_vm12 = vcmp.gt.f32.partialorder %v1064_v52, 0.0  ;;  %vm610_vm14 = vweird.f32 %v603_v53 }
 0x7f1   :  { %v111_v56 = vmul.f32 %v1272_v51, %v110_v54 }
 0x7f2   :  { %v1067_v57 = vmul.f32 1.442695, %v1066_v55 }
 0x7f3   :  { %v112_v58 = vmul.f32 0.5, %v111_v56  ;;  %v816_v60 = vpop.xlane.xlu2 %815 }
 0x7f4   :  { %1275 = vpow2.f32 %v1067_v57  ;;  %v817_v61 = vmul.f32 %v816_v60, %v1523_v10 }
 0x7f5   :  { %v113_v62 = vsub.f32 1.5, %v112_v58 }
 0x7f6   :  { %v1274_v4 = vpop.eup %1273  ;;  %v818_v6 = vadd.f32 1e-05, %v817_v61 }
 0x7f7   :  { %v114_v8 = vmul.f32 %v1272_v51, %v113_v62  ;;  %v605_v9 = vmul.f32 %v1274_v4, %v603_v53  ;;  %vm611_vm13 = vweird.f32 %v1274_v4 }
 0x7f8   :  { %1277 = vrsqrt.f32 %v818_v6  ;;  %vm612_vm15 = vmor %vm610_vm14, %vm611_vm13  ;;  %vm825_vm3 = vweird.f32 %v818_v6 }
 0x7f9   :  { %v118_v12 = vsel %vm117_vm10, %v1272_v51, %v114_v8  ;;  %v606_v13 = vmul.f32 %v1274_v4, %v605_v9  ;;  %v1664_v51 = vsub.f32 %v1461_v63, %v627_v49 }
 0x7fa   :  { %v1276_v14 = vpop.eup %1275  ;;  %v120_v15 = vmul.f32 %v118_v12, %v86_v2 }
 0x7fb   :  { %v1225_v16 = vadd.f32 -1.0, %v1276_v14  ;;  %v607_v17 = vmul.f32 0.5, %v606_v13 }
 0x7fc   :  { %v125_v20 = vmul.f32 %v1564_v59, %v120_v15 }
 0x7fd   :  { %v1070_v21 = vsel %vm1065_vm12, %v1064_v52, %v1225_v16  ;;  %v608_v22 = vsub.f32 1.5, %v607_v17 }
 0x7fe   :  { %v1278_v23 = vpop.eup %1277  ;;  %v130_v24 = vadd.f32 %v1569_v1, %v125_v20  ;;  %v1071_v28 = vpack.c.bf16 %v1070_v21, %v1070_v21 }
 0x7ff   :  { %v609_v30 = vmul.f32 %v1274_v4, %v608_v22  ;;  %v820_v7 = vmul.f32 %v1278_v23, %v818_v6  ;;  %vm826_vm2 = vweird.f32 %v1278_v23 }
 0x800   :  { %132 = vst.msk [vmem:[%s1736_s13 + $0x8] sm:$0xff] %vm69_vm0, %v130_v24  ;;  %1226 = vmatmul.msk.bf16.vlgmr.msra.gmra.mxu2 %vm178_vm1, %v1071_v28  ;;  %vm827_vm4 = vmor %vm825_vm3, %vm826_vm2 }
 0x801   :  { %v613_v2 = vsel %vm612_vm15, %v1274_v4, %v609_v30  ;;  %v821_v5 = vmul.f32 %v1278_v23, %v820_v7 }
 0x802   :  { %v614_v31 = vmul.f32 %v613_v2, %v1605_v3 }
 0x803   :  { %v822_v32 = vmul.f32 0.5, %v821_v5 }
 0x804   :  { %v615_v33 = vmul.f32 %v1564_v59, %v614_v31 }
 0x805   :  { %v823_v34 = vsub.f32 1.5, %v822_v32 }
 0x806   :  { %v616_v19 = vadd.f32 %v1569_v1, %v615_v33 }
 0x807   :  { %v824_v35 = vmul.f32 %v1278_v23, %v823_v34 }
 0x808   :  { %617 = vst.msk [vmem:[%s1736_s13 + $0x1c] sm:$0x3] %vm592_vm11, %v616_v19 }
 0x809   :  { %v828_v37 = vsel %vm827_vm4, %v1278_v23, %v824_v35 }
 0x80a   :  { %v829_v39 = vmul.f32 %v828_v37, %v1612_v36  ;;  %v303_v36 = vmul.f32 %v1525_v11, %v1523_v10 }
 0x80c   :  { %v830_v3 = vmul.f32 %v1564_v59, %v829_v39  ;;  %v1656_v47 = vsub.f32 %v1435_v42, %v303_v36  ;;  %v948_v42 = vmul.f32 %v1620_v29, %v1523_v10 }
 0x80e   :  { %v831_v25 = vadd.f32 %v1569_v1, %v830_v3  ;;  %v305_v0 = vmul.f32 %v1656_v47, %v1656_v47  ;;  %v1673_v18 = vsub.f32 %v1591_v27, %v948_v42 }
 0x810   :  { %1195 = vst.msk [vmem:[%s1736_s13 + $0x30] sm:$0xff] %vm69_vm0, %v831_v25  ;;  %v306_v11 = vsel %vm69_vm0, %v305_v0, 0.0  ;;  %v950_v53 = vmul.f32 %v1673_v18, %v1673_v18 }
 0x812   :  { %v951_v63 = vsel %vm442_vm7, %v950_v53, 0.0 }
 0x85e   :  { %v638_v54 = vpop.xlane.xlu1 %637 }
 0x85f   :  { %v640_v55 = vmul.f32 %v638_v54, %v1523_v10 }
 0x861   :  { %v642_v56 = vadd.f32 1e-05, %v640_v55 }
 0x863   :  { %1279 = vrsqrt.f32 %v642_v56  ;;  %vm659_vm1 = vweird.f32 %v642_v56 }
 0x869   :  { %v1280_v57 = vpop.eup %1279 }
 0x86a   :  { %v654_v58 = vmul.f32 %v1280_v57, %v642_v56  ;;  %vm660_vm5 = vweird.f32 %v1280_v57 }
 0x86b   :  { %vm661_vm6 = vmor %vm659_vm1, %vm660_vm5 }
 0x86c   :  { %v655_v29 = vmul.f32 %v1280_v57, %v654_v58 }
 0x86e   :  { %v656_v60 = vmul.f32 0.5, %v655_v29 }
 0x870   :  { %v657_v27 = vsub.f32 1.5, %v656_v60 }
 0x872   :  { %v658_v61 = vmul.f32 %v1280_v57, %v657_v27 }
 0x874   :  { %v662_v62 = vsel %vm661_vm6, %v1280_v57, %v658_v61 }
 0x875   :  { %v664_v4 = vmul.f32 %v662_v62, %v630_v43 }
 0x877   :  { %v666_v6 = vmul.f32 %v1564_v59, %v664_v4 }
 0x879   :  { %v668_v8 = vadd.f32 %v1569_v1, %v666_v6 }
 0x87b   :  { %1179 = vst.msk [vmem:[%s1736_s13 + $0x28] sm:$0xff] %vm69_vm0, %v668_v8 }
 0x883   :  { %v1084_v45 = vpop.f32.mrf.mxu2 }
 0x884   :  { %v1085_v46 = vadd.f32 %v1432_v40, %v1084_v45  ;;  %v631_v40 = vmul.f32 %v1664_v51, %v1664_v51 }
 0x886   :  { %v1088_v48 = vsel %vm592_vm11, %v1085_v46, 0.0  ;;  %v633_v52 = vsel %vm69_vm0, %v631_v40, 0.0 }
 0x887   :  { %1089 = vadd.xlane.f32.xlu0 %v1088_v48 }
 0x88b   :  { %v1086_v50 = vpop.f32.mrf.mxu2 }
 0x88f   :  { %307 = vadd.xlane.f32.xlu0 %v306_v11 }
 0x897   :  { %634 = vadd.xlane.f32.xlu0 %v633_v52 }
 0x89f   :  { %952 = vadd.xlane.f32.xlu0 %v951_v63 }
 0x8fa   :  { %v1090_v9 = vpop.xlane.xlu0 %1089 }
 0x8fb   :  { %v1091_v12 = vmul.f32 %v1090_v9, %v1523_v10 }
 0x8fd   :  { %v1686_v13 = vsub.f32 %v1085_v46, %v1091_v12 }
 0x8ff   :  { %v1093_v14 = vmul.f32 %v1686_v13, %v1686_v13 }
 0x901   :  { %v1094_v15 = vsel %vm592_vm11, %v1093_v14, 0.0 }
 0x902   :  { %1095 = vadd.xlane.f32.xlu1 %v1094_v15  ;;  %v308_v16 = vpop.xlane.xlu0 %307 }
 0x903   :  { %v309_v17 = vmul.f32 %v308_v16, %v1523_v10 }
 0x905   :  { %v310_v20 = vadd.f32 1e-05, %v309_v17 }
 0x907   :  { %1281 = vrsqrt.f32 %v310_v20  ;;  %vm317_vm9 = vweird.f32 %v310_v20 }
 0x90a   :  { %v635_v21 = vpop.xlane.xlu0 %634 }
 0x90b   :  { %v639_v22 = vmul.f32 %v635_v21, %v1523_v10 }
 0x90d   :  { %v1282_v23 = vpop.eup %1281  ;;  %v641_v24 = vadd.f32 1e-05, %v639_v22 }
 0x90e   :  { %v312_v28 = vmul.f32 %v1282_v23, %v310_v20  ;;  %vm318_vm8 = vweird.f32 %v1282_v23 }
 0x90f   :  { %1283 = vrsqrt.f32 %v641_v24  ;;  %vm319_vm10 = vmor %vm317_vm9, %vm318_vm8  ;;  %vm649_vm12 = vweird.f32 %v641_v24 }
 0x910   :  { %v313_v30 = vmul.f32 %v1282_v23, %v312_v28 }
 0x912   :  { %v314_v7 = vmul.f32 0.5, %v313_v30  ;;  %v953_v2 = vpop.xlane.xlu0 %952 }
 0x913   :  { %v954_v5 = vmul.f32 %v953_v2, %v1523_v10 }
 0x914   :  { %v315_v31 = vsub.f32 1.5, %v314_v7 }
 0x915   :  { %v1284_v32 = vpop.eup %1283  ;;  %v955_v33 = vadd.f32 1e-05, %v954_v5 }
 0x916   :  { %v316_v34 = vmul.f32 %v1282_v23, %v315_v31  ;;  %v644_v19 = vmul.f32 %v1284_v32, %v641_v24  ;;  %vm650_vm13 = vweird.f32 %v1284_v32 }
 0x917   :  { %1285 = vrsqrt.f32 %v955_v33  ;;  %vm651_vm14 = vmor %vm649_vm12, %vm650_vm13  ;;  %vm962_vm2 = vweird.f32 %v955_v33 }
 0x918   :  { %v320_v35 = vsel %vm319_vm10, %v1282_v23, %v316_v34  ;;  %v645_v37 = vmul.f32 %v1284_v32, %v644_v19 }
 0x919   :  { %v321_v39 = vmul.f32 %v320_v35, %v1656_v47 }
 0x91a   :  { %v646_v3 = vmul.f32 0.5, %v645_v37 }
 0x91b   :  { %v322_v25 = vmul.f32 %v1564_v59, %v321_v39 }
 0x91c   :  { %v647_v38 = vsub.f32 1.5, %v646_v3 }
 0x91d   :  { %v1286_v41 = vpop.eup %1285  ;;  %v323_v43 = vadd.f32 %v1569_v1, %v322_v25 }
 0x91e   :  { %v648_v26 = vmul.f32 %v1284_v32, %v647_v38  ;;  %v957_v44 = vmul.f32 %v1286_v41, %v955_v33  ;;  %vm963_vm15 = vweird.f32 %v1286_v41 }
 0x91f   :  { %324 = vst.msk [vmem:[%s1736_s13 + $0x10] sm:$0xff] %vm69_vm0, %v323_v43  ;;  %vm964_vm3 = vmor %vm962_vm2, %vm963_vm15 }
 0x920   :  { %v652_v36 = vsel %vm651_vm14, %v1284_v32, %v648_v26  ;;  %v958_v45 = vmul.f32 %v1286_v41, %v957_v44 }
 0x921   :  { %v663_v46 = vmul.f32 %v652_v36, %v1664_v51 }
 0x922   :  { %v959_v47 = vmul.f32 0.5, %v958_v45 }
 0x923   :  { %v665_v48 = vmul.f32 %v1564_v59, %v663_v46 }
 0x924   :  { %v960_v49 = vsub.f32 1.5, %v959_v47 }
 0x925   :  { %v667_v0 = vadd.f32 %v1569_v1, %v665_v48 }
 0x926   :  { %v961_v50 = vmul.f32 %v1286_v41, %v960_v49 }
 0x927   :  { %1178 = vst.msk [vmem:[%s1736_s13 + $0x20] sm:$0xff] %vm69_vm0, %v667_v0 }
 0x928   :  { %v965_v11 = vsel %vm964_vm3, %v1286_v41, %v961_v50 }
 0x929   :  { %v966_v40 = vmul.f32 %v965_v11, %v1673_v18 }
 0x92b   :  { %v967_v51 = vmul.f32 %v1564_v59, %v966_v40 }
 0x92d   :  { %v968_v42 = vadd.f32 %v1569_v1, %v967_v51 }
 0x92f   :  { %1210 = vst.msk [vmem:[%s1736_s13 + $0x38] sm:$0xf] %vm442_vm7, %v968_v42 }
 0x975   :  { %v1096_v52 = vpop.xlane.xlu1 %1095 }
 0x976   :  { %v1097_v53 = vmul.f32 %v1096_v52, %v1523_v10 }
 0x978   :  { %v1098_v63 = vadd.f32 1e-05, %v1097_v53 }
 0x97a   :  { %1287 = vrsqrt.f32 %v1098_v63  ;;  %vm1105_vm4 = vweird.f32 %v1098_v63 }
 0x980   :  { %v1288_v54 = vpop.eup %1287 }
 0x981   :  { %v1100_v55 = vmul.f32 %v1288_v54, %v1098_v63  ;;  %vm1106_vm0 = vweird.f32 %v1288_v54 }
 0x982   :  { %vm1107_vm1 = vmor %vm1105_vm4, %vm1106_vm0 }
 0x983   :  { %v1101_v56 = vmul.f32 %v1288_v54, %v1100_v55 }
 0x985   :  { %v1102_v57 = vmul.f32 0.5, %v1101_v56 }
 0x987   :  { %v1103_v58 = vsub.f32 1.5, %v1102_v57 }
 0x989   :  { %v1104_v18 = vmul.f32 %v1288_v54, %v1103_v58 }
 0x98b   :  { %v1108_v29 = vsel %vm1107_vm1, %v1288_v54, %v1104_v18 }
 0x98c   :  { %v1109_v60 = vmul.f32 %v1108_v29, %v1686_v13 }
 0x98e   :  { %v1110_v27 = vmul.f32 %v1564_v59, %v1109_v60 }
 0x990   :  { %v1111_v61 = vadd.f32 %v1569_v1, %v1110_v27 }
 0x992   :  { %1227 = vst.msk [vmem:[%s1736_s13 + $0x3c] sm:$0x3] %vm592_vm11, %v1111_v61 }

</bundles_post_ra>
